<compile_context>
chip_gen: v5e
topology: v5e:2x2
jax: 0.10.0
libtpu: 0.0.40
codegen_flags: <defaults>
</compile_context>

<pallas_src>
import functools

import jax
import jax.numpy as jnp
from jax.experimental import pallas as pl
from jax.experimental.pallas import tpu as pltpu


# Explicit scoped-VMEM budget; safe on v5e (16 MiB default), v6e (32 MiB default,
# 128 MiB physical) and v7x (64 MiB physical).  Actual per-step footprint with
# the tile sizes below is < 2 MiB, well inside every generation's budget.
_VMEM_LIMIT_BYTES = 32 * 1024 * 1024


def _pick_row_tile(n_rows, cap=256):
    """Largest row tile <= cap that divides n_rows and is a multiple of 8."""
    if n_rows <= 8 or n_rows % 8 != 0:
        return n_rows                      # single full block (still legal)
    tm = min(cap, n_rows)
    tm -= tm % 8
    while n_rows % tm:
        tm -= 8
    return tm


# ----------------------------- kernels ------------------------------------- #

def _qkv_proj_kernel(x_ref, w_ref, b_ref, q_ref, k_ref, v_ref):
    """Fused Q/K/V projection: one (TM, D) x (D, 3D) bf16 matmul, f32 accum."""
    d = q_ref.shape[-1]
    x = x_ref[...].astype(jnp.bfloat16)                       # MXU feed in bf16
    y = jnp.dot(x, w_ref[...], preferred_element_type=jnp.float32)
    y = y + b_ref[...]                                        # bias in f32
    # Static, 128-aligned lane slices of the (TM, 3D) result slab.
    q_ref[...] = y[:, :d].astype(q_ref.dtype)
    k_ref[...] = y[:, d:2 * d].astype(k_ref.dtype)
    v_ref[...] = y[:, 2 * d:].astype(v_ref.dtype)


def _attention_kernel(q_ref, k_ref, v_ref, o_ref, *, scale):
    """Scaled dot-product attention for one batch element (H heads batched)."""
    q = q_ref[...]                                            # (H, S, dh) bf16
    k = k_ref[...]
    v = v_ref[...]
    # Batched MXU matmul over all H heads at once; no explicit k.T.
    s = jnp.einsum('hqd,hkd->hqk', q, k,
                   preferred_element_type=jnp.float32) * scale
    s = s - jnp.max(s, axis=-1, keepdims=True)                # stable softmax (f32)
    p = jnp.exp(s)
    denom = jnp.sum(p, axis=-1, keepdims=True)
    p = p * pl.reciprocal(denom, approx=True)                 # divide -> EUP slot
    ctx = jnp.einsum('hqk,hkd->hqd', p.astype(v.dtype), v,
                     preferred_element_type=jnp.float32)
    o_ref[...] = ctx.astype(o_ref.dtype)


def _out_ln_kernel(ctx_ref, x_ref, wo_ref, bo_ref, g_ref, beta_ref, o_ref, *, eps):
    """Output projection + residual + LayerNorm on a (TM, D) row tile."""
    out = jnp.dot(ctx_ref[...], wo_ref[...],                  # bf16 x bf16 -> f32
                  preferred_element_type=jnp.float32)
    out = out + bo_ref[...] + x_ref[...]                      # residual in f32
    mean = jnp.mean(out, axis=-1, keepdims=True)
    centered = out - mean
    var = jnp.mean(centered * centered, axis=-1, keepdims=True)
    o_ref[...] = centered * jax.lax.rsqrt(var + eps) * g_ref[...] + beta_ref[...]


# ----------------------------- wrapper -------------------------------------- #

def multi_head_attention(x, params, num_head, *, ln_eps=1e-5, row_tile_cap=256):
    """Pallas implementation of Multi_Head_Attention.forward."""
    B, S, D = x.shape
    assert D % num_head == 0
    dh = D // num_head
    f32, bf16 = jnp.float32, jnp.bfloat16

    wq, bq, wk, bk, wv, bv, wo, bo, gamma, beta = params

    # Fold the three projection weights into one (D, 3D) MXU operand (bf16).
    wqkv = jnp.concatenate([wq, wk, wv], axis=1).astype(bf16)
    bqkv = jnp.concatenate([bq, bk, bv], axis=1).astype(f32)
    wo_bf16 = wo.astype(bf16)

    BS = B * S
    x2 = x.reshape(BS, D)
    tm = _pick_row_tile(BS, row_tile_cap)                     # rows per grid step
    n_row_tiles = BS // tm

    # --- stage 1: fused Q/K/V projection, pipelined over row tiles -----------
    q2, k2, v2 = pl.pallas_call(
        _qkv_proj_kernel,
        grid=(n_row_tiles,),
        out_shape=(jax.ShapeDtypeStruct((BS, D), bf16),) * 3,
        in_specs=[pl.BlockSpec((tm, D), lambda i: (i, 0)),
                  pl.BlockSpec((D, 3 * D), lambda i: (0, 0)),    # weight resident
                  pl.BlockSpec((1, 3 * D), lambda i: (0, 0))],
        out_specs=(pl.BlockSpec((tm, D), lambda i: (i, 0)),) * 3,
        compiler_params=pltpu.CompilerParams(
            dimension_semantics=("parallel",),
            vmem_limit_bytes=_VMEM_LIMIT_BYTES),
    )(x2, wqkv, bqkv)

    # Exact raw contiguous reshape, same as torch .view(B*num_head, -1, dim_head).
    # Free metadata reshape; the next pallas_call's DMA performs the relayout.
    q3 = q2.reshape(B * num_head, S, dh)
    k3 = k2.reshape(B * num_head, S, dh)
    v3 = v2.reshape(B * num_head, S, dh)

    scale = float(dh) ** (-0.5)
    head_blk = pl.BlockSpec((num_head, S, dh), lambda b: (b, 0, 0))

    # --- stage 2: attention, one batch element (all H heads) per grid step ---
    # NOTE: ctx last dim is dh (<128 lanes) so its stores are lane-masked; a
    # fully lane-dense (rows, D) output would require the raw-view relayout
    # inside the kernel (lane-crossing reshape), so we keep it here.
    ctx = pl.pallas_call(
        functools.partial(_attention_kernel, scale=scale),
        grid=(B,),
        out_shape=jax.ShapeDtypeStruct((B * num_head, S, dh), bf16),
        in_specs=[head_blk] * 3,
        out_specs=head_blk,
        compiler_params=pltpu.CompilerParams(
            dimension_semantics=("parallel",),
            vmem_limit_bytes=_VMEM_LIMIT_BYTES),
    )(q3, k3, v3)

    # torch .view(batch, -1, dim_head * num_head): free contiguous reshape back.
    ctx2 = ctx.reshape(BS, D)

    # --- stage 3: output projection + residual + LayerNorm, row-tiled --------
    out2 = pl.pallas_call(
        functools.partial(_out_ln_kernel, eps=ln_eps),
        grid=(n_row_tiles,),
        out_shape=jax.ShapeDtypeStruct((BS, D), f32),
        in_specs=[pl.BlockSpec((tm, D), lambda i: (i, 0)),      # ctx (bf16)
                  pl.BlockSpec((tm, D), lambda i: (i, 0)),      # x residual (f32)
                  pl.BlockSpec((D, D), lambda i: (0, 0)),       # Wo resident
                  pl.BlockSpec((1, D), lambda i: (0, 0)),       # bo
                  pl.BlockSpec((1, D), lambda i: (0, 0)),       # gamma
                  pl.BlockSpec((1, D), lambda i: (0, 0))],      # beta
        out_specs=pl.BlockSpec((tm, D), lambda i: (i, 0)),
        compiler_params=pltpu.CompilerParams(
            dimension_semantics=("parallel",),
            vmem_limit_bytes=_VMEM_LIMIT_BYTES),
    )(ctx2, x2, wo_bf16, bo, gamma, beta)

    return out2.reshape(B, S, D)


# ----------------------------- reference ------------------------------------ #

def multi_head_attention_ref(x, params, num_head, *, ln_eps=1e-5):
    wq, bq, wk, bk, wv, bv, wo, bo, gamma, beta = params
    B, S, D = x.shape
    dh = D // num_head
    Q = x @ wq + bq
    K = x @ wk + bk
    V = x @ wv + bv
    Q = Q.reshape(B * num_head, S, dh)       # same raw .view() as the module
    K = K.reshape(B * num_head, S, dh)
    V = V.reshape(B * num_head, S, dh)
    scale = float(dh) ** (-0.5)
    attn = jnp.einsum('bqd,bkd->bqk', Q, K) * scale
    attn = jax.nn.softmax(attn, axis=-1)
    ctx = jnp.einsum('bqk,bkd->bqd', attn, V).reshape(B, S, D)
    out = ctx @ wo + bo + x
    mean = jnp.mean(out, axis=-1, keepdims=True)
    var = jnp.mean((out - mean) ** 2, axis=-1, keepdims=True)
    return (out - mean) * jax.lax.rsqrt(var + ln_eps) * gamma + beta


# ----------------------------- main ----------------------------------------- #

if __name__ == "__main__":
    # Small but tiling-friendly shapes: batch=4, seq=128, dim_model=128, heads=4
    # (dh = 32).  B*S = 512 rows -> two 256-row tiles per row-tiled kernel.
    B, S, D, H = 4, 128, 128, 4
    key = jax.random.PRNGKey(0)
    keys = jax.random.split(key, 12)

    def lin_w(k):   # (in, out) layout == torch W.T, y = x @ W.T + b
        return jax.random.normal(k, (D, D), jnp.float32) * (D ** -0.5)

    def lin_b(k):
        return jax.random.normal(k, (1, D), jnp.float32) * 0.02

    params = (
        lin_w(keys[0]), lin_b(keys[1]),          # fc_Q
        lin_w(keys[2]), lin_b(keys[3]),          # fc_K
        lin_w(keys[4]), lin_b(keys[5]),          # fc_V
        lin_w(keys[6]), lin_b(keys[7]),          # fc (output proj)
        1.0 + 0.1 * jax.random.normal(keys[8], (1, D), jnp.float32),  # LN gamma
        0.1 * jax.random.normal(keys[9], (1, D), jnp.float32),        # LN beta
    )

    x = jax.random.normal(keys[10], (B, S, D), jnp.float32)

    fwd = jax.jit(lambda xx, pp: multi_head_attention(xx, pp, H))
    out = jax.block_until_ready(fwd(x, params))

    ref = jax.block_until_ready(multi_head_attention_ref(x, params, H))
    assert out.shape == (B, S, D)
    # bf16 MXU operands (f32 accumulation) introduce ~1e-3-level error vs. the
    # all-f32 reference; 2e-2 tolerances leave a comfortable margin.
    assert jnp.allclose(out, ref, rtol=2e-2, atol=2e-2), "mismatch vs reference"

    print("KERNEL_OK")
</pallas_src>

<mosaic_0001>
module attributes {stable_mosaic.version = 11 : i64} {
  func.func @_attention_kernel(%arg0: i32, %arg1: memref<4x128x32xbf16, #tpu.memory_space<vmem>>, %arg2: memref<4x128x32xbf16, #tpu.memory_space<vmem>>, %arg3: memref<4x128x32xbf16, #tpu.memory_space<vmem>>, %arg4: memref<4x128x32xbf16, #tpu.memory_space<vmem>>) attributes {dimension_semantics = [#tpu.dimension_semantics<parallel>], iteration_bounds = array<i64: 4>, scalar_prefetch = 0 : i64, scratch_operands = 0 : i64, tpu.core_type = #tpu.core_type<tc>, window_params = [{transform_indices = @transform_0, window_bounds = array<i64: 4, 128, 32>}, {transform_indices = @transform_1, window_bounds = array<i64: 4, 128, 32>}, {transform_indices = @transform_2, window_bounds = array<i64: 4, 128, 32>}, {transform_indices = @transform_3, window_bounds = array<i64: 4, 128, 32>}]} {
    %c0 = arith.constant 0 : index
    %c0_0 = arith.constant 0 : index
    %c0_1 = arith.constant 0 : index
    %0 = vector.load %arg1[%c0, %c0_0, %c0_1] : memref<4x128x32xbf16, #tpu.memory_space<vmem>>, vector<4x128x32xbf16>
    %c0_2 = arith.constant 0 : index
    %c0_3 = arith.constant 0 : index
    %c0_4 = arith.constant 0 : index
    %1 = vector.load %arg2[%c0_2, %c0_3, %c0_4] : memref<4x128x32xbf16, #tpu.memory_space<vmem>>, vector<4x128x32xbf16>
    %c0_5 = arith.constant 0 : index
    %c0_6 = arith.constant 0 : index
    %c0_7 = arith.constant 0 : index
    %2 = vector.load %arg3[%c0_5, %c0_6, %c0_7] : memref<4x128x32xbf16, #tpu.memory_space<vmem>>, vector<4x128x32xbf16>
    "tpu.trace_start"() <{level = 10 : i32, message = "hqd,hkd->hqk"}> : () -> ()
    %cst = arith.constant dense<0.000000e+00> : vector<4x128x128xf32>
    %3 = tpu.matmul %0, %1, %cst {dimension_numbers = #tpu.dot_dimension_numbers<[2], [2], [1], [1], [0, 0, 0, 1, 1, 1], [0], [0]>} : vector<4x128x32xbf16>, vector<4x128x32xbf16>, vector<4x128x128xf32> -> vector<4x128x128xf32>
    "tpu.trace_stop"() : () -> ()
    %cst_8 = arith.constant 0.176776692 : f32
    %4 = vector.broadcast %cst_8 : f32 to vector<4x128x128xf32>
    %5 = arith.mulf %3, %4 : vector<4x128x128xf32>
    %cst_9 = arith.constant dense<0xFF800000> : vector<4x128xf32>
    %6 = vector.multi_reduction <maximumf>, %5, %cst_9 [2] : vector<4x128x128xf32> to vector<4x128xf32>
    %7 = vector.shape_cast %6 : vector<4x128xf32> to vector<4x128x1xf32>
    %8 = vector.broadcast %7 : vector<4x128x1xf32> to vector<4x128x128xf32>
    %9 = arith.subf %5, %8 : vector<4x128x128xf32>
    %10 = math.exp %9 : vector<4x128x128xf32>
    %cst_10 = arith.constant dense<0.000000e+00> : vector<4x128xf32>
    %11 = vector.multi_reduction <add>, %10, %cst_10 [2] : vector<4x128x128xf32> to vector<4x128xf32>
    %12 = vector.shape_cast %11 : vector<4x128xf32> to vector<4x128x1xf32>
    %13 = tpu.reciprocal %12 {approx = true} : vector<4x128x1xf32> -> vector<4x128x1xf32>
    %14 = vector.broadcast %13 : vector<4x128x1xf32> to vector<4x128x128xf32>
    %15 = arith.mulf %10, %14 : vector<4x128x128xf32>
    %16 = arith.truncf %15 : vector<4x128x128xf32> to vector<4x128x128xbf16>
    "tpu.trace_start"() <{level = 10 : i32, message = "hqk,hkd->hqd"}> : () -> ()
    %cst_11 = arith.constant dense<0.000000e+00> : vector<4x128x32xf32>
    %17 = tpu.matmul %16, %2, %cst_11 {dimension_numbers = #tpu.dot_dimension_numbers<[2], [1], [1], [2], [0, 0, 0, 1, 1, 2], [0], [0]>} : vector<4x128x128xbf16>, vector<4x128x32xbf16>, vector<4x128x32xf32> -> vector<4x128x32xf32>
    "tpu.trace_stop"() : () -> ()
    %18 = arith.truncf %17 : vector<4x128x32xf32> to vector<4x128x32xbf16>
    %c0_12 = arith.constant 0 : index
    %c0_13 = arith.constant 0 : index
    %c0_14 = arith.constant 0 : index
    %19 = vector.load %arg4[%c0_12, %c0_13, %c0_14] : memref<4x128x32xbf16, #tpu.memory_space<vmem>>, vector<4x128x32xbf16>
    tpu.vector_store %arg4[%c0_12, %c0_13, %c0_14], %18 {strides = array<i32>} : memref<4x128x32xbf16, #tpu.memory_space<vmem>>, vector<4x128x32xbf16>,
    return
  }
  func.func @transform_0(%arg0: i32) -> (i32, i32, i32) {
    %c0_i32 = arith.constant 0 : i32
    %c0_i32_0 = arith.constant 0 : i32
    %c0_i32_1 = arith.constant 0 : i32
    return %arg0, %c0_i32, %c0_i32_0 : i32, i32, i32
  }
  func.func @transform_1(%arg0: i32) -> (i32, i32, i32) {
    %c0_i32 = arith.constant 0 : i32
    %c0_i32_0 = arith.constant 0 : i32
    %c0_i32_1 = arith.constant 0 : i32
    return %arg0, %c0_i32, %c0_i32_0 : i32, i32, i32
  }
  func.func @transform_2(%arg0: i32) -> (i32, i32, i32) {
    %c0_i32 = arith.constant 0 : i32
    %c0_i32_0 = arith.constant 0 : i32
    %c0_i32_1 = arith.constant 0 : i32
    return %arg0, %c0_i32, %c0_i32_0 : i32, i32, i32
  }
  func.func @transform_3(%arg0: i32) -> (i32, i32, i32) {
    %c0_i32 = arith.constant 0 : i32
    %c0_i32_0 = arith.constant 0 : i32
    %c0_i32_1 = arith.constant 0 : i32
    return %arg0, %c0_i32, %c0_i32_0 : i32, i32, i32
  }
}

module attributes {stable_mosaic.version = 11 : i64} {
  func.func @_qkv_proj_kernel(%arg0: i32, %arg1: memref<256x128xf32, #tpu.memory_space<vmem>>, %arg2: memref<128x384xbf16, #tpu.memory_space<vmem>>, %arg3: memref<1x384xf32, #tpu.memory_space<vmem>>, %arg4: memref<256x128xbf16, #tpu.memory_space<vmem>>, %arg5: memref<256x128xbf16, #tpu.memory_space<vmem>>, %arg6: memref<256x128xbf16, #tpu.memory_space<vmem>>) attributes {dimension_semantics = [#tpu.dimension_semantics<parallel>], iteration_bounds = array<i64: 2>, scalar_prefetch = 0 : i64, scratch_operands = 0 : i64, tpu.core_type = #tpu.core_type<tc>, window_params = [{transform_indices = @transform_0, window_bounds = array<i64: 256, 128>}, {pipeline_mode = #tpu.pipeline_mode<synchronous>, transform_indices = @transform_1, window_bounds = array<i64: 128, 384>}, {pipeline_mode = #tpu.pipeline_mode<synchronous>, transform_indices = @transform_2, window_bounds = array<i64: 1, 384>}, {transform_indices = @transform_3, window_bounds = array<i64: 256, 128>}, {transform_indices = @transform_4, window_bounds = array<i64: 256, 128>}, {transform_indices = @transform_5, window_bounds = array<i64: 256, 128>}]} {
    %c0 = arith.constant 0 : index
    %c0_0 = arith.constant 0 : index
    %0 = vector.load %arg1[%c0, %c0_0] : memref<256x128xf32, #tpu.memory_space<vmem>>, vector<256x128xf32>
    %1 = arith.truncf %0 : vector<256x128xf32> to vector<256x128xbf16>
    %c0_1 = arith.constant 0 : index
    %c0_2 = arith.constant 0 : index
    %2 = vector.load %arg2[%c0_1, %c0_2] : memref<128x384xbf16, #tpu.memory_space<vmem>>, vector<128x384xbf16>
    %cst = arith.constant dense<0.000000e+00> : vector<256x384xf32>
    %3 = tpu.matmul %1, %2, %cst {dimension_numbers = #tpu.dot_dimension_numbers<[1], [0], [0], [1], [0, 0, 1, 1], [], []>} : vector<256x128xbf16>, vector<128x384xbf16>, vector<256x384xf32> -> vector<256x384xf32>
    %c0_3 = arith.constant 0 : index
    %c0_4 = arith.constant 0 : index
    %4 = vector.load %arg3[%c0_3, %c0_4] : memref<1x384xf32, #tpu.memory_space<vmem>>, vector<1x384xf32>
    %5 = vector.broadcast %4 : vector<1x384xf32> to vector<256x384xf32>
    %6 = arith.addf %3, %5 : vector<256x384xf32>
    %7 = vector.extract_strided_slice %6 {offsets = [0, 0], sizes = [256, 128], strides = [1, 1]} : vector<256x384xf32> to vector<256x128xf32>
    %8 = arith.truncf %7 : vector<256x128xf32> to vector<256x128xbf16>
    %c0_5 = arith.constant 0 : index
    %c0_6 = arith.constant 0 : index
    %9 = vector.load %arg4[%c0_5, %c0_6] : memref<256x128xbf16, #tpu.memory_space<vmem>>, vector<256x128xbf16>
    tpu.vector_store %arg4[%c0_5, %c0_6], %8 {strides = array<i32>} : memref<256x128xbf16, #tpu.memory_space<vmem>>, vector<256x128xbf16>,
    %10 = vector.extract_strided_slice %6 {offsets = [0, 128], sizes = [256, 128], strides = [1, 1]} : vector<256x384xf32> to vector<256x128xf32>
    %11 = arith.truncf %10 : vector<256x128xf32> to vector<256x128xbf16>
    %c0_7 = arith.constant 0 : index
    %c0_8 = arith.constant 0 : index
    %12 = vector.load %arg5[%c0_7, %c0_8] : memref<256x128xbf16, #tpu.memory_space<vmem>>, vector<256x128xbf16>
    tpu.vector_store %arg5[%c0_7, %c0_8], %11 {strides = array<i32>} : memref<256x128xbf16, #tpu.memory_space<vmem>>, vector<256x128xbf16>,
    %13 = vector.extract_strided_slice %6 {offsets = [0, 256], sizes = [256, 128], strides = [1, 1]} : vector<256x384xf32> to vector<256x128xf32>
    %14 = arith.truncf %13 : vector<256x128xf32> to vector<256x128xbf16>
    %c0_9 = arith.constant 0 : index
    %c0_10 = arith.constant 0 : index
    %15 = vector.load %arg6[%c0_9, %c0_10] : memref<256x128xbf16, #tpu.memory_space<vmem>>, vector<256x128xbf16>
    tpu.vector_store %arg6[%c0_9, %c0_10], %14 {strides = array<i32>} : memref<256x128xbf16, #tpu.memory_space<vmem>>, vector<256x128xbf16>,
    return
  }
  func.func @transform_0(%arg0: i32) -> (i32, i32) {
    %c0_i32 = arith.constant 0 : i32
    %c0_i32_0 = arith.constant 0 : i32
    return %arg0, %c0_i32 : i32, i32
  }
  func.func @transform_1(%arg0: i32) -> (i32, i32) {
    %c0_i32 = arith.constant 0 : i32
    %c0_i32_0 = arith.constant 0 : i32
    %c0_i32_1 = arith.constant 0 : i32
    return %c0_i32, %c0_i32_0 : i32, i32
  }
  func.func @transform_2(%arg0: i32) -> (i32, i32) {
    %c0_i32 = arith.constant 0 : i32
    %c0_i32_0 = arith.constant 0 : i32
    %c0_i32_1 = arith.constant 0 : i32
    return %c0_i32, %c0_i32_0 : i32, i32
  }
  func.func @transform_3(%arg0: i32) -> (i32, i32) {
    %c0_i32 = arith.constant 0 : i32
    %c0_i32_0 = arith.constant 0 : i32
    return %arg0, %c0_i32 : i32, i32
  }
  func.func @transform_4(%arg0: i32) -> (i32, i32) {
    %c0_i32 = arith.constant 0 : i32
    %c0_i32_0 = arith.constant 0 : i32
    return %arg0, %c0_i32 : i32, i32
  }
  func.func @transform_5(%arg0: i32) -> (i32, i32) {
    %c0_i32 = arith.constant 0 : i32
    %c0_i32_0 = arith.constant 0 : i32
    return %arg0, %c0_i32 : i32, i32
  }
}

module attributes {stable_mosaic.version = 11 : i64} {
  func.func @_out_ln_kernel(%arg0: i32, %arg1: memref<256x128xbf16, #tpu.memory_space<vmem>>, %arg2: memref<256x128xf32, #tpu.memory_space<vmem>>, %arg3: memref<128x128xbf16, #tpu.memory_space<vmem>>, %arg4: memref<1x128xf32, #tpu.memory_space<vmem>>, %arg5: memref<1x128xf32, #tpu.memory_space<vmem>>, %arg6: memref<1x128xf32, #tpu.memory_space<vmem>>, %arg7: memref<256x128xf32, #tpu.memory_space<vmem>>) attributes {dimension_semantics = [#tpu.dimension_semantics<parallel>], iteration_bounds = array<i64: 2>, scalar_prefetch = 0 : i64, scratch_operands = 0 : i64, tpu.core_type = #tpu.core_type<tc>, window_params = [{transform_indices = @transform_0, window_bounds = array<i64: 256, 128>}, {transform_indices = @transform_1, window_bounds = array<i64: 256, 128>}, {pipeline_mode = #tpu.pipeline_mode<synchronous>, transform_indices = @transform_2, window_bounds = array<i64: 128, 128>}, {pipeline_mode = #tpu.pipeline_mode<synchronous>, transform_indices = @transform_3, window_bounds = array<i64: 1, 128>}, {pipeline_mode = #tpu.pipeline_mode<synchronous>, transform_indices = @transform_4, window_bounds = array<i64: 1, 128>}, {pipeline_mode = #tpu.pipeline_mode<synchronous>, transform_indices = @transform_5, window_bounds = array<i64: 1, 128>}, {transform_indices = @transform_6, window_bounds = array<i64: 256, 128>}]} {
    %c0 = arith.constant 0 : index
    %c0_0 = arith.constant 0 : index
    %0 = vector.load %arg1[%c0, %c0_0] : memref<256x128xbf16, #tpu.memory_space<vmem>>, vector<256x128xbf16>
    %c0_1 = arith.constant 0 : index
    %c0_2 = arith.constant 0 : index
    %1 = vector.load %arg3[%c0_1, %c0_2] : memref<128x128xbf16, #tpu.memory_space<vmem>>, vector<128x128xbf16>
    %cst = arith.constant dense<0.000000e+00> : vector<256x128xf32>
    %2 = tpu.matmul %0, %1, %cst {dimension_numbers = #tpu.dot_dimension_numbers<[1], [0], [0], [1], [0, 0, 1, 1], [], []>} : vector<256x128xbf16>, vector<128x128xbf16>, vector<256x128xf32> -> vector<256x128xf32>
    %c0_3 = arith.constant 0 : index
    %c0_4 = arith.constant 0 : index
    %3 = vector.load %arg4[%c0_3, %c0_4] : memref<1x128xf32, #tpu.memory_space<vmem>>, vector<1x128xf32>
    %4 = vector.broadcast %3 : vector<1x128xf32> to vector<256x128xf32>
    %5 = arith.addf %2, %4 : vector<256x128xf32>
    %c0_5 = arith.constant 0 : index
    %c0_6 = arith.constant 0 : index
    %6 = vector.load %arg2[%c0_5, %c0_6] : memref<256x128xf32, #tpu.memory_space<vmem>>, vector<256x128xf32>
    %7 = arith.addf %5, %6 : vector<256x128xf32>
    %cst_7 = arith.constant dense<0.000000e+00> : vector<256xf32>
    %8 = vector.multi_reduction <add>, %7, %cst_7 [1] : vector<256x128xf32> to vector<256xf32>
    %9 = vector.shape_cast %8 : vector<256xf32> to vector<256x1xf32>
    %cst_8 = arith.constant 1.280000e+02 : f32
    %10 = vector.broadcast %cst_8 : f32 to vector<256x1xf32>
    %11 = arith.divf %9, %10 : vector<256x1xf32>
    %12 = vector.broadcast %11 : vector<256x1xf32> to vector<256x128xf32>
    %13 = arith.subf %7, %12 : vector<256x128xf32>
    %14 = arith.mulf %13, %13 : vector<256x128xf32>
    %cst_9 = arith.constant dense<0.000000e+00> : vector<256xf32>
    %15 = vector.multi_reduction <add>, %14, %cst_9 [1] : vector<256x128xf32> to vector<256xf32>
    %16 = vector.shape_cast %15 : vector<256xf32> to vector<256x1xf32>
    %cst_10 = arith.constant 1.280000e+02 : f32
    %17 = vector.broadcast %cst_10 : f32 to vector<256x1xf32>
    %18 = arith.divf %16, %17 : vector<256x1xf32>
    %cst_11 = arith.constant 9.99999974E-6 : f32
    %19 = vector.broadcast %cst_11 : f32 to vector<256x1xf32>
    %20 = arith.addf %18, %19 : vector<256x1xf32>
    %21 = math.rsqrt %20 : vector<256x1xf32>
    %22 = vector.broadcast %21 : vector<256x1xf32> to vector<256x128xf32>
    %23 = arith.mulf %13, %22 : vector<256x128xf32>
    %c0_12 = arith.constant 0 : index
    %c0_13 = arith.constant 0 : index
    %24 = vector.load %arg5[%c0_12, %c0_13] : memref<1x128xf32, #tpu.memory_space<vmem>>, vector<1x128xf32>
    %25 = vector.broadcast %24 : vector<1x128xf32> to vector<256x128xf32>
    %26 = arith.mulf %23, %25 : vector<256x128xf32>
    %c0_14 = arith.constant 0 : index
    %c0_15 = arith.constant 0 : index
    %27 = vector.load %arg6[%c0_14, %c0_15] : memref<1x128xf32, #tpu.memory_space<vmem>>, vector<1x128xf32>
    %28 = vector.broadcast %27 : vector<1x128xf32> to vector<256x128xf32>
    %29 = arith.addf %26, %28 : vector<256x128xf32>
    %c0_16 = arith.constant 0 : index
    %c0_17 = arith.constant 0 : index
    %30 = vector.load %arg7[%c0_16, %c0_17] : memref<256x128xf32, #tpu.memory_space<vmem>>, vector<256x128xf32>
    tpu.vector_store %arg7[%c0_16, %c0_17], %29 {strides = array<i32>} : memref<256x128xf32, #tpu.memory_space<vmem>>, vector<256x128xf32>,
    return
  }
  func.func @transform_0(%arg0: i32) -> (i32, i32) {
    %c0_i32 = arith.constant 0 : i32
    %c0_i32_0 = arith.constant 0 : i32
    return %arg0, %c0_i32 : i32, i32
  }
  func.func @transform_1(%arg0: i32) -> (i32, i32) {
    %c0_i32 = arith.constant 0 : i32
    %c0_i32_0 = arith.constant 0 : i32
    return %arg0, %c0_i32 : i32, i32
  }
  func.func @transform_2(%arg0: i32) -> (i32, i32) {
    %c0_i32 = arith.constant 0 : i32
    %c0_i32_0 = arith.constant 0 : i32
    %c0_i32_1 = arith.constant 0 : i32
    return %c0_i32, %c0_i32_0 : i32, i32
  }
  func.func @transform_3(%arg0: i32) -> (i32, i32) {
    %c0_i32 = arith.constant 0 : i32
    %c0_i32_0 = arith.constant 0 : i32
    %c0_i32_1 = arith.constant 0 : i32
    return %c0_i32, %c0_i32_0 : i32, i32
  }
  func.func @transform_4(%arg0: i32) -> (i32, i32) {
    %c0_i32 = arith.constant 0 : i32
    %c0_i32_0 = arith.constant 0 : i32
    %c0_i32_1 = arith.constant 0 : i32
    return %c0_i32, %c0_i32_0 : i32, i32
  }
  func.func @transform_5(%arg0: i32) -> (i32, i32) {
    %c0_i32 = arith.constant 0 : i32
    %c0_i32_0 = arith.constant 0 : i32
    %c0_i32_1 = arith.constant 0 : i32
    return %c0_i32, %c0_i32_0 : i32, i32
  }
  func.func @transform_6(%arg0: i32) -> (i32, i32) {
    %c0_i32 = arith.constant 0 : i32
    %c0_i32_0 = arith.constant 0 : i32
    return %arg0, %c0_i32 : i32, i32
  }
}

</mosaic_0001>

<bundles_post_ra>
// kernel: _lambda_.3
= control target key start
LH: loop header
LB: loop body
LE: loop exit
PB: predicated region body
PF: predicated region fallthrough
CT: control target
= control target key end

     0   :  { %s1544_s18 = smov 0   ;;  %s1978_s0 = inlined_call_operand.vmem [shape: f32[512,128], index: 0, kind: input, shape index: {}]   ;;  %s1979_s1 = inlined_call_operand.vmem [shape: bf16[128,384], index: 1, kind: input, shape index: {}]   ;;  %s1980_s2 = inlined_call_operand.vmem [shape: f32[1,384], index: 2, kind: input, shape index: {}]   ;;  %s1981_s3 = inlined_call_operand.vmem [shape: bf16[512,128], index: 3, kind: output, shape index: {0}]   ;;  %s1982_s4 = inlined_call_operand.vmem [shape: bf16[512,128], index: 4, kind: output, shape index: {1}]   ;;  %s1983_s5 = inlined_call_operand.vmem [shape: bf16[512,128], index: 5, kind: output, shape index: {2}]  }
   0x1 LB: > { %s1054_s19 = sadd.s32 4294967295, %s1512_s18   ;;  %p1058_p0 = scmp.ge.s32.totalorder %s1512_s18, 1  ;;  %s1512_s18 = sphi %s1544_s18, %s16_s18  }
   0x2   : > { %p193_p1 = scmp.lt.s32.totalorder %s1512_s18, 3 }
   0x4   : > { %p194_p2 = pnand %p1058_p0, %p193_p1 }
   0x5   : > { %s1059_s17 = sshll.u32 (!%p194_p2), %s1054_s19, 5 }
   0x6   : > { %197 = sbr.rel (%p194_p2) target bundleno = 368 (0x170), region = 32  ;;  %p232_p3 = scmp.lt.s32.totalorder (!%p194_p2), %s1059_s17, 63 }
   0xb   : > { %v1153_v0 = vld [vmem:[%s1979_s1 + $0xa8] sm:$0xf]  ;;  %v1187_v1 = vld [vmem:[%s1979_s1 + $0xb0] sm:$0xf0]  ;;  %v1186_v2 = vld [vmem:[%s1979_s1 + $0xac] sm:$0xf] }
   0xc   : > { %v1154_v3 = vor.u32 %v1187_v1, %v1153_v0  ;;  %v1155_v4 = vld [vmem:[%s1979_s1 + $0xb4] sm:$0xf0]  ;;  %v1161_v5 = vld [vmem:[%s1979_s1 + $0xb0] sm:$0xf]  ;;  %v1188_v6 = vld [vmem:[%s1979_s1 + $0xb8] sm:$0xf0] }
   0xd   : > { %v1570_v7 = vor.u32 %v1186_v2, %v1155_v4  ;;  %v1572_v8 = vor.u32 %v1188_v6, %v1161_v5  ;;  %v1141_v9 = vld [vmem:[%s1979_s1 + $0x90] sm:$0xf]  ;;  %v1184_v10 = vld [vmem:[%s1979_s1 + $0x98] sm:$0xf0]  ;;  %v1183_v11 = vld [vmem:[%s1979_s1 + $0x94] sm:$0xf] }
   0xe   : > { %471 = vmatpush.bf16.msra.mxu0 %v1154_v3  ;;  %1474 = vmatpush.bf16.msra.mxu3 %v1154_v3  ;;  %v1142_v12 = vor.u32 %v1184_v10, %v1141_v9  ;;  %v1143_v13 = vld [vmem:[%s1979_s1 + $0x9c] sm:$0xf0]  ;;  %v1149_v14 = vld [vmem:[%s1979_s1 + $0x98] sm:$0xf]  ;;  %v1185_v15 = vld [vmem:[%s1979_s1 + $0xa0] sm:$0xf0] }
   0xf   : > { %560 = vmatpush.bf16.msra.mxu1 %v1570_v7  ;;  %649 = vmatpush.bf16.msra.mxu2 %v1572_v8  ;;  %v1594_v16 = vor.u32 %v1183_v11, %v1143_v13  ;;  %v1596_v17 = vor.u32 %v1185_v15, %v1149_v14  ;;  %v1129_v18 = vld [vmem:[%s1979_s1 + $0x78] sm:$0xf]  ;;  %v1181_v19 = vld [vmem:[%s1979_s1 + $0x80] sm:$0xf0]  ;;  %v1180_v20 = vld [vmem:[%s1979_s1 + $0x7c] sm:$0xf] }
  0x10   : > { %v1131_v21 = vld [vmem:[%s1979_s1 + $0x84] sm:$0xf0]  ;;  %v1137_v22 = vld [vmem:[%s1979_s1 + $0x80] sm:$0xf]  ;;  %v1182_v23 = vld [vmem:[%s1979_s1 + $0x88] sm:$0xf0]  ;;  %v1130_v24 = vor.u32 %v1181_v19, %v1129_v18 }
  0x11   : > { %v1618_v25 = vor.u32 %v1180_v20, %v1131_v21  ;;  %v1620_v26 = vor.u32 %v1182_v23, %v1137_v22  ;;  %v1117_v27 = vld [vmem:[%s1979_s1 + $0x60] sm:$0xf]  ;;  %v1178_v28 = vld [vmem:[%s1979_s1 + $0x68] sm:$0xf0]  ;;  %v1177_v29 = vld [vmem:[%s1979_s1 + $0x64] sm:$0xf] }
  0x12   : > { %472 = vmatpush.bf16.msra.mxu0 %v1142_v12  ;;  %1475 = vmatpush.bf16.msra.mxu3 %v1142_v12  ;;  %v1119_v30 = vld [vmem:[%s1979_s1 + $0x6c] sm:$0xf0]  ;;  %v1125_v31 = vld [vmem:[%s1979_s1 + $0x68] sm:$0xf]  ;;  %v1179_v32 = vld [vmem:[%s1979_s1 + $0x70] sm:$0xf0]  ;;  %v1118_v33 = vor.u32 %v1178_v28, %v1117_v27 }
  0x13   : > { %561 = vmatpush.bf16.msra.mxu1 %v1594_v16  ;;  %650 = vmatpush.bf16.msra.mxu2 %v1596_v17  ;;  %v1642_v34 = vor.u32 %v1177_v29, %v1119_v30  ;;  %v1644_v35 = vor.u32 %v1179_v32, %v1125_v31  ;;  %v1105_v36 = vld [vmem:[%s1979_s1 + $0x48] sm:$0xf]  ;;  %v1175_v37 = vld [vmem:[%s1979_s1 + $0x50] sm:$0xf0]  ;;  %v1174_v38 = vld [vmem:[%s1979_s1 + $0x4c] sm:$0xf] }
  0x14   : > { %v1107_v39 = vld [vmem:[%s1979_s1 + $0x54] sm:$0xf0]  ;;  %v1113_v40 = vld [vmem:[%s1979_s1 + $0x50] sm:$0xf]  ;;  %v1176_v41 = vld [vmem:[%s1979_s1 + $0x58] sm:$0xf0]  ;;  %v1106_v42 = vor.u32 %v1175_v37, %v1105_v36 }
  0x15   : > { %v1093_v43 = vld [vmem:[%s1979_s1 + $0x30] sm:$0xf]  ;;  %v1172_v44 = vld [vmem:[%s1979_s1 + $0x38] sm:$0xf0]  ;;  %v1672_v45 = vor.u32 %v1174_v38, %v1107_v39  ;;  %v1674_v46 = vor.u32 %v1176_v41, %v1113_v40  ;;  %v1171_v47 = vld [vmem:[%s1979_s1 + $0x34] sm:$0xf] }
  0x16   : > { %473 = vmatpush.bf16.msra.mxu0 %v1130_v24  ;;  %1476 = vmatpush.bf16.msra.mxu3 %v1130_v24  ;;  %v1095_v48 = vld [vmem:[%s1979_s1 + $0x3c] sm:$0xf0]  ;;  %v1101_v49 = vld [vmem:[%s1979_s1 + $0x38] sm:$0xf]  ;;  %v1173_v50 = vld [vmem:[%s1979_s1 + $0x40] sm:$0xf0]  ;;  %v1094_v51 = vor.u32 %v1172_v44, %v1093_v43 }
  0x17   : > { %562 = vmatpush.bf16.msra.mxu1 %v1618_v25  ;;  %651 = vmatpush.bf16.msra.mxu2 %v1620_v26  ;;  %v1081_v52 = vld [vmem:[%s1979_s1 + $0x18] sm:$0xf]  ;;  %s1985_s17 = smov (!%p232_p3, %s1059_s17), 63  ;;  %v1098_v53 = vor.u32 %v1171_v47, %v1095_v48  ;;  %v1697_v54 = vor.u32 %v1173_v50, %v1101_v49  ;;  %v1169_v55 = vld [vmem:[%s1979_s1 + $0x20] sm:$0xf0] }
  0x18   : > { %v1168_v56 = vld [vmem:[%s1979_s1 + $0x1c] sm:$0xf]  ;;  %v1083_v57 = vld [vmem:[%s1979_s1 + $0x24] sm:$0xf0]  ;;  %v1089_v58 = vld [vmem:[%s1979_s1 + $0x20] sm:$0xf]  ;;  %v1082_v60 = vor.u32 %v1169_v55, %v1081_v52 }
  0x19   : > { %v1170_v59 = vld [vmem:[%s1979_s1 + $0x28] sm:$0xf0]  ;;  %s1060_s10 = sshll.u32 %s1985_s17, 3  ;;  %v1086_v61 = vor.u32 %v1168_v56, %v1083_v57  ;;  %v1069_v63 = vld [vmem:[%s1979_s1] sm:$0xf]  ;;  %s1062_s30 = sshll.u32 %s1985_s17, 2 }
  0x1a   : > { %474 = vmatpush.bf16.msra.mxu0 %v1118_v33  ;;  %1477 = vmatpush.bf16.msra.mxu3 %v1118_v33  ;;  %s1718_s13 = scalar_lea.vmem %s1978_s0, %s1060_s10  ;;  %v1721_v62 = vor.u32 %v1170_v59, %v1089_v58  ;;  %v1166_v0 = vld [vmem:[%s1979_s1 + $0x8] sm:$0xf0]  ;;  %v1165_v1 = vld [vmem:[%s1979_s1 + $0x4] sm:$0xf]  ;;  %v1071_v2 = vld [vmem:[%s1979_s1 + $0xc] sm:$0xf0]  ;;  %s1811_s8 = scalar_lea.vmem %s1981_s3, %s1062_s30 }
  0x1b   : > { %563 = vmatpush.bf16.msra.mxu1 %v1642_v34  ;;  %652 = vmatpush.bf16.msra.mxu2 %v1644_v35  ;;  %v1077_v3 = vld [vmem:[%s1979_s1 + $0x8] sm:$0xf]  ;;  %v1167_v4 = vld [vmem:[%s1979_s1 + $0x10] sm:$0xf0]  ;;  %v255_v5 = vld [vmem:[%s1718_s13] sm:$0xff]  ;;  %v1070_v6 = vor.u32 %v1166_v0, %v1069_v63  ;;  %v1074_v12 = vor.u32 %v1165_v1, %v1071_v2  ;;  %s1817_s17 = scalar_lea.vmem %s1982_s4, %s1062_s30  ;;  %s1832_s14 = scalar_lea.vmem %s1983_s5, %s1062_s30 }
  0x1c   : > { %v256_v9 = vld [vmem:[%s1718_s13 + $0x8] sm:$0xff]  ;;  %v279_v10 = vld [vmem:[%s1718_s13 + $0xc0] sm:$0xff]  ;;  %v1078_v13 = vor.u32 %v1167_v4, %v1077_v3  ;;  %v257_v18 = vld [vmem:[%s1718_s13 + $0x10] sm:$0xff] }
  0x1d   : > { %v280_v11 = vld [vmem:[%s1718_s13 + $0xc8] sm:$0xff]  ;;  %v287_v14 = vpack.c.bf16 %v256_v9, %v255_v5  ;;  %v258_v19 = vld [vmem:[%s1718_s13 + $0x18] sm:$0xff]  ;;  %v281_v20 = vld [vmem:[%s1718_s13 + $0xd0] sm:$0xff] }
  0x1e   : > { %475 = vmatpush.bf16.msra.mxu0 %v1106_v42  ;;  %1478 = vmatpush.bf16.msra.mxu3 %v1106_v42  ;;  %v1746_v15 = vpack.c.bf16 %v280_v11, %v279_v10  ;;  %v282_v21 = vld [vmem:[%s1718_s13 + $0xd8] sm:$0xff]  ;;  %v260_v23 = vld [vmem:[%s1718_s13 + $0x28] sm:$0xff]  ;;  %v283_v24 = vld [vmem:[%s1718_s13 + $0xe0] sm:$0xff] }
  0x1f   : > { %564 = vmatpush.bf16.msra.mxu1 %v1672_v45  ;;  %653 = vmatpush.bf16.msra.mxu2 %v1674_v46  ;;  %v1757_v22 = vpack.c.bf16 %v282_v21, %v281_v20  ;;  %v261_v29 = vld [vmem:[%s1718_s13 + $0x30] sm:$0xff]  ;;  %v262_v30 = vld [vmem:[%s1718_s13 + $0x38] sm:$0xff]  ;;  %v267_v38 = vld [vmem:[%s1718_s13 + $0x60] sm:$0xff] }
  0x20   : > { %v285_v31 = vld [vmem:[%s1718_s13 + $0xf0] sm:$0xff]  ;;  %v286_v32 = vld [vmem:[%s1718_s13 + $0xf8] sm:$0xff]  ;;  %v290_v33 = vpack.c.bf16 %v262_v30, %v261_v29  ;;  %v268_v39 = vld [vmem:[%s1718_s13 + $0x68] sm:$0xff] }
  0x21   : > { %v266_v36 = vld [vmem:[%s1718_s13 + $0x58] sm:$0xff]  ;;  %v293_v40 = vpack.c.bf16 %v268_v39, %v267_v38  ;;  %v269_v41 = vld [vmem:[%s1718_s13 + $0x70] sm:$0xff]  ;;  %v271_v44 = vld [vmem:[%s1718_s13 + $0x80] sm:$0xff] }
  0x22   : > { %476 = vmatpush.bf16.msra.mxu0 %v1094_v51  ;;  %1479 = vmatpush.bf16.msra.mxu3 %v1094_v51  ;;  %v270_v42 = vld [vmem:[%s1718_s13 + $0x78] sm:$0xff]  ;;  %v335_v49 = vld [vmem:[%s1980_s2] sm:$0x7]  ;;  %v273_v63 = vld [vmem:[%s1718_s13 + $0x90] sm:$0xff] }
  0x23   : > { %565 = vmatpush.bf16.msra.mxu1 %v1098_v53  ;;  %654 = vmatpush.bf16.msra.mxu2 %v1697_v54  ;;  %v294_v43 = vpack.c.bf16 %v270_v42, %v269_v41  ;;  %v1800_v50 = vperm.slane %v335_v49, 0  ;;  %v1802_v51 = vperm.slane %v335_v49, 1  ;;  %v274_v0 = vld [vmem:[%s1718_s13 + $0x98] sm:$0xff] }
  0x24   : > { %v296_v5 = vpack.c.bf16 %v274_v0, %v273_v63 }
  0x26   : > { %477 = vmatpush.bf16.msra.mxu0 %v1082_v60  ;;  %1480 = vmatpush.bf16.msra.mxu3 %v1082_v60 }
  0x27   : > { %566 = vmatpush.bf16.msra.mxu1 %v1086_v61  ;;  %655 = vmatpush.bf16.msra.mxu2 %v1721_v62 }
  0x2a   : > { %478 = vmatpush.bf16.msra.mxu0 %v1070_v6  ;;  %1481 = vmatpush.bf16.msra.mxu3 %v1070_v6 }
  0x2b   : > { %567 = vmatpush.bf16.msra.mxu1 %v1074_v12  ;;  %656 = vmatpush.bf16.msra.mxu2 %v1078_v13 }
  0x2d   : > { %479 = vmatmul.bf16.vlgmr.msra.gmra.mxu0 %v287_v14  ;;  %539 = vmatmul.bf16.vlgmr.msra.gmra.mxu3 %v1746_v15 }
  0x2e   : > { %1482 = vmatpush.bf16.msrb.mxu3 %v1570_v7  ;;  %568 = vmatmul.bf16.vlgmr.msra.gmra.mxu1 %v287_v14  ;;  %v288_v7 = vpack.c.bf16 %v258_v19, %v257_v18 }
  0x2f   : > { %657 = vmatmul.bf16.vlgmr.msra.gmra.mxu2 %v287_v14 }
  0x32   : > { %1483 = vmatpush.bf16.msrb.mxu3 %v1594_v16  ;;  %v259_v16 = vld [vmem:[%s1718_s13 + $0x20] sm:$0xff] }
  0x33   : > { %v289_v27 = vpack.c.bf16 %v260_v23, %v259_v16 }
  0x36   : > { %1484 = vmatpush.bf16.msrb.mxu3 %v1618_v25  ;;  %v284_v25 = vld [vmem:[%s1718_s13 + $0xe8] sm:$0xff] }
  0x37   : > { %v1765_v28 = vpack.c.bf16 %v284_v25, %v283_v24  ;;  %v276_v25 = vld [vmem:[%s1718_s13 + $0xa8] sm:$0xff] }
  0x3a   : > { %1485 = vmatpush.bf16.msrb.mxu3 %v1642_v34  ;;  %v1776_v34 = vpack.c.bf16 %v286_v32, %v285_v31 }
  0x3d   : > { %484 = vmatmul.bf16.gmra.mxu0 %v288_v7  ;;  %544 = vmatmul.bf16.gmra.mxu3 %v1757_v22 }
  0x3e   : > { %1486 = vmatpush.bf16.msrb.mxu3 %v1672_v45  ;;  %573 = vmatmul.bf16.gmra.mxu1 %v288_v7  ;;  %v272_v45 = vld [vmem:[%s1718_s13 + $0x88] sm:$0xff] }
  0x3f   : > { %662 = vmatmul.bf16.gmra.mxu2 %v288_v7 }
  0x42   : > { %1487 = vmatpush.bf16.msrb.mxu3 %v1098_v53 }
  0x46   : > { %1488 = vmatpush.bf16.msrb.mxu3 %v1086_v61  ;;  %v1819_v61 = vperm.slane %v335_v49, 2 }
  0x4a   : > { %1489 = vmatpush.bf16.msrb.mxu3 %v1074_v12 }
  0x4d   : > { %489 = vmatmul.bf16.gmra.mxu0 %v289_v27  ;;  %549 = vmatmul.bf16.gmra.mxu3 %v1765_v28 }
  0x4e   : > { %1490 = vmatpush.bf16.msra.mxu3 %v1572_v8  ;;  %578 = vmatmul.bf16.gmra.mxu1 %v289_v27  ;;  %v263_v8 = vld [vmem:[%s1718_s13 + $0x40] sm:$0xff] }
  0x4f   : > { %667 = vmatmul.bf16.gmra.mxu2 %v289_v27 }
  0x52   : > { %1491 = vmatpush.bf16.msra.mxu3 %v1596_v17  ;;  %v264_v17 = vld [vmem:[%s1718_s13 + $0x48] sm:$0xff] }
  0x56   : > { %1492 = vmatpush.bf16.msra.mxu3 %v1620_v26  ;;  %v291_v26 = vpack.c.bf16 %v264_v17, %v263_v8 }
  0x5a   : > { %1493 = vmatpush.bf16.msra.mxu3 %v1644_v35  ;;  %v265_v35 = vld [vmem:[%s1718_s13 + $0x50] sm:$0xff] }
  0x5b   : > { %v292_v37 = vpack.c.bf16 %v266_v36, %v265_v35 }
  0x5d   : > { %494 = vmatmul.bf16.gmra.mxu0 %v290_v33  ;;  %554 = vmatmul.bf16.gmra.mxu3 %v1776_v34 }
  0x5e   : > { %1494 = vmatpush.bf16.msra.mxu3 %v1674_v46  ;;  %583 = vmatmul.bf16.gmra.mxu1 %v290_v33  ;;  %v295_v46 = vpack.c.bf16 %v272_v45, %v271_v44 }
  0x5f   : > { %672 = vmatmul.bf16.gmra.mxu2 %v290_v33 }
  0x62   : > { %1495 = vmatpush.bf16.msra.mxu3 %v1697_v54 }
  0x66   : > { %1496 = vmatpush.bf16.msra.mxu3 %v1721_v62 }
  0x6a   : > { %1497 = vmatpush.bf16.msra.mxu3 %v1078_v13 }
  0x6d   : > { %499 = vmatmul.bf16.gmra.mxu0 %v291_v26  ;;  %628 = vmatmul.bf16.vlgmr.msrb.gmra.mxu3 %v1746_v15 }
  0x6e   : > { %588 = vmatmul.bf16.gmra.mxu1 %v291_v26 }
  0x6f   : > { %677 = vmatmul.bf16.gmra.mxu2 %v291_v26 }
  0x7d   : > { %504 = vmatmul.bf16.gmra.mxu0 %v292_v37  ;;  %633 = vmatmul.bf16.gmra.mxu3 %v1757_v22 }
  0x7e   : > { %593 = vmatmul.bf16.gmra.mxu1 %v292_v37 }
  0x7f   : > { %682 = vmatmul.bf16.gmra.mxu2 %v292_v37 }
  0x8d   : > { %509 = vmatmul.bf16.gmra.mxu0 %v293_v40  ;;  %638 = vmatmul.bf16.gmra.mxu3 %v1765_v28 }
  0x8e   : > { %598 = vmatmul.bf16.gmra.mxu1 %v293_v40 }
  0x8f   : > { %687 = vmatmul.bf16.gmra.mxu2 %v293_v40 }
  0x9d   : > { %514 = vmatmul.bf16.gmra.mxu0 %v294_v43  ;;  %643 = vmatmul.bf16.gmra.mxu3 %v1776_v34 }
  0x9e   : > { %603 = vmatmul.bf16.gmra.mxu1 %v294_v43 }
  0x9f   : > { %692 = vmatmul.bf16.gmra.mxu2 %v294_v43 }
  0xaa   : > { %v480_v47 = vpop.f32.mrf.mxu0 }
  0xab   : > { %v569_v48 = vpop.f32.mrf.mxu1  ;;  %v481_v55 = vadd.f32 %v480_v47, %v1800_v50  ;;  %v278_v47 = vld [vmem:[%s1718_s13 + $0xb8] sm:$0xff] }
  0xac   : > { %v570_v58 = vadd.f32 %v569_v48, %v1802_v51 }
  0xad   : > { %519 = vmatmul.bf16.gmra.mxu0 %v295_v46  ;;  %717 = vmatmul.bf16.vlgmr.msra.gmra.mxu3 %v1746_v15 }
  0xae   : > { %608 = vmatmul.bf16.gmra.mxu1 %v295_v46 }
  0xaf   : > { %697 = vmatmul.bf16.gmra.mxu2 %v295_v46 }
  0xb0   : > { %v540_v52 = vpop.f32.mrf.mxu3 }
  0xb1   : > { %v541_v2 = vadd.f32 %v540_v52, %v1800_v50 }
  0xb2   : > { %v658_v53 = vpop.f32.mrf.mxu2  ;;  %v482_v54 = vpop.f32.mrf.mxu0 }
  0xb3   : > { %v483_v56 = vadd.f32 %v482_v54, %v1800_v50  ;;  %v571_v57 = vpop.f32.mrf.mxu1  ;;  %v659_v6 = vadd.f32 %v658_v53, %v1819_v61 }
  0xb4   : > { %v572_v59 = vadd.f32 %v571_v57, %v1802_v51 }
  0xb5   : > { %v1192_v60 = vpack.c.bf16 %v483_v56, %v481_v55 }
  0xb6   : > { %v1272_v62 = vpack.c.bf16 %v572_v59, %v570_v58 }
  0xb7   : > { %1193 = vst [vmem:[%s1811_s8] sm:$0xff] %v1192_v60  }
  0xb8   : > { %1273 = vst [vmem:[%s1817_s17] sm:$0xff] %v1272_v62   ;;  %v542_v1 = vpop.f32.mrf.mxu3 }
  0xb9   : > { %v543_v3 = vadd.f32 %v542_v1, %v1800_v50 }
  0xba   : > { %v660_v4 = vpop.f32.mrf.mxu2  ;;  %v485_v10 = vpop.f32.mrf.mxu0 }
  0xbb   : > { %v661_v9 = vadd.f32 %v660_v4, %v1819_v61  ;;  %v1252_v11 = vpack.c.bf16 %v543_v3, %v541_v2  ;;  %v574_v12 = vpop.f32.mrf.mxu1  ;;  %v486_v19 = vadd.f32 %v485_v10, %v1800_v50 }
  0xbc   : > { %v575_v7 = vadd.f32 %v574_v12, %v1802_v51 }
  0xbd   : > { %v1352_v13 = vpack.c.bf16 %v661_v9, %v659_v6  ;;  %1440 = vst [vmem:[%s1811_s8 + $0x60] sm:$0xff] %v1252_v11   ;;  %524 = vmatmul.bf16.gmra.mxu0 %v296_v5  ;;  %722 = vmatmul.bf16.gmra.mxu3 %v1757_v22  ;;  %v275_v22 = vld [vmem:[%s1718_s13 + $0xa0] sm:$0xff] }
  0xbe   : > { %613 = vmatmul.bf16.gmra.mxu1 %v296_v5  ;;  %v297_v32 = vpack.c.bf16 %v276_v25, %v275_v22 }
  0xbf   : > { %1353 = vst [vmem:[%s1832_s14] sm:$0xff] %v1352_v13   ;;  %702 = vmatmul.bf16.gmra.mxu2 %v296_v5 }
  0xc0   : > { %v545_v14 = vpop.f32.mrf.mxu3 }
  0xc1   : > { %v546_v29 = vadd.f32 %v545_v14, %v1800_v50 }
  0xc2   : > { %v663_v15 = vpop.f32.mrf.mxu2  ;;  %v487_v18 = vpop.f32.mrf.mxu0 }
  0xc3   : > { %v488_v20 = vadd.f32 %v487_v18, %v1800_v50  ;;  %v576_v21 = vpop.f32.mrf.mxu1  ;;  %v664_v33 = vadd.f32 %v663_v15, %v1819_v61 }
  0xc4   : > { %v577_v16 = vadd.f32 %v576_v21, %v1802_v51 }
  0xc5   : > { %v1197_v23 = vpack.c.bf16 %v488_v20, %v486_v19 }
  0xc6   : > { %v1277_v24 = vpack.c.bf16 %v577_v16, %v575_v7 }
  0xc7   : > { %1429 = vst [vmem:[%s1811_s8 + $0x8] sm:$0xff] %v1197_v23  }
  0xc8   : > { %1444 = vst [vmem:[%s1817_s17 + $0x8] sm:$0xff] %v1277_v24   ;;  %v547_v27 = vpop.f32.mrf.mxu3 }
  0xc9   : > { %v548_v30 = vadd.f32 %v547_v27, %v1800_v50 }
  0xca   : > { %v665_v31 = vpop.f32.mrf.mxu2  ;;  %v490_v17 = vpop.f32.mrf.mxu0 }
  0xcb   : > { %v666_v8 = vadd.f32 %v665_v31, %v1819_v61  ;;  %v1257_v26 = vpack.c.bf16 %v548_v30, %v546_v29  ;;  %v579_v35 = vpop.f32.mrf.mxu1  ;;  %v491_v40 = vadd.f32 %v490_v17, %v1800_v50 }
  0xcc   : > { %v580_v43 = vadd.f32 %v579_v35, %v1802_v51 }
  0xcd   : > { %v1357_v36 = vpack.c.bf16 %v666_v8, %v664_v33  ;;  %1441 = vst [vmem:[%s1811_s8 + $0x68] sm:$0xff] %v1257_v26   ;;  %529 = vmatmul.bf16.gmra.mxu0 %v297_v32  ;;  %727 = vmatmul.bf16.gmra.mxu3 %v1765_v28  ;;  %v277_v28 = vld [vmem:[%s1718_s13 + $0xb0] sm:$0xff] }
  0xce   : > { %618 = vmatmul.bf16.gmra.mxu1 %v297_v32  ;;  %v298_v54 = vpack.c.bf16 %v278_v47, %v277_v28 }
  0xcf   : > { %1459 = vst [vmem:[%s1832_s14 + $0x8] sm:$0xff] %v1357_v36   ;;  %707 = vmatmul.bf16.gmra.mxu2 %v297_v32 }
  0xd0   : > { %v550_v37 = vpop.f32.mrf.mxu3 }
  0xd1   : > { %v551_v49 = vadd.f32 %v550_v37, %v1800_v50 }
  0xd2   : > { %v668_v38 = vpop.f32.mrf.mxu2  ;;  %v492_v39 = vpop.f32.mrf.mxu0 }
  0xd3   : > { %v493_v41 = vadd.f32 %v492_v39, %v1800_v50  ;;  %v581_v42 = vpop.f32.mrf.mxu1  ;;  %v669_v55 = vadd.f32 %v668_v38, %v1819_v61 }
  0xd4   : > { %v582_v44 = vadd.f32 %v581_v42, %v1802_v51 }
  0xd5   : > { %v1202_v45 = vpack.c.bf16 %v493_v41, %v491_v40 }
  0xd6   : > { %v1282_v46 = vpack.c.bf16 %v582_v44, %v580_v43 }
  0xd7   : > { %1430 = vst [vmem:[%s1811_s8 + $0x10] sm:$0xff] %v1202_v45  }
  0xd8   : > { %1445 = vst [vmem:[%s1817_s17 + $0x10] sm:$0xff] %v1282_v46   ;;  %v552_v48 = vpop.f32.mrf.mxu3 }
  0xd9   : > { %v553_v52 = vadd.f32 %v552_v48, %v1800_v50 }
  0xda   : > { %v670_v53 = vpop.f32.mrf.mxu2  ;;  %v495_v57 = vpop.f32.mrf.mxu0 }
  0xdb   : > { %v671_v56 = vadd.f32 %v670_v53, %v1819_v61  ;;  %v1262_v58 = vpack.c.bf16 %v553_v52, %v551_v49  ;;  %v584_v59 = vpop.f32.mrf.mxu1  ;;  %v496_v1 = vadd.f32 %v495_v57, %v1800_v50 }
  0xdc   : > { %v585_v4 = vadd.f32 %v584_v59, %v1802_v51 }
  0xdd   : > { %v1362_v60 = vpack.c.bf16 %v671_v56, %v669_v55  ;;  %1442 = vst [vmem:[%s1811_s8 + $0x70] sm:$0xff] %v1262_v58   ;;  %534 = vmatmul.bf16.gmra.mxu0 %v298_v54  ;;  %732 = vmatmul.bf16.gmra.mxu3 %v1776_v34 }
  0xde   : > { %623 = vmatmul.bf16.gmra.mxu1 %v298_v54 }
  0xdf   : > { %1460 = vst [vmem:[%s1832_s14 + $0x10] sm:$0xff] %v1362_v60   ;;  %712 = vmatmul.bf16.gmra.mxu2 %v298_v54 }
  0xe0   : > { %v555_v62 = vpop.f32.mrf.mxu3 }
  0xe1   : > { %v556_v10 = vadd.f32 %v555_v62, %v1800_v50 }
  0xe2   : > { %v673_v63 = vpop.f32.mrf.mxu2  ;;  %v497_v0 = vpop.f32.mrf.mxu0 }
  0xe3   : > { %v498_v2 = vadd.f32 %v497_v0, %v1800_v50  ;;  %v586_v3 = vpop.f32.mrf.mxu1  ;;  %v674_v13 = vadd.f32 %v673_v63, %v1819_v61 }
  0xe4   : > { %v587_v5 = vadd.f32 %v586_v3, %v1802_v51 }
  0xe5   : > { %v1207_v6 = vpack.c.bf16 %v498_v2, %v496_v1 }
  0xe6   : > { %v1287_v9 = vpack.c.bf16 %v587_v5, %v585_v4 }
  0xe7   : > { %1431 = vst [vmem:[%s1811_s8 + $0x18] sm:$0xff] %v1207_v6  }
  0xe8   : > { %1446 = vst [vmem:[%s1817_s17 + $0x18] sm:$0xff] %v1287_v9   ;;  %v557_v34 = vpop.f32.mrf.mxu3 }
  0xe9   : > { %v558_v11 = vadd.f32 %v557_v34, %v1800_v50 }
  0xea   : > { %v675_v12 = vpop.f32.mrf.mxu2  ;;  %v500_v15 = vpop.f32.mrf.mxu0 }
  0xeb   : > { %v676_v14 = vadd.f32 %v675_v12, %v1819_v61  ;;  %v1267_v18 = vpack.c.bf16 %v558_v11, %v556_v10  ;;  %v589_v19 = vpop.f32.mrf.mxu1  ;;  %v501_v23 = vadd.f32 %v500_v15, %v1800_v50 }
  0xec   : > { %v590_v25 = vadd.f32 %v589_v19, %v1802_v51 }
  0xed   : > { %v1367_v20 = vpack.c.bf16 %v676_v14, %v674_v13  ;;  %1443 = vst [vmem:[%s1811_s8 + $0x78] sm:$0xff] %v1267_v18  }
  0xef   : > { %1461 = vst [vmem:[%s1832_s14 + $0x18] sm:$0xff] %v1367_v20  }
  0xf0   : > { %v629_v21 = vpop.f32.mrf.mxu3 }
  0xf1   : > { %v630_v32 = vadd.f32 %v629_v21, %v1802_v51 }
  0xf2   : > { %v678_v7 = vpop.f32.mrf.mxu2  ;;  %v502_v16 = vpop.f32.mrf.mxu0 }
  0xf3   : > { %v503_v24 = vadd.f32 %v502_v16, %v1800_v50  ;;  %v591_v22 = vpop.f32.mrf.mxu1  ;;  %v679_v17 = vadd.f32 %v678_v7, %v1819_v61 }
  0xf4   : > { %v592_v27 = vadd.f32 %v591_v22, %v1802_v51 }
  0xf5   : > { %v1212_v29 = vpack.c.bf16 %v503_v24, %v501_v23 }
  0xf6   : > { %v1292_v30 = vpack.c.bf16 %v592_v27, %v590_v25 }
  0xf7   : > { %1432 = vst [vmem:[%s1811_s8 + $0x20] sm:$0xff] %v1212_v29  }
  0xf8   : > { %1447 = vst [vmem:[%s1817_s17 + $0x20] sm:$0xff] %v1292_v30   ;;  %v631_v31 = vpop.f32.mrf.mxu3 }
  0xf9   : > { %v632_v33 = vadd.f32 %v631_v31, %v1802_v51 }
  0xfa   : > { %v680_v8 = vpop.f32.mrf.mxu2  ;;  %v505_v35 = vpop.f32.mrf.mxu0 }
  0xfb   : > { %v681_v26 = vadd.f32 %v680_v8, %v1819_v61  ;;  %v1332_v36 = vpack.c.bf16 %v632_v33, %v630_v32  ;;  %v594_v37 = vpop.f32.mrf.mxu1  ;;  %v506_v42 = vadd.f32 %v505_v35, %v1800_v50 }
  0xfc   : > { %v595_v45 = vadd.f32 %v594_v37, %v1802_v51 }
  0xfd   : > { %v1372_v38 = vpack.c.bf16 %v681_v26, %v679_v17  ;;  %1455 = vst [vmem:[%s1817_s17 + $0x60] sm:$0xff] %v1332_v36  }
  0xff   : > { %1462 = vst [vmem:[%s1832_s14 + $0x20] sm:$0xff] %v1372_v38  }
 0x100   : > { %v634_v39 = vpop.f32.mrf.mxu3 }
 0x101   : > { %v635_v49 = vadd.f32 %v634_v39, %v1802_v51 }
 0x102   : > { %v683_v40 = vpop.f32.mrf.mxu2  ;;  %v507_v41 = vpop.f32.mrf.mxu0 }
 0x103   : > { %v508_v43 = vadd.f32 %v507_v41, %v1800_v50  ;;  %v596_v44 = vpop.f32.mrf.mxu1  ;;  %v684_v54 = vadd.f32 %v683_v40, %v1819_v61 }
 0x104   : > { %v597_v46 = vadd.f32 %v596_v44, %v1802_v51 }
 0x105   : > { %v1217_v28 = vpack.c.bf16 %v508_v43, %v506_v42 }
 0x106   : > { %v1297_v47 = vpack.c.bf16 %v597_v46, %v595_v45 }
 0x107   : > { %1433 = vst [vmem:[%s1811_s8 + $0x28] sm:$0xff] %v1217_v28  }
 0x108   : > { %1448 = vst [vmem:[%s1817_s17 + $0x28] sm:$0xff] %v1297_v47   ;;  %v636_v48 = vpop.f32.mrf.mxu3 }
 0x109   : > { %v637_v52 = vadd.f32 %v636_v48, %v1802_v51 }
 0x10a   : > { %v685_v53 = vpop.f32.mrf.mxu2  ;;  %v510_v56 = vpop.f32.mrf.mxu0 }
 0x10b   : > { %v686_v55 = vadd.f32 %v685_v53, %v1819_v61  ;;  %v1337_v57 = vpack.c.bf16 %v637_v52, %v635_v49  ;;  %v599_v58 = vpop.f32.mrf.mxu1  ;;  %v511_v0 = vadd.f32 %v510_v56, %v1800_v50 }
 0x10c   : > { %v600_v3 = vadd.f32 %v599_v58, %v1802_v51 }
 0x10d   : > { %v1377_v59 = vpack.c.bf16 %v686_v55, %v684_v54  ;;  %1456 = vst [vmem:[%s1817_s17 + $0x68] sm:$0xff] %v1337_v57  }
 0x10f   : > { %1463 = vst [vmem:[%s1832_s14 + $0x28] sm:$0xff] %v1377_v59  }
 0x110   : > { %v639_v60 = vpop.f32.mrf.mxu3 }
 0x111   : > { %v640_v34 = vadd.f32 %v639_v60, %v1802_v51 }
 0x112   : > { %v688_v62 = vpop.f32.mrf.mxu2  ;;  %v512_v63 = vpop.f32.mrf.mxu0 }
 0x113   : > { %v513_v1 = vadd.f32 %v512_v63, %v1800_v50  ;;  %v601_v2 = vpop.f32.mrf.mxu1  ;;  %v689_v12 = vadd.f32 %v688_v62, %v1819_v61 }
 0x114   : > { %v602_v4 = vadd.f32 %v601_v2, %v1802_v51 }
 0x115   : > { %v1222_v5 = vpack.c.bf16 %v513_v1, %v511_v0 }
 0x116   : > { %v1302_v6 = vpack.c.bf16 %v602_v4, %v600_v3 }
 0x117   : > { %1434 = vst [vmem:[%s1811_s8 + $0x30] sm:$0xff] %v1222_v5  }
 0x118   : > { %1449 = vst [vmem:[%s1817_s17 + $0x30] sm:$0xff] %v1302_v6   ;;  %v641_v9 = vpop.f32.mrf.mxu3 }
 0x119   : > { %v642_v10 = vadd.f32 %v641_v9, %v1802_v51 }
 0x11a   : > { %v690_v11 = vpop.f32.mrf.mxu2  ;;  %v515_v14 = vpop.f32.mrf.mxu0 }
 0x11b   : > { %v691_v13 = vadd.f32 %v690_v11, %v1819_v61  ;;  %v1342_v15 = vpack.c.bf16 %v642_v10, %v640_v34  ;;  %v604_v18 = vpop.f32.mrf.mxu1  ;;  %v516_v16 = vadd.f32 %v515_v14, %v1800_v50 }
 0x11c   : > { %v605_v22 = vadd.f32 %v604_v18, %v1802_v51 }
 0x11d   : > { %v1382_v19 = vpack.c.bf16 %v691_v13, %v689_v12  ;;  %1457 = vst [vmem:[%s1817_s17 + $0x70] sm:$0xff] %v1342_v15  }
 0x11f   : > { %1464 = vst [vmem:[%s1832_s14 + $0x30] sm:$0xff] %v1382_v19  }
 0x120   : > { %v644_v20 = vpop.f32.mrf.mxu3 }
 0x121   : > { %v645_v31 = vadd.f32 %v644_v20, %v1802_v51 }
 0x122   : > { %v693_v21 = vpop.f32.mrf.mxu2  ;;  %v517_v7 = vpop.f32.mrf.mxu0 }
 0x123   : > { %v518_v23 = vadd.f32 %v517_v7, %v1800_v50  ;;  %v606_v24 = vpop.f32.mrf.mxu1  ;;  %v694_v8 = vadd.f32 %v693_v21, %v1819_v61 }
 0x124   : > { %v607_v25 = vadd.f32 %v606_v24, %v1802_v51 }
 0x125   : > { %v1227_v27 = vpack.c.bf16 %v518_v23, %v516_v16 }
 0x126   : > { %v1307_v29 = vpack.c.bf16 %v607_v25, %v605_v22 }
 0x127   : > { %1435 = vst [vmem:[%s1811_s8 + $0x38] sm:$0xff] %v1227_v27  }
 0x128   : > { %1450 = vst [vmem:[%s1817_s17 + $0x38] sm:$0xff] %v1307_v29   ;;  %v646_v30 = vpop.f32.mrf.mxu3 }
 0x129   : > { %v647_v32 = vadd.f32 %v646_v30, %v1802_v51 }
 0x12a   : > { %v695_v33 = vpop.f32.mrf.mxu2  ;;  %v520_v26 = vpop.f32.mrf.mxu0 }
 0x12b   : > { %v696_v17 = vadd.f32 %v695_v33, %v1819_v61  ;;  %v1347_v35 = vpack.c.bf16 %v647_v32, %v645_v31  ;;  %v609_v36 = vpop.f32.mrf.mxu1  ;;  %v521_v41 = vadd.f32 %v520_v26, %v1800_v50 }
 0x12c   : > { %v610_v44 = vadd.f32 %v609_v36, %v1802_v51 }
 0x12d   : > { %v1387_v37 = vpack.c.bf16 %v696_v17, %v694_v8  ;;  %1458 = vst [vmem:[%s1817_s17 + $0x78] sm:$0xff] %v1347_v35  }
 0x12f   : > { %1465 = vst [vmem:[%s1832_s14 + $0x38] sm:$0xff] %v1387_v37  }
 0x130   : > { %v718_v38 = vpop.f32.mrf.mxu3 }
 0x131   : > { %v719_v48 = vadd.f32 %v718_v38, %v1819_v61 }
 0x132   : > { %v698_v39 = vpop.f32.mrf.mxu2  ;;  %v522_v40 = vpop.f32.mrf.mxu0 }
 0x133   : > { %v523_v42 = vadd.f32 %v522_v40, %v1800_v50  ;;  %v611_v43 = vpop.f32.mrf.mxu1  ;;  %v699_v53 = vadd.f32 %v698_v39, %v1819_v61 }
 0x134   : > { %v612_v45 = vadd.f32 %v611_v43, %v1802_v51 }
 0x135   : > { %v1232_v46 = vpack.c.bf16 %v523_v42, %v521_v41 }
 0x136   : > { %v1312_v28 = vpack.c.bf16 %v612_v45, %v610_v44 }
 0x137   : > { %1436 = vst [vmem:[%s1811_s8 + $0x40] sm:$0xff] %v1232_v46  }
 0x138   : > { %1451 = vst [vmem:[%s1817_s17 + $0x40] sm:$0xff] %v1312_v28   ;;  %v720_v47 = vpop.f32.mrf.mxu3 }
 0x139   : > { %v721_v52 = vadd.f32 %v720_v47, %v1819_v61 }
 0x13a   : > { %v700_v49 = vpop.f32.mrf.mxu2  ;;  %v525_v55 = vpop.f32.mrf.mxu0 }
 0x13b   : > { %v701_v54 = vadd.f32 %v700_v49, %v1819_v61  ;;  %v1412_v56 = vpack.c.bf16 %v721_v52, %v719_v48  ;;  %v614_v57 = vpop.f32.mrf.mxu1  ;;  %v526_v63 = vadd.f32 %v525_v55, %v1800_v50 }
 0x13c   : > { %v615_v2 = vadd.f32 %v614_v57, %v1802_v51 }
 0x13d   : > { %v1392_v58 = vpack.c.bf16 %v701_v54, %v699_v53  ;;  %1470 = vst [vmem:[%s1832_s14 + $0x60] sm:$0xff] %v1412_v56  }
 0x13f   : > { %1466 = vst [vmem:[%s1832_s14 + $0x40] sm:$0xff] %v1392_v58  }
 0x140   : > { %v723_v59 = vpop.f32.mrf.mxu3 }
 0x141   : > { %v724_v9 = vadd.f32 %v723_v59, %v1819_v61 }
 0x142   : > { %v703_v60 = vpop.f32.mrf.mxu2  ;;  %v527_v62 = vpop.f32.mrf.mxu0 }
 0x143   : > { %v528_v0 = vadd.f32 %v527_v62, %v1800_v50  ;;  %v616_v1 = vpop.f32.mrf.mxu1  ;;  %v704_v11 = vadd.f32 %v703_v60, %v1819_v61 }
 0x144   : > { %v617_v3 = vadd.f32 %v616_v1, %v1802_v51 }
 0x145   : > { %v1237_v4 = vpack.c.bf16 %v528_v0, %v526_v63 }
 0x146   : > { %v1317_v5 = vpack.c.bf16 %v617_v3, %v615_v2 }
 0x147   : > { %1437 = vst [vmem:[%s1811_s8 + $0x48] sm:$0xff] %v1237_v4  }
 0x148   : > { %1452 = vst [vmem:[%s1817_s17 + $0x48] sm:$0xff] %v1317_v5   ;;  %v725_v6 = vpop.f32.mrf.mxu3 }
 0x149   : > { %v726_v10 = vadd.f32 %v725_v6, %v1819_v61 }
 0x14a   : > { %v705_v34 = vpop.f32.mrf.mxu2  ;;  %v530_v13 = vpop.f32.mrf.mxu0 }
 0x14b   : > { %v706_v12 = vadd.f32 %v705_v34, %v1819_v61  ;;  %v1417_v14 = vpack.c.bf16 %v726_v10, %v724_v9  ;;  %v619_v15 = vpop.f32.mrf.mxu1  ;;  %v531_v7 = vadd.f32 %v530_v13, %v1800_v50 }
 0x14c   : > { %v620_v24 = vadd.f32 %v619_v15, %v1802_v51 }
 0x14d   : > { %v1397_v18 = vpack.c.bf16 %v706_v12, %v704_v11  ;;  %1471 = vst [vmem:[%s1832_s14 + $0x68] sm:$0xff] %v1417_v14  }
 0x14f   : > { %1467 = vst [vmem:[%s1832_s14 + $0x48] sm:$0xff] %v1397_v18  }
 0x150   : > { %v728_v19 = vpop.f32.mrf.mxu3 }
 0x151   : > { %v729_v30 = vadd.f32 %v728_v19, %v1819_v61 }
 0x152   : > { %v708_v20 = vpop.f32.mrf.mxu2  ;;  %v532_v21 = vpop.f32.mrf.mxu0 }
 0x153   : > { %v533_v16 = vadd.f32 %v532_v21, %v1800_v50  ;;  %v621_v23 = vpop.f32.mrf.mxu1  ;;  %v709_v33 = vadd.f32 %v708_v20, %v1819_v61 }
 0x154   : > { %v622_v22 = vadd.f32 %v621_v23, %v1802_v51 }
 0x155   : > { %v1242_v25 = vpack.c.bf16 %v533_v16, %v531_v7 }
 0x156   : > { %v1322_v27 = vpack.c.bf16 %v622_v22, %v620_v24 }
 0x157   : > { %1438 = vst [vmem:[%s1811_s8 + $0x50] sm:$0xff] %v1242_v25  }
 0x158   : > { %1453 = vst [vmem:[%s1817_s17 + $0x50] sm:$0xff] %v1322_v27   ;;  %v730_v29 = vpop.f32.mrf.mxu3 }
 0x159   : > { %v731_v32 = vadd.f32 %v730_v29, %v1819_v61 }
 0x15a   : > { %v710_v31 = vpop.f32.mrf.mxu2  ;;  %v535_v17 = vpop.f32.mrf.mxu0 }
 0x15b   : > { %v711_v8 = vadd.f32 %v710_v31, %v1819_v61  ;;  %v1422_v26 = vpack.c.bf16 %v731_v32, %v729_v30  ;;  %v624_v35 = vpop.f32.mrf.mxu1  ;;  %v536_v40 = vadd.f32 %v535_v17, %v1800_v50 }
 0x15c   : > { %v625_v43 = vadd.f32 %v624_v35, %v1802_v51 }
 0x15d   : > { %v1402_v36 = vpack.c.bf16 %v711_v8, %v709_v33  ;;  %1472 = vst [vmem:[%s1832_s14 + $0x70] sm:$0xff] %v1422_v26  }
 0x15f   : > { %1468 = vst [vmem:[%s1832_s14 + $0x50] sm:$0xff] %v1402_v36  }
 0x160   : > { %v733_v37 = vpop.f32.mrf.mxu3 }
 0x161   : > { %v734_v47 = vadd.f32 %v733_v37, %v1819_v61 }
 0x162   : > { %v713_v38 = vpop.f32.mrf.mxu2  ;;  %v537_v39 = vpop.f32.mrf.mxu0 }
 0x163   : > { %v538_v41 = vadd.f32 %v537_v39, %v1800_v50  ;;  %v626_v42 = vpop.f32.mrf.mxu1  ;;  %v714_v52 = vadd.f32 %v713_v38, %v1819_v61 }
 0x164   : > { %v627_v44 = vadd.f32 %v626_v42, %v1802_v51 }
 0x165   : > { %v1247_v45 = vpack.c.bf16 %v538_v41, %v536_v40 }
 0x166   : > { %v1327_v46 = vpack.c.bf16 %v627_v44, %v625_v43 }
 0x167   : > { %1439 = vst [vmem:[%s1811_s8 + $0x58] sm:$0xff] %v1247_v45  }
 0x168   : > { %1454 = vst [vmem:[%s1817_s17 + $0x58] sm:$0xff] %v1327_v46   ;;  %v735_v28 = vpop.f32.mrf.mxu3 }
 0x169   : > { %v736_v49 = vadd.f32 %v735_v28, %v1819_v61 }
 0x16a   : > { %v715_v48 = vpop.f32.mrf.mxu2 }
 0x16b   : > { %v716_v50 = vadd.f32 %v715_v48, %v1819_v61  ;;  %v1427_v53 = vpack.c.bf16 %v736_v49, %v734_v47 }
 0x16d   : > { %v1407_v54 = vpack.c.bf16 %v716_v50, %v714_v52  ;;  %1473 = vst [vmem:[%s1832_s14 + $0x78] sm:$0xff] %v1427_v53  }
 0x16f   : > { %1469 = vst [vmem:[%s1832_s14 + $0x58] sm:$0xff] %v1407_v54  }
 0x170 PF: > { %s16_s18 = sadd.s32 1, %s1512_s18  }
 0x171   : > { %p13_p4 = scmp.ge.s32.totalorder %s16_s18, 4  }
 0x173   :  { %15 = sbr.rel (!%p13_p4) target bundleno = 1 (0x1), region = 86 }

// kernel: _lambda_.4
= control target key start
LH: loop header
LB: loop body
LE: loop exit
PB: predicated region body
PF: predicated region fallthrough
CT: control target
= control target key end

     0   :  { %s3452_s12 = smov 0   ;;  %s4478_s0 = inlined_call_operand.vmem [shape: bf16[16,128,32], index: 0, kind: input, shape index: {}]   ;;  %s4479_s1 = inlined_call_operand.vmem [shape: bf16[16,128,32], index: 1, kind: input, shape index: {}]   ;;  %s4480_s2 = inlined_call_operand.vmem [shape: bf16[16,128,32], index: 2, kind: input, shape index: {}]   ;;  %s4481_s3 = inlined_call_operand.vmem [shape: bf16[16,128,32], index: 3, kind: output, shape index: {}]  }
   0x1 LB: > { %s2625_s13 = sadd.s32 4294967295, %s3430_s12   ;;  %p2629_p0 = scmp.ge.s32.totalorder %s3430_s12, 1  ;;  %s3430_s12 = sphi %s3452_s12, %s13_s12  }
   0x2   : > { %p163_p1 = scmp.lt.s32.totalorder %s3430_s12, 5 }
   0x4   : > { %p164_p2 = pnand %p2629_p0, %p163_p1 }
   0x6   : > { %167 = sbr.rel (%p164_p2) target bundleno = 824 (0x338), region = 32 }
   0xb   : > { %s2630_s14 = sshll.u32 %s2625_s13, 2  ;;  %vm501_vm0 = vcmask 261120   ;;  %vm2478_vm1 = vcmask 257024  }
   0xc   : > { %p202_p3 = scmp.lt.s32.totalorder %s2630_s14, 15 }
   0xe   : > { %s4615_s14 = smov (!%p202_p3, %s2630_s14), 15 }
   0xf   : > { %s3460_s15 = sshll.u32 %s4615_s14, 6 }
  0x10   : > { %s3466_s18 = scalar_lea.vmem %s4479_s1, %s3460_s15  ;;  %s3536_s21 = scalar_lea.vmem %s4478_s0, %s3460_s15 }
  0x11   : > { %v3103_v0 = vld [vmem:[%s3466_s18 + $0x38] sm:$0xff]  ;;  %v3102_v8 = vld [vmem:[%s3466_s18 + $0x30] sm:$0xff]  ;;  %v3101_v16 = vld [vmem:[%s3466_s18 + $0x28] sm:$0xff]  ;;  %s3918_s24 = scalar_lea.vmem %s4480_s2, %s3460_s15  ;;  %s4335_s27 = scalar_lea.vmem %s4481_s3, %s3460_s15 }
  0x12   : > { %v3111_v1 = vld [vmem:[%s3466_s18 + $0x78] sm:$0xff]  ;;  %v548_v4 = vsel %vm501_vm0, %v3103_v0, 0  ;;  %v3110_v9 = vld [vmem:[%s3466_s18 + $0x70] sm:$0xff]  ;;  %v545_v12 = vsel %vm501_vm0, %v3102_v8, 0  ;;  %v3109_v17 = vld [vmem:[%s3466_s18 + $0x68] sm:$0xff]  ;;  %v542_v20 = vsel %vm501_vm0, %v3101_v16, 0 }
  0x13   : > { %v3119_v2 = vld [vmem:[%s3466_s18 + $0xb8] sm:$0xff]  ;;  %v725_v5 = vsel %vm501_vm0, %v3111_v1, 0  ;;  %550 = vmatpush.bf16.xpose.msra.mxu0 %v548_v4  ;;  %v3118_v10 = vld [vmem:[%s3466_s18 + $0xb0] sm:$0xff]  ;;  %v722_v13 = vsel %vm501_vm0, %v3110_v9, 0  ;;  %v3117_v18 = vld [vmem:[%s3466_s18 + $0xa8] sm:$0xff]  ;;  %v719_v21 = vsel %vm501_vm0, %v3109_v17, 0 }
  0x14   : > { %v3127_v3 = vld [vmem:[%s3466_s18 + $0xf8] sm:$0xff]  ;;  %v902_v6 = vsel %vm501_vm0, %v3119_v2, 0  ;;  %727 = vmatpush.bf16.xpose.msra.mxu1 %v725_v5  ;;  %v3126_v11 = vld [vmem:[%s3466_s18 + $0xf0] sm:$0xff]  ;;  %v899_v14 = vsel %vm501_vm0, %v3118_v10, 0  ;;  %v3125_v19 = vld [vmem:[%s3466_s18 + $0xe8] sm:$0xff]  ;;  %v896_v22 = vsel %vm501_vm0, %v3117_v18, 0 }
  0x15   : > { %v1079_v7 = vsel %vm501_vm0, %v3127_v3, 0  ;;  %904 = vmatpush.bf16.xpose.msra.mxu2 %v902_v6  ;;  %v1076_v15 = vsel %vm501_vm0, %v3126_v11, 0  ;;  %v1073_v23 = vsel %vm501_vm0, %v3125_v19, 0  ;;  %v3100_v24 = vld [vmem:[%s3466_s18 + $0x20] sm:$0xff]  ;;  %v3099_v32 = vld [vmem:[%s3466_s18 + $0x18] sm:$0xff]  ;;  %v3098_v40 = vld [vmem:[%s3466_s18 + $0x10] sm:$0xff] }
  0x16   : > { %1081 = vmatpush.bf16.xpose.msra.mxu3 %v1079_v7  ;;  %v3108_v25 = vld [vmem:[%s3466_s18 + $0x60] sm:$0xff]  ;;  %v539_v28 = vsel %vm501_vm0, %v3100_v24, 0  ;;  %v3107_v33 = vld [vmem:[%s3466_s18 + $0x58] sm:$0xff]  ;;  %v536_v36 = vsel %vm501_vm0, %v3099_v32, 0  ;;  %v3106_v41 = vld [vmem:[%s3466_s18 + $0x50] sm:$0xff]  ;;  %v533_v44 = vsel %vm501_vm0, %v3098_v40, 0 }
  0x17   : > { %v3116_v26 = vld [vmem:[%s3466_s18 + $0xa0] sm:$0xff]  ;;  %v716_v29 = vsel %vm501_vm0, %v3108_v25, 0  ;;  %v3115_v34 = vld [vmem:[%s3466_s18 + $0x98] sm:$0xff]  ;;  %v713_v37 = vsel %vm501_vm0, %v3107_v33, 0  ;;  %v3114_v42 = vld [vmem:[%s3466_s18 + $0x90] sm:$0xff]  ;;  %v710_v45 = vsel %vm501_vm0, %v3106_v41, 0 }
  0x18   : > { %v3124_v27 = vld [vmem:[%s3466_s18 + $0xe0] sm:$0xff]  ;;  %v893_v30 = vsel %vm501_vm0, %v3116_v26, 0  ;;  %v3123_v35 = vld [vmem:[%s3466_s18 + $0xd8] sm:$0xff]  ;;  %v890_v38 = vsel %vm501_vm0, %v3115_v34, 0  ;;  %v3122_v43 = vld [vmem:[%s3466_s18 + $0xd0] sm:$0xff]  ;;  %v887_v46 = vsel %vm501_vm0, %v3114_v42, 0 }
  0x19   : > { %v1070_v31 = vsel %vm501_vm0, %v3124_v27, 0  ;;  %v1067_v39 = vsel %vm501_vm0, %v3123_v35, 0  ;;  %v1064_v47 = vsel %vm501_vm0, %v3122_v43, 0  ;;  %v3097_v48 = vld [vmem:[%s3466_s18 + $0x8] sm:$0xff]  ;;  %v3096_v56 = vld [vmem:[%s3466_s18] sm:$0xff]  ;;  %v3066_v8 = vld [vmem:[%s3536_s21 + $0x10] sm:$0xff] }
  0x1a   : > { %v3105_v49 = vld [vmem:[%s3466_s18 + $0x48] sm:$0xff]  ;;  %v530_v52 = vsel %vm501_vm0, %v3097_v48, 0  ;;  %v3104_v57 = vld [vmem:[%s3466_s18 + $0x40] sm:$0xff]  ;;  %v527_v60 = vsel %vm501_vm0, %v3096_v56, 0  ;;  %v3074_v9 = vld [vmem:[%s3536_s21 + $0x50] sm:$0xff] }
  0x1b   : > { %551 = vmatpush.bf16.xpose.msra.mxu0 %v545_v12  ;;  %v3113_v50 = vld [vmem:[%s3466_s18 + $0x88] sm:$0xff]  ;;  %v707_v53 = vsel %vm501_vm0, %v3105_v49, 0  ;;  %v3112_v58 = vld [vmem:[%s3466_s18 + $0x80] sm:$0xff]  ;;  %v704_v61 = vsel %vm501_vm0, %v3104_v57, 0  ;;  %v3082_v10 = vld [vmem:[%s3536_s21 + $0x90] sm:$0xff] }
  0x1c   : > { %728 = vmatpush.bf16.xpose.msra.mxu1 %v722_v13  ;;  %v3121_v51 = vld [vmem:[%s3466_s18 + $0xc8] sm:$0xff]  ;;  %v884_v54 = vsel %vm501_vm0, %v3113_v50, 0  ;;  %v3120_v59 = vld [vmem:[%s3466_s18 + $0xc0] sm:$0xff]  ;;  %v881_v62 = vsel %vm501_vm0, %v3112_v58, 0  ;;  %v3090_v11 = vld [vmem:[%s3536_s21 + $0xd0] sm:$0xff] }
  0x1d   : > { %905 = vmatpush.bf16.xpose.msra.mxu2 %v899_v14  ;;  %v1061_v55 = vsel %vm501_vm0, %v3121_v51, 0  ;;  %v1058_v63 = vsel %vm501_vm0, %v3120_v59, 0  ;;  %v3064_v0 = vld [vmem:[%s3536_s21] sm:$0xff]  ;;  %v3065_v4 = vld [vmem:[%s3536_s21 + $0x8] sm:$0xff]  ;;  %v3067_v12 = vld [vmem:[%s3536_s21 + $0x18] sm:$0xff] }
  0x1e   : > { %1082 = vmatpush.bf16.xpose.msra.mxu3 %v1076_v15  ;;  %v3072_v1 = vld [vmem:[%s3536_s21 + $0x40] sm:$0xff]  ;;  %v3073_v5 = vld [vmem:[%s3536_s21 + $0x48] sm:$0xff]  ;;  %v3075_v13 = vld [vmem:[%s3536_s21 + $0x58] sm:$0xff] }
  0x1f   : > { %v3080_v2 = vld [vmem:[%s3536_s21 + $0x80] sm:$0xff]  ;;  %v3081_v6 = vld [vmem:[%s3536_s21 + $0x88] sm:$0xff]  ;;  %v3083_v14 = vld [vmem:[%s3536_s21 + $0x98] sm:$0xff] }
  0x20   : > { %v3088_v3 = vld [vmem:[%s3536_s21 + $0xc0] sm:$0xff]  ;;  %v3089_v7 = vld [vmem:[%s3536_s21 + $0xc8] sm:$0xff]  ;;  %v3091_v15 = vld [vmem:[%s3536_s21 + $0xd8] sm:$0xff] }
  0x21   : > { %v3068_v16 = vld [vmem:[%s3536_s21 + $0x20] sm:$0xff]  ;;  %v3070_v24 = vld [vmem:[%s3536_s21 + $0x30] sm:$0xff] }
  0x22   : > { %v3076_v17 = vld [vmem:[%s3536_s21 + $0x60] sm:$0xff]  ;;  %v3086_v25 = vld [vmem:[%s3536_s21 + $0xb0] sm:$0xff] }
  0x23   : > { %552 = vmatpush.bf16.xpose.msra.mxu0 %v542_v20  ;;  %v3084_v18 = vld [vmem:[%s3536_s21 + $0xa0] sm:$0xff]  ;;  %v3069_v20 = vld [vmem:[%s3536_s21 + $0x28] sm:$0xff]  ;;  %v3094_v26 = vld [vmem:[%s3536_s21 + $0xf0] sm:$0xff] }
  0x24   : > { %729 = vmatpush.bf16.xpose.msra.mxu1 %v719_v21  ;;  %v3092_v19 = vld [vmem:[%s3536_s21 + $0xe0] sm:$0xff]  ;;  %v3077_v21 = vld [vmem:[%s3536_s21 + $0x68] sm:$0xff]  ;;  %v3078_v27 = vld [vmem:[%s3536_s21 + $0x70] sm:$0xff] }
  0x25   : > { %906 = vmatpush.bf16.xpose.msra.mxu2 %v896_v22  ;;  %v3085_v22 = vld [vmem:[%s3536_s21 + $0xa8] sm:$0xff] }
  0x26   : > { %1083 = vmatpush.bf16.xpose.msra.mxu3 %v1073_v23  ;;  %v3093_v23 = vld [vmem:[%s3536_s21 + $0xe8] sm:$0xff] }
  0x2b   : > { %553 = vmatpush.bf16.xpose.msra.mxu0 %v539_v28  ;;  %v3071_v28 = vld [vmem:[%s3536_s21 + $0x38] sm:$0xff] }
  0x2c   : > { %730 = vmatpush.bf16.xpose.msra.mxu1 %v716_v29  ;;  %v3087_v29 = vld [vmem:[%s3536_s21 + $0xb8] sm:$0xff] }
  0x2d   : > { %907 = vmatpush.bf16.xpose.msra.mxu2 %v893_v30  ;;  %v3095_v30 = vld [vmem:[%s3536_s21 + $0xf8] sm:$0xff] }
  0x2e   : > { %1084 = vmatpush.bf16.xpose.msra.mxu3 %v1070_v31  ;;  %v3079_v31 = vld [vmem:[%s3536_s21 + $0x78] sm:$0xff] }
  0x33   : > { %554 = vmatpush.bf16.xpose.msra.mxu0 %v536_v36 }
  0x34   : > { %731 = vmatpush.bf16.xpose.msra.mxu1 %v713_v37 }
  0x35   : > { %908 = vmatpush.bf16.xpose.msra.mxu2 %v890_v38 }
  0x36   : > { %1085 = vmatpush.bf16.xpose.msra.mxu3 %v1067_v39 }
  0x3b   : > { %555 = vmatpush.bf16.xpose.msra.mxu0 %v533_v44 }
  0x3c   : > { %732 = vmatpush.bf16.xpose.msra.mxu1 %v710_v45 }
  0x3d   : > { %909 = vmatpush.bf16.xpose.msra.mxu2 %v887_v46 }
  0x3e   : > { %1086 = vmatpush.bf16.xpose.msra.mxu3 %v1064_v47 }
  0x43   : > { %556 = vmatpush.bf16.xpose.msra.mxu0 %v530_v52 }
  0x44   : > { %733 = vmatpush.bf16.xpose.msra.mxu1 %v707_v53 }
  0x45   : > { %910 = vmatpush.bf16.xpose.msra.mxu2 %v884_v54 }
  0x46   : > { %1087 = vmatpush.bf16.xpose.msra.mxu3 %v1061_v55 }
  0x4b   : > { %557 = vmatpush.bf16.xpose.msra.mxu0 %v527_v60 }
  0x4c   : > { %734 = vmatpush.bf16.xpose.msra.mxu1 %v704_v61 }
  0x4d   : > { %911 = vmatpush.bf16.xpose.msra.mxu2 %v881_v62 }
  0x4e   : > { %1088 = vmatpush.bf16.xpose.msra.mxu3 %v1058_v63 }
  0x52   : > { %2706 = vmatmul.msk.bf16.vlgmr.msra.gmra.mxu0 %vm501_vm0, %v3064_v0 }
  0x53   : > { %2778 = vmatmul.msk.bf16.vlgmr.msra.gmra.mxu1 %vm501_vm0, %v3072_v1 }
  0x54   : > { %2850 = vmatmul.msk.bf16.vlgmr.msra.gmra.mxu2 %vm501_vm0, %v3080_v2 }
  0x55   : > { %2922 = vmatmul.msk.bf16.vlgmr.msra.gmra.mxu3 %vm501_vm0, %v3088_v3 }
  0x62   : > { %2707 = vmatmul.msk.bf16.gmra.mxu0 %vm501_vm0, %v3065_v4 }
  0x63   : > { %2779 = vmatmul.msk.bf16.gmra.mxu1 %vm501_vm0, %v3073_v5 }
  0x64   : > { %2851 = vmatmul.msk.bf16.gmra.mxu2 %vm501_vm0, %v3081_v6 }
  0x65   : > { %2923 = vmatmul.msk.bf16.gmra.mxu3 %vm501_vm0, %v3089_v7 }
  0x72   : > { %2708 = vmatmul.msk.bf16.gmra.mxu0 %vm501_vm0, %v3066_v8 }
  0x73   : > { %2780 = vmatmul.msk.bf16.gmra.mxu1 %vm501_vm0, %v3074_v9 }
  0x74   : > { %2852 = vmatmul.msk.bf16.gmra.mxu2 %vm501_vm0, %v3082_v10 }
  0x75   : > { %2924 = vmatmul.msk.bf16.gmra.mxu3 %vm501_vm0, %v3090_v11 }
  0x82   : > { %2709 = vmatmul.msk.bf16.gmra.mxu0 %vm501_vm0, %v3067_v12 }
  0x83   : > { %2781 = vmatmul.msk.bf16.gmra.mxu1 %vm501_vm0, %v3075_v13 }
  0x84   : > { %2853 = vmatmul.msk.bf16.gmra.mxu2 %vm501_vm0, %v3083_v14 }
  0x85   : > { %2925 = vmatmul.msk.bf16.gmra.mxu3 %vm501_vm0, %v3091_v15 }
  0x92   : > { %2710 = vmatmul.msk.bf16.gmra.mxu0 %vm501_vm0, %v3068_v16 }
  0x93   : > { %2782 = vmatmul.msk.bf16.gmra.mxu1 %vm501_vm0, %v3076_v17 }
  0x94   : > { %2854 = vmatmul.msk.bf16.gmra.mxu2 %vm501_vm0, %v3084_v18 }
  0x95   : > { %2926 = vmatmul.msk.bf16.gmra.mxu3 %vm501_vm0, %v3092_v19 }
  0xa2   : > { %2711 = vmatmul.msk.bf16.gmra.mxu0 %vm501_vm0, %v3069_v20 }
  0xa3   : > { %2783 = vmatmul.msk.bf16.gmra.mxu1 %vm501_vm0, %v3077_v21 }
  0xa4   : > { %2855 = vmatmul.msk.bf16.gmra.mxu2 %vm501_vm0, %v3085_v22 }
  0xa5   : > { %2927 = vmatmul.msk.bf16.gmra.mxu3 %vm501_vm0, %v3093_v23 }
  0xb2   : > { %2712 = vmatmul.msk.bf16.gmra.mxu0 %vm501_vm0, %v3070_v24 }
  0xb3   : > { %2784 = vmatmul.msk.bf16.gmra.mxu1 %vm501_vm0, %v3078_v27 }
  0xb4   : > { %2856 = vmatmul.msk.bf16.gmra.mxu2 %vm501_vm0, %v3086_v25 }
  0xb5   : > { %2928 = vmatmul.msk.bf16.gmra.mxu3 %vm501_vm0, %v3094_v26 }
  0xc2   : > { %2713 = vmatmul.msk.bf16.gmra.mxu0 %vm501_vm0, %v3071_v28 }
  0xc3   : > { %2785 = vmatmul.msk.bf16.gmra.mxu1 %vm501_vm0, %v3079_v31 }
  0xc4   : > { %2857 = vmatmul.msk.bf16.gmra.mxu2 %vm501_vm0, %v3087_v29 }
  0xc5   : > { %2929 = vmatmul.msk.bf16.gmra.mxu3 %vm501_vm0, %v3095_v30 }
  0xcf   : > { %v559_v32 = vpop.f32.mrf.mxu0 }
  0xd0   : > { %v3602_v33 = vmul.f32 0.17677669, %v559_v32  ;;  %v736_v34 = vpop.f32.mrf.mxu1 }
  0xd1   : > { %v3609_v40 = vmul.f32 0.17677669, %v736_v34 }
  0xd2   : > { %1194 = vmax.xlane.f32.xlu0 %v3602_v33 }
  0xd7   : > { %v913_v35 = vpop.f32.mrf.mxu2  ;;  %v561_v39 = vpop.f32.mrf.mxu0 }
  0xd8   : > { %v1090_v36 = vpop.f32.mrf.mxu3  ;;  %v3605_v37 = vmul.f32 0.17677669, %v913_v35  ;;  %v738_v41 = vpop.f32.mrf.mxu1  ;;  %v3618_v47 = vmul.f32 0.17677669, %v561_v39 }
  0xd9   : > { %v3607_v38 = vmul.f32 0.17677669, %v1090_v36  ;;  %v3616_v45 = vmul.f32 0.17677669, %v738_v41 }
  0xda   : > { %1258 = vmax.xlane.f32.xlu2 %v3605_v37  ;;  %1226 = vmax.xlane.f32.xlu0 %v3609_v40 }
  0xdb   : > { %1290 = vmax.xlane.f32.xlu1 %v3607_v38 }
  0xdf   : > { %v915_v42 = vpop.f32.mrf.mxu2  ;;  %v564_v46 = vpop.f32.mrf.mxu0 }
  0xe0   : > { %v1092_v43 = vpop.f32.mrf.mxu3  ;;  %v3623_v48 = vmul.f32 0.17677669, %v564_v46  ;;  %v741_v52 = vpop.f32.mrf.mxu1  ;;  %v3627_v53 = vmul.f32 0.17677669, %v915_v42 }
  0xe1   : > { %v3614_v44 = vmul.f32 0.17677669, %v1092_v43  ;;  %v3634_v56 = vmul.f32 0.17677669, %v741_v52 }
  0xe2   : > { %1196 = vmax.xlane.f32.xlu0 %v3618_v47 }
  0xe3   : > { %1292 = vmax.xlane.f32.xlu2 %v3614_v44  ;;  %1228 = vmax.xlane.f32.xlu1 %v3616_v45 }
  0xe7   : > { %v918_v49 = vpop.f32.mrf.mxu2  ;;  %v566_v54 = vpop.f32.mrf.mxu0 }
  0xe8   : > { %v1095_v50 = vpop.f32.mrf.mxu3  ;;  %v3625_v51 = vmul.f32 0.17677669, %v918_v49  ;;  %v743_v60 = vpop.f32.mrf.mxu1  ;;  %v3643_v63 = vmul.f32 0.17677669, %v566_v54 }
  0xe9   : > { %v3632_v55 = vmul.f32 0.17677669, %v1095_v50  ;;  %v3654_v6 = vmul.f32 0.17677669, %v743_v60 }
  0xea   : > { %1260 = vmax.xlane.f32.xlu0 %v3627_v53 }
  0xeb   : > { %1262 = vmax.xlane.f32.xlu2 %v3625_v51  ;;  %1198 = vmax.xlane.f32.xlu1 %v3623_v48 }
  0xef   : > { %v920_v58 = vpop.f32.mrf.mxu2  ;;  %v569_v61 = vpop.f32.mrf.mxu0 }
  0xf0   : > { %v1097_v57 = vpop.f32.mrf.mxu3  ;;  %v3641_v62 = vmul.f32 0.17677669, %v569_v61  ;;  %v3645_v1 = vmul.f32 0.17677669, %v920_v58  ;;  %v746_v2 = vpop.f32.mrf.mxu1 }
  0xf1   : > { %v3636_v59 = vmul.f32 0.17677669, %v1097_v57  ;;  %v3652_v4 = vmul.f32 0.17677669, %v746_v2 }
  0xf2   : > { %1230 = vmax.xlane.f32.xlu0 %v3634_v56 }
  0xf3   : > { %1296 = vmax.xlane.f32.xlu2 %v3636_v59  ;;  %1294 = vmax.xlane.f32.xlu1 %v3632_v55 }
  0xf7   : > { %v923_v0 = vpop.f32.mrf.mxu2  ;;  %v571_v7 = vpop.f32.mrf.mxu0 }
  0xf8   : > { %v3650_v3 = vmul.f32 0.17677669, %v923_v0  ;;  %v1100_v5 = vpop.f32.mrf.mxu3  ;;  %v748_v10 = vpop.f32.mrf.mxu1  ;;  %v3661_v11 = vmul.f32 0.17677669, %v571_v7 }
  0xf9   : > { %v3659_v9 = vmul.f32 0.17677669, %v1100_v5  ;;  %v3670_v18 = vmul.f32 0.17677669, %v748_v10 }
  0xfa   : > { %1264 = vmax.xlane.f32.xlu0 %v3645_v1 }
  0xfb   : > { %1200 = vmax.xlane.f32.xlu1 %v3643_v63  ;;  %1202 = vmax.xlane.f32.xlu2 %v3641_v62 }
  0xff   : > { %v925_v8 = vpop.f32.mrf.mxu2  ;;  %v574_v14 = vpop.f32.mrf.mxu0 }
 0x100   : > { %v3663_v12 = vmul.f32 0.17677669, %v925_v8  ;;  %v1102_v13 = vpop.f32.mrf.mxu3  ;;  %v3668_v16 = vmul.f32 0.17677669, %v574_v14  ;;  %v751_v17 = vpop.f32.mrf.mxu1 }
 0x101   : > { %v3672_v19 = vmul.f32 0.17677669, %v1102_v13  ;;  %v3677_v22 = vmul.f32 0.17677669, %v751_v17 }
 0x102   : > { %1234 = vmax.xlane.f32.xlu0 %v3652_v4 }
 0x103   : > { %1232 = vmax.xlane.f32.xlu1 %v3654_v6  ;;  %1266 = vmax.xlane.f32.xlu2 %v3650_v3 }
 0x107   : > { %v928_v15 = vpop.f32.mrf.mxu2  ;;  %v576_v21 = vpop.f32.mrf.mxu0 }
 0x108   : > { %v1105_v20 = vpop.f32.mrf.mxu3  ;;  %v3679_v23 = vmul.f32 0.17677669, %v928_v15  ;;  %v753_v26 = vpop.f32.mrf.mxu1  ;;  %v3699_v42 = vmul.f32 0.17677669, %v576_v21 }
 0x109   : > { %v3686_v28 = vmul.f32 0.17677669, %v1105_v20  ;;  %v3690_v32 = vmul.f32 0.17677669, %v753_v26 }
 0x10a   : > { %1268 = vmax.xlane.f32.xlu0 %v3663_v12 }
 0x10b   : > { %1298 = vmax.xlane.f32.xlu1 %v3659_v9  ;;  %1204 = vmax.xlane.f32.xlu2 %v3661_v11 }
 0x10f   : > { %v930_v24 = vpop.f32.mrf.mxu2  ;;  %v579_v29 = vpop.f32.mrf.mxu0 }
 0x110   : > { %v3681_v25 = vmul.f32 0.17677669, %v930_v24  ;;  %v1107_v27 = vpop.f32.mrf.mxu3  ;;  %v3688_v31 = vmul.f32 0.17677669, %v579_v29  ;;  %v756_v34 = vpop.f32.mrf.mxu1 }
 0x111   : > { %v3697_v41 = vmul.f32 0.17677669, %v1107_v27  ;;  %v3704_v49 = vmul.f32 0.17677669, %v756_v34 }
 0x112   : > { %1206 = vmax.xlane.f32.xlu0 %v3668_v16 }
 0x113   : > { %1236 = vmax.xlane.f32.xlu1 %v3670_v18  ;;  %1300 = vmax.xlane.f32.xlu2 %v3672_v19 }
 0x117   : > { %v933_v30 = vpop.f32.mrf.mxu2  ;;  %v581_v39 = vpop.f32.mrf.mxu0 }
 0x118   : > { %v1110_v35 = vpop.f32.mrf.mxu3  ;;  %v758_v46 = vpop.f32.mrf.mxu1  ;;  %v3706_v50 = vmul.f32 0.17677669, %v933_v30  ;;  %v3715_v0 = vmul.f32 0.17677669, %v581_v39 }
 0x119   : > { %v3695_v36 = vmul.f32 0.17677669, %v1110_v35  ;;  %v3708_v57 = vmul.f32 0.17677669, %v758_v46 }
 0x11a   : > { %1272 = vmax.xlane.f32.xlu0 %v3681_v25 }
 0x11b   : > { %1238 = vmax.xlane.f32.xlu1 %v3677_v22  ;;  %1270 = vmax.xlane.f32.xlu2 %v3679_v23  ;;  %4526 = vst [vmem:[#allocation2_spill] sm:$0xff] %v3708_v57 }
 0x11f   : > { %v935_v43 = vpop.f32.mrf.mxu2  ;;  %v584_v54 = vpop.f32.mrf.mxu0 }
 0x120   : > { %v1112_v52 = vpop.f32.mrf.mxu3  ;;  %v761_v60 = vpop.f32.mrf.mxu1  ;;  %v3717_v2 = vmul.f32 0.17677669, %v935_v43  ;;  %v3733_v26 = vmul.f32 0.17677669, %v584_v54 }
 0x121   : > { %v3713_v61 = vmul.f32 0.17677669, %v761_v60  ;;  %v3724_v13 = vmul.f32 0.17677669, %v1112_v52 }
 0x122   : > { %1210 = vmax.xlane.f32.xlu0 %v3688_v31  ;;  %4528 = vst [vmem:[#allocation4_spill] sm:$0xff] %v3717_v2 }
 0x123   : > { %1302 = vmax.xlane.f32.xlu1 %v3686_v28  ;;  %1240 = vmax.xlane.f32.xlu2 %v3690_v32  ;;  %4527 = vst [vmem:[#allocation3_spill] sm:$0xff] %v3713_v61 }
 0x124   : > { %4530 = vst [vmem:[#allocation6_spill] sm:$0xff] %v3724_v13 }
 0x125   : > { %4533 = vst [vmem:[#allocation9_spill] sm:$0xff] %v3733_v26 }
 0x127   : > { %v938_v58 = vpop.f32.mrf.mxu2  ;;  %v586_v7 = vpop.f32.mrf.mxu0 }
 0x128   : > { %v1115_v5 = vpop.f32.mrf.mxu3  ;;  %v3722_v10 = vmul.f32 0.17677669, %v938_v58  ;;  %v3735_v27 = vmul.f32 0.17677669, %v586_v7  ;;  %v763_v29 = vpop.f32.mrf.mxu1 }
 0x129   : > { %v3746_v46 = vmul.f32 0.17677669, %v1115_v5  ;;  %v3761_v5 = vmul.f32 0.17677669, %v763_v29 }
 0x12a   : > { %1306 = vmax.xlane.f32.xlu0 %v3695_v36  ;;  %4529 = vst [vmem:[#allocation5_spill] sm:$0xff] %v3722_v10 }
 0x12b   : > { %1304 = vmax.xlane.f32.xlu2 %v3697_v41  ;;  %1208 = vmax.xlane.f32.xlu1 %v3699_v42  ;;  %4534 = vst [vmem:[#allocation10_spill] sm:$0xff] %v3735_v27 }
 0x12c   : > { %4535 = vst [vmem:[#allocation11_spill] sm:$0xff] %v3746_v46 }
 0x12d   : > { %4538 = vst [vmem:[#allocation14_spill] sm:$0xff] %v3761_v5 }
 0x12f   : > { %v940_v8 = vpop.f32.mrf.mxu2  ;;  %v589_v17 = vpop.f32.mrf.mxu0 }
 0x130   : > { %v3726_v14 = vmul.f32 0.17677669, %v940_v8  ;;  %v1117_v15 = vpop.f32.mrf.mxu3  ;;  %v766_v54 = vpop.f32.mrf.mxu1 }
 0x131   : > { %v3748_v52 = vmul.f32 0.17677669, %v1117_v15  ;;  %v3763_v15 = vmul.f32 0.17677669, %v589_v17 }
 0x132   : > { %1244 = vmax.xlane.f32.xlu0 %v3708_v57  ;;  %4531 = vst [vmem:[#allocation7_spill] sm:$0xff] %v3726_v14 }
 0x133   : > { %1242 = vmax.xlane.f32.xlu2 %v3704_v49  ;;  %1274 = vmax.xlane.f32.xlu1 %v3706_v50  ;;  %4536 = vst [vmem:[#allocation12_spill] sm:$0xff] %v3748_v52 }
 0x134   : > { %4539 = vst [vmem:[#allocation15_spill] sm:$0xff] %v3763_v15 }
 0x137   : > { %v943_v20 = vpop.f32.mrf.mxu2  ;;  %v591_v43 = vpop.f32.mrf.mxu0 }
 0x138   : > { %v3731_v24 = vmul.f32 0.17677669, %v943_v20  ;;  %v1120_v30 = vpop.f32.mrf.mxu3  ;;  %v3750_v58 = vmul.f32 0.17677669, %v591_v43  ;;  %v768_v43 = vpop.f32.mrf.mxu1 }
 0x13a   : > { %1246 = vmax.xlane.f32.xlu0 %v3713_v61  ;;  %4532 = vst [vmem:[#allocation8_spill] sm:$0xff] %v3731_v24 }
 0x13b   : > { %1276 = vmax.xlane.f32.xlu2 %v3717_v2  ;;  %1212 = vmax.xlane.f32.xlu1 %v3715_v0  ;;  %4537 = vst [vmem:[#allocation13_spill] sm:$0xff] %v3750_v58 }
 0x13f   : > { %v594_v29 = vpop.f32.mrf.mxu0 }
 0x140   : > { %v1122_v8 = vpop.f32.mrf.mxu3  ;;  %v3778_v17 = vmul.f32 0.17677669, %v594_v29 }
 0x142   : > { %1280 = vmax.xlane.f32.xlu0 %v3726_v14  ;;  %4542 = vst [vmem:[#allocation18_spill] sm:$0xff] %v3778_v17 }
 0x143   : > { %1278 = vmax.xlane.f32.xlu2 %v3722_v10  ;;  %1308 = vmax.xlane.f32.xlu1 %v3724_v13 }
 0x145   : > { %v1195_v21 = vpop.xlane.xlu0 %1194 }
 0x14a   : > { %1282 = vmax.xlane.f32.xlu0 %v3731_v24  ;;  %v3765_v24 = vmul.f32 0.17677669, %v1122_v8  ;;  %v3780_v8 = vmul.f32 0.17677669, %v1120_v30  ;;  %v3795_v30 = vmul.f32 0.17677669, %v768_v43 }
 0x14b   : > { %1214 = vmax.xlane.f32.xlu1 %v3733_v26  ;;  %1216 = vmax.xlane.f32.xlu2 %v3735_v27 }
 0x14c   : > { %4540 = vst [vmem:[#allocation16_spill] sm:$0xff] %v3765_v24 }
 0x14d   : > { %v3742_v35 = vpop.xlane.xlu2 %1258  ;;  %v3744_v39 = vpop.xlane.xlu0 %1226  ;;  %4543 = vst [vmem:[#allocation19_spill] sm:$0xff] %v3780_v8 }
 0x14e   : > { %v3740_v34 = vpop.xlane.xlu1 %1290  ;;  %4546 = vst [vmem:[#allocation22_spill] sm:$0xff] %v3795_v30 }
 0x152   : > { %1220 = vmax.xlane.f32.xlu0 %v3750_v58 }
 0x153   : > { %1310 = vmax.xlane.f32.xlu1 %v3746_v46  ;;  %1312 = vmax.xlane.f32.xlu2 %v3748_v52  ;;  %v3774_v52 = vmul.f32 0.17677669, %v766_v54  ;;  %v945_v46 = vpop.f32.mrf.mxu2  ;;  %v1125_v54 = vpop.f32.mrf.mxu3 }
 0x154   : > { %v3791_v26 = vmul.f32 0.17677669, %v1125_v54  ;;  %v3793_v29 = vmul.f32 0.17677669, %v945_v46 }
 0x155   : > { %v3759_v20 = vpop.xlane.xlu0 %1196  ;;  %4541 = vst [vmem:[#allocation17_spill] sm:$0xff] %v3774_v52 }
 0x156   : > { %v3755_v60 = vpop.xlane.xlu2 %1292  ;;  %v3757_v7 = vpop.xlane.xlu1 %1228  ;;  %4544 = vst [vmem:[#allocation20_spill] sm:$0xff] %v3791_v26 }
 0x157   : > { %4545 = vst [vmem:[#allocation21_spill] sm:$0xff] %v3793_v29 }
 0x15a   : > { %1316 = vmax.xlane.f32.xlu0 %v3765_v24  ;;  %v771_v24 = vpop.f32.mrf.mxu1 }
 0x15b   : > { %1248 = vmax.xlane.f32.xlu1 %v3761_v5  ;;  %1218 = vmax.xlane.f32.xlu2 %v3763_v15  ;;  %v948_v61 = vpop.f32.mrf.mxu2  ;;  %v3805_v57 = vmul.f32 0.17677669, %v771_v24 }
 0x15c   : > { %v3807_v54 = vmul.f32 0.17677669, %v948_v61  ;;  %v1354_v61 = vsub.f32 %v3605_v37, %v3742_v35  ;;  %v1323_v37 = vsub.f32 %v3618_v47, %v3759_v20  ;;  %v1339_v35 = vsub.f32 %v3616_v45, %v3757_v7 }
 0x15d   : > { %v3776_v27 = vpop.xlane.xlu0 %1260  ;;  %4547 = vst [vmem:[#allocation23_spill] sm:$0xff] %v3805_v57  ;;  %v1371_v20 = vsub.f32 %v3614_v44, %v3755_v60 }
 0x15e   : > { %v3770_v58 = vpop.xlane.xlu2 %1262  ;;  %v3772_v14 = vpop.xlane.xlu1 %1198  ;;  %4548 = vst [vmem:[#allocation24_spill] sm:$0xff] %v3807_v54  ;;  %v1355_v7 = vsub.f32 %v3627_v53, %v3776_v27 }
 0x15f   : > { %v1356_v45 = vsub.f32 %v3625_v51, %v3770_v58  ;;  %v1324_v44 = vsub.f32 %v3623_v48, %v3772_v14 }
 0x160   : > { %v1452_v58 = vmul.f32 1.442695, %v1355_v7 }
 0x162   : > { %1222 = vmax.xlane.f32.xlu0 %v3778_v17  ;;  %v1322_v17 = vsub.f32 %v3602_v33, %v1195_v21  ;;  %v773_v46 = vpop.f32.mrf.mxu1  ;;  %v1338_v33 = vsub.f32 %v3609_v40, %v3744_v39  ;;  %v596_v21 = vpop.f32.mrf.mxu0 }
 0x163   : > { %1250 = vmax.xlane.f32.xlu1 %v3774_v52  ;;  %1314 = vmax.xlane.f32.xlu2 %v3780_v8  ;;  %v3811_v13 = vmul.f32 0.17677669, %v773_v46  ;;  %v950_v24 = vpop.f32.mrf.mxu2  ;;  %v1127_v39 = vpop.f32.mrf.mxu3 }
 0x164   : > { %v1386_v2 = vmul.f32 1.442695, %v1322_v17 }
 0x165   : > { %v3789_v10 = vpop.xlane.xlu0 %1230  ;;  %4549 = vst [vmem:[#allocation25_spill] sm:$0xff] %v3811_v13 }
 0x166   : > { %v3785_v15 = vpop.xlane.xlu2 %1296  ;;  %v3787_v5 = vpop.xlane.xlu1 %1294  ;;  %3168 = vpow2.f32 %v1386_v2  ;;  %v1370_v2 = vsub.f32 %v3607_v38, %v3740_v34  ;;  %v1340_v60 = vsub.f32 %v3634_v56, %v3789_v10 }
 0x167   : > { %v1372_v56 = vsub.f32 %v3632_v55, %v3787_v5 }
 0x168   : > { %v1482_v38 = vmul.f32 1.442695, %v1370_v2 }
 0x16a   : > { %1318 = vmax.xlane.f32.xlu0 %v3791_v26 }
 0x16b   : > { %1284 = vmax.xlane.f32.xlu1 %v3793_v29  ;;  %1252 = vmax.xlane.f32.xlu2 %v3795_v30  ;;  %v1450_v30 = vmul.f32 1.442695, %v1354_v61  ;;  %v3828_v29 = vmul.f32 0.17677669, %v950_v24  ;;  %v1420_v24 = vmul.f32 1.442695, %v1339_v35 }
 0x16c   : > { %v3830_v40 = vpop.eup %3168 }
 0x16d   : > { %v3809_v43 = vpop.xlane.xlu0 %1264 }
 0x16e   : > { %v3801_v8 = vpop.xlane.xlu1 %1200  ;;  %v3803_v52 = vpop.xlane.xlu2 %1202  ;;  %v1357_v10 = vsub.f32 %v3645_v1, %v3809_v43  ;;  %v3151_v43 = vld [vmem:[%s3918_s24 + $0xb8] sm:$0xff] }
 0x16f   : > { %v1325_v27 = vsub.f32 %v3643_v63, %v3801_v8  ;;  %v1373_v8 = vsub.f32 %v3636_v59, %v3785_v15  ;;  %v1326_v1 = vsub.f32 %v3641_v62, %v3803_v52  ;;  %2220 = vmatpush.bf16.msrb.mxu2 %v3151_v43 }
 0x171   : > { %v1392_v14 = vmul.f32 1.442695, %v1325_v27  ;;  %v1488_v59 = vmul.f32 1.442695, %v1373_v8  ;;  %v3135_v8 = vld [vmem:[%s3918_s24 + $0x38] sm:$0xff] }
 0x172   : > { %1256 = vmax.xlane.f32.xlu0 %v3811_v13  ;;  %v1394_v52 = vmul.f32 1.442695, %v1326_v1  ;;  %1930 = vmatpush.bf16.msrb.mxu0 %v3135_v8 }
 0x173   : > { %1286 = vmax.xlane.f32.xlu1 %v3807_v54  ;;  %1254 = vmax.xlane.f32.xlu2 %v3805_v57  ;;  %v1418_v54 = vmul.f32 1.442695, %v1338_v33  ;;  %v3826_v57 = vmul.f32 0.17677669, %v596_v21  ;;  %v1388_v21 = vmul.f32 1.442695, %v1323_v37 }
 0x174   : > { %v1454_v37 = vmul.f32 1.442695, %v1356_v45  ;;  %v1390_v45 = vmul.f32 1.442695, %v1324_v44  ;;  %v1486_v44 = vmul.f32 1.442695, %v1372_v56 }
 0x175   : > { %v3824_v46 = vpop.xlane.xlu0 %1234  ;;  %3170 = vpow2.f32 %v1418_v54  ;;  %v3847_v54 = vmul.f32 0.17677669, %v1127_v39  ;;  %v1484_v39 = vmul.f32 1.442695, %v1371_v20  ;;  %v1422_v20 = vmul.f32 1.442695, %v1340_v60 }
 0x176   : > { %v3820_v26 = vpop.xlane.xlu1 %1232  ;;  %v3822_v17 = vpop.xlane.xlu2 %1266  ;;  %3172 = vpow2.f32 %v1450_v30  ;;  %v1456_v60 = vmul.f32 1.442695, %v1357_v10  ;;  %v3143_v56 = vld [vmem:[%s3918_s24 + $0x78] sm:$0xff] }
 0x177   : > { %3174 = vpow2.f32 %v1482_v38  ;;  %v1341_v5 = vsub.f32 %v3654_v6, %v3820_v26  ;;  %2075 = vmatpush.bf16.msrb.mxu1 %v3143_v56 }
 0x178   : > { %3176 = vpow2.f32 %v1388_v21 }
 0x179   : > { %3178 = vpow2.f32 %v1420_v24  ;;  %v1424_v6 = vmul.f32 1.442695, %v1341_v5 }
 0x17a   : > { %1514 = vadd.xlane.f32.xlu0 %v3830_v40  ;;  %3180 = vpow2.f32 %v1454_v37 }
 0x17b   : > { %1288 = vmax.xlane.f32.xlu2 %v3828_v29  ;;  %1224 = vmax.xlane.f32.xlu1 %v3826_v57  ;;  %v3849_v13 = vpop.eup %3170  ;;  %3182 = vpow2.f32 %v1452_v58 }
 0x17c   : > { %v3851_v47 = vpop.eup %3172  ;;  %3184 = vpow2.f32 %v1484_v39 }
 0x17d   : > { %v3845_v34 = vpop.xlane.xlu0 %1268  ;;  %v3868_v35 = vpop.eup %3174  ;;  %3186 = vpow2.f32 %v1390_v45 }
 0x17e   : > { %v3841_v33 = vpop.xlane.xlu1 %1298  ;;  %v3843_v61 = vpop.xlane.xlu2 %1204  ;;  %3188 = vpow2.f32 %v1392_v14  ;;  %v3159_v14 = vld [vmem:[%s3918_s24 + $0xf8] sm:$0xff] }
 0x17f   : > { %v3870_v38 = vpop.eup %3176  ;;  %3190 = vpow2.f32 %v1422_v20  ;;  %v1358_v20 = vsub.f32 %v3650_v3, %v3822_v17  ;;  %2365 = vmatpush.bf16.msrb.mxu3 %v3159_v14  ;;  %v1342_v17 = vsub.f32 %v3652_v4, %v3824_v46  ;;  %v1374_v1 = vsub.f32 %v3659_v9, %v3841_v33 }
 0x180   : > { %v3872_v53 = vpop.eup %3178  ;;  %3192 = vpow2.f32 %v1488_v59  ;;  %v1327_v5 = vsub.f32 %v3661_v11, %v3843_v61  ;;  %v1359_v11 = vsub.f32 %v3663_v12, %v3845_v34 }
 0x181   : > { %v3889_v7 = vpop.eup %3180  ;;  %3194 = vpow2.f32 %v1486_v44  ;;  %v1458_v44 = vmul.f32 1.442695, %v1358_v20  ;;  %v1426_v4 = vmul.f32 1.442695, %v1342_v17  ;;  %v1490_v20 = vmul.f32 1.442695, %v1374_v1 }
 0x182   : > { %1578 = vadd.xlane.f32.xlu0 %v3851_v47  ;;  %v3891_v37 = vpop.eup %3182  ;;  %3196 = vpow2.f32 %v1456_v60  ;;  %v1396_v9 = vmul.f32 1.442695, %v1327_v5  ;;  %v3134_v17 = vld [vmem:[%s3918_s24 + $0x30] sm:$0xff]  ;;  %v1460_v34 = vmul.f32 1.442695, %v1359_v11 }
 0x183   : > { %1546 = vadd.xlane.f32.xlu2 %v3849_v13  ;;  %1320 = vmax.xlane.f32.xlu1 %v3847_v54  ;;  %v3893_v63 = vpop.eup %3184  ;;  %3198 = vpow2.f32 %v1394_v52  ;;  %v3150_v52 = vld [vmem:[%s3918_s24 + $0xb0] sm:$0xff] }
 0x184   : > { %v3910_v27 = vpop.eup %3186  ;;  %3200 = vpow2.f32 %v1424_v6  ;;  %v3158_v6 = vld [vmem:[%s3918_s24 + $0xf0] sm:$0xff]  ;;  %2221 = vmatpush.bf16.msrb.mxu2 %v3150_v52  ;;  %1931 = vmatpush.bf16.msrb.mxu0 %v3134_v17 }
 0x185   : > { %v3866_v51 = vpop.xlane.xlu0 %1206  ;;  %v3912_v45 = vpop.eup %3188  ;;  %3202 = vpow2.f32 %v1458_v44  ;;  %v3142_v1 = vld [vmem:[%s3918_s24 + $0x70] sm:$0xff]  ;;  %2366 = vmatpush.bf16.msrb.mxu3 %v3158_v6 }
 0x186   : > { %v3862_v30 = vpop.xlane.xlu1 %1236  ;;  %v3864_v2 = vpop.xlane.xlu2 %1300  ;;  %3204 = vpow2.f32 %v1426_v4  ;;  %2076 = vmatpush.bf16.msrb.mxu1 %v3142_v1 }
 0x187   : > { %v3920_v55 = vpop.eup %3190  ;;  %3206 = vpow2.f32 %v1490_v20  ;;  %v1343_v61 = vsub.f32 %v3670_v18, %v3862_v30  ;;  %v1375_v44 = vsub.f32 %v3672_v19, %v3864_v2 }
 0x188   : > { %v3941_v26 = vpop.eup %3192  ;;  %3208 = vpow2.f32 %v1396_v9 }
 0x189   : > { %v3943_v60 = vpop.eup %3194  ;;  %v1428_v18 = vmul.f32 1.442695, %v1343_v61  ;;  %v1492_v20 = vmul.f32 1.442695, %v1375_v44  ;;  %3210 = vpow2.f32 %v1460_v34  ;;  %v1328_v61 = vsub.f32 %v3668_v16, %v3866_v51  ;;  %v3149_v34 = vld [vmem:[%s3918_s24 + $0xa8] sm:$0xff] }
 0x18a   : > { %1548 = vadd.xlane.f32.xlu0 %v3872_v53  ;;  %v3945_v3 = vpop.eup %3196  ;;  %2222 = vmatpush.bf16.msrb.mxu2 %v3149_v34 }
 0x18b   : > { %1610 = vadd.xlane.f32.xlu2 %v3868_v35  ;;  %1516 = vadd.xlane.f32.xlu1 %v3870_v38  ;;  %v3962_v8 = vpop.eup %3198  ;;  %3212 = vpow2.f32 %v1428_v18  ;;  %v3157_v18 = vld [vmem:[%s3918_s24 + $0xe8] sm:$0xff] }
 0x18c   : > { %v3964_v33 = vpop.eup %3200  ;;  %3214 = vpow2.f32 %v1492_v20  ;;  %2367 = vmatpush.bf16.msrb.mxu3 %v3157_v18 }
 0x18d   : > { %v3887_v48 = vpop.xlane.xlu0 %1272  ;;  %v3966_v56 = vpop.eup %3202 }
 0x18e   : > { %v3883_v21 = vpop.xlane.xlu1 %1238  ;;  %v3885_v24 = vpop.xlane.xlu2 %1270  ;;  %v1361_v16 = vsub.f32 %v3681_v25, %v3887_v48 }
 0x18f   : > { %v3987_v30 = vpop.eup %3204  ;;  %v1344_v2 = vsub.f32 %v3677_v22, %v3883_v21  ;;  %v1360_v11 = vsub.f32 %v3679_v23, %v3885_v24  ;;  %v1398_v23 = vmul.f32 1.442695, %v1328_v61 }
 0x190   : > { %v3989_v9 = vpop.eup %3206  ;;  %v1464_v48 = vmul.f32 1.442695, %v1361_v16 }
 0x191   : > { %v3991_v19 = vpop.eup %3208  ;;  %v1430_v22 = vmul.f32 1.442695, %v1344_v2  ;;  %v1462_v44 = vmul.f32 1.442695, %v1360_v11  ;;  %v3133_v2 = vld [vmem:[%s3918_s24 + $0x28] sm:$0xff] }
 0x192   : > { %1612 = vadd.xlane.f32.xlu0 %v3893_v63  ;;  %v4008_v17 = vpop.eup %3210  ;;  %v3141_v11 = vld [vmem:[%s3918_s24 + $0x68] sm:$0xff]  ;;  %1932 = vmatpush.bf16.msrb.mxu0 %v3133_v2 }
 0x193   : > { %1582 = vadd.xlane.f32.xlu2 %v3889_v7  ;;  %1580 = vadd.xlane.f32.xlu1 %v3891_v37  ;;  %v4010_v24 = vpop.eup %3212  ;;  %3216 = vpow2.f32 %v1430_v22 }
 0x194   : > { %v4012_v1 = vpop.eup %3214  ;;  %3218 = vpow2.f32 %v1462_v44  ;;  %2077 = vmatpush.bf16.msrb.mxu1 %v3141_v11 }
 0x195   : > { %v3908_v15 = vpop.xlane.xlu0 %1210  ;;  %3220 = vpow2.f32 %v1398_v23 }
 0x196   : > { %v3904_v58 = vpop.xlane.xlu1 %1302  ;;  %v3906_v39 = vpop.xlane.xlu2 %1240  ;;  %3222 = vpow2.f32 %v1464_v48  ;;  %v3148_v48 = vld [vmem:[%s3918_s24 + $0xa0] sm:$0xff] }
 0x197   : > { %v1376_v20 = vsub.f32 %v3686_v28, %v3904_v58  ;;  %2223 = vmatpush.bf16.msrb.mxu2 %v3148_v48 }
 0x199   : > { %v1494_v44 = vmul.f32 1.442695, %v1376_v20 }
 0x19a   : > { %1550 = vadd.xlane.f32.xlu0 %v3920_v55 }
 0x19b   : > { %1520 = vadd.xlane.f32.xlu2 %v3912_v45  ;;  %1518 = vadd.xlane.f32.xlu1 %v3910_v27 }
 0x19d   : > { %v3939_v59 = vpop.xlane.xlu0 %1306 }
 0x19e   : > { %v3935_v10 = vpop.xlane.xlu2 %1304  ;;  %v3937_v62 = vpop.xlane.xlu1 %1208 }
 0x19f   : > { %v1329_v51 = vsub.f32 %v3699_v42, %v3937_v62  ;;  %v4033_v62 = vpop.eup %3216  ;;  %v1377_v58 = vsub.f32 %v3697_v41, %v3935_v10 }
 0x1a0   : > { %4550 = vst [vmem:[#allocation26_spill] sm:$0xff] %v4033_v62  ;;  %v4035_v23 = vpop.eup %3218 }
 0x1a1   : > { %v1400_v42 = vmul.f32 1.442695, %v1329_v51  ;;  %v4037_v28 = vpop.eup %3220  ;;  %v1345_v51 = vsub.f32 %v3690_v32, %v3906_v39  ;;  %v1496_v41 = vmul.f32 1.442695, %v1377_v58  ;;  %v1330_v32 = vsub.f32 %v3688_v31, %v3908_v15  ;;  %v3132_v58 = vld [vmem:[%s3918_s24 + $0x20] sm:$0xff] }
 0x1a2   : > { %1584 = vadd.xlane.f32.xlu0 %v3945_v3  ;;  %v4054_v2 = vpop.eup %3222  ;;  %1933 = vmatpush.bf16.msrb.mxu0 %v3132_v58 }
 0x1a3   : > { %1616 = vadd.xlane.f32.xlu2 %v3941_v26  ;;  %1614 = vadd.xlane.f32.xlu1 %v3943_v60  ;;  %3224 = vpow2.f32 %v1400_v42  ;;  %v3156_v42 = vld [vmem:[%s3918_s24 + $0xe0] sm:$0xff] }
 0x1a4   : > { %3226 = vpow2.f32 %v1494_v44  ;;  %2368 = vmatpush.bf16.msrb.mxu3 %v3156_v42 }
 0x1a5   : > { %v3960_v46 = vpop.xlane.xlu0 %1244  ;;  %3228 = vpow2.f32 %v1496_v41 }
 0x1a6   : > { %v3956_v43 = vpop.xlane.xlu2 %1242  ;;  %v3958_v14 = vpop.xlane.xlu1 %1274 }
 0x1a7   : > { %v1362_v16 = vsub.f32 %v3706_v50, %v3958_v14  ;;  %v1432_v50 = vmul.f32 1.442695, %v1345_v51  ;;  %v1346_v44 = vsub.f32 %v3704_v49, %v3956_v43  ;;  %v1402_v51 = vmul.f32 1.442695, %v1330_v32  ;;  %v4554_v32 = vld [vmem:[#allocation6_spill] sm:$0xff] }
 0x1a8   : > { %v1378_v43 = vsub.f32 %v3695_v36, %v3939_v59 }
 0x1a9   : > { %v1466_v20 = vmul.f32 1.442695, %v1362_v16  ;;  %v4056_v14 = vpop.eup %3224  ;;  %v3140_v16 = vld [vmem:[%s3918_s24 + $0x60] sm:$0xff] }
 0x1aa   : > { %1586 = vadd.xlane.f32.xlu0 %v3966_v56  ;;  %v4058_v11 = vpop.eup %3226  ;;  %2078 = vmatpush.bf16.msrb.mxu1 %v3140_v16  ;;  %v1498_v36 = vmul.f32 1.442695, %v1378_v43  ;;  %v3147_v43 = vld [vmem:[%s3918_s24 + $0x98] sm:$0xff] }
 0x1ab   : > { %1522 = vadd.xlane.f32.xlu2 %v3962_v8  ;;  %1552 = vadd.xlane.f32.xlu1 %v3964_v33  ;;  %3230 = vpow2.f32 %v1466_v20  ;;  %v1434_v20 = vmul.f32 1.442695, %v1346_v44 }
 0x1ac   : > { %3232 = vpow2.f32 %v1432_v50  ;;  %2224 = vmatpush.bf16.msrb.mxu2 %v3147_v43  ;;  %v4565_v43 = vld [vmem:[#allocation5_spill] sm:$0xff] }
 0x1ad   : > { %v3985_v4 = vpop.xlane.xlu0 %1246  ;;  %3234 = vpow2.f32 %v1402_v51 }
 0x1ae   : > { %v3981_v5 = vpop.xlane.xlu2 %1276  ;;  %v3983_v12 = vpop.xlane.xlu1 %1212 }
 0x1af   : > { %v1331_v39 = vsub.f32 %v3715_v0, %v3983_v12  ;;  %v4079_v12 = vpop.eup %3228 }
 0x1b0   : > { %4551 = vst [vmem:[#allocation27_spill] sm:$0xff] %v4079_v12 }
 0x1b1   : > { %v1404_v0 = vmul.f32 1.442695, %v1331_v39  ;;  %v4081_v50 = vpop.eup %3230  ;;  %v4555_v39 = vld [vmem:[#allocation4_spill] sm:$0xff] }
 0x1b2   : > { %1524 = vadd.xlane.f32.xlu0 %v3991_v19  ;;  %4552 = vst [vmem:[#allocation28_spill] sm:$0xff] %v4081_v50  ;;  %v4083_v49 = vpop.eup %3232  ;;  %v1363_v42 = vsub.f32 %v4555_v39, %v3981_v5  ;;  %v4559_v5 = vld [vmem:[#allocation2_spill] sm:$0xff]  ;;  %v3155_v39 = vld [vmem:[%s3918_s24 + $0xd8] sm:$0xff] }
 0x1b3   : > { %1618 = vadd.xlane.f32.xlu2 %v3989_v9  ;;  %1554 = vadd.xlane.f32.xlu1 %v3987_v30  ;;  %4553 = vst [vmem:[#allocation29_spill] sm:$0xff] %v4083_v49  ;;  %3236 = vpow2.f32 %v1404_v0  ;;  %v4100_v51 = vpop.eup %3234 }
 0x1b4   : > { %3238 = vpow2.f32 %v1434_v20  ;;  %4556 = vst [vmem:[#allocation6_spill] sm:$0xff] %v4100_v51  ;;  %2369 = vmatpush.bf16.msrb.mxu3 %v3155_v39 }
 0x1b5   : > { %v4006_v21 = vpop.xlane.xlu0 %1280  ;;  %3240 = vpow2.f32 %v1498_v36  ;;  %v4561_v36 = vld [vmem:[#allocation9_spill] sm:$0xff] }
 0x1b6   : > { %v4002_v52 = vpop.xlane.xlu2 %1278  ;;  %v4004_v6 = vpop.xlane.xlu1 %1308 }
 0x1b7   : > { %v1379_v48 = vsub.f32 %v4554_v32, %v4004_v6  ;;  %v1468_v6 = vmul.f32 1.442695, %v1363_v42  ;;  %v1347_v32 = vsub.f32 %v4559_v5, %v3960_v46  ;;  %v3131_v42 = vld [vmem:[%s3918_s24 + $0x18] sm:$0xff]  ;;  %v1364_v39 = vsub.f32 %v4565_v43, %v4002_v52 }
 0x1b8   : > { %1934 = vmatpush.bf16.msrb.mxu0 %v3131_v42 }
 0x1b9   : > { %v1500_v16 = vmul.f32 1.442695, %v1379_v48  ;;  %v4102_v0 = vpop.eup %3236  ;;  %v1470_v43 = vmul.f32 1.442695, %v1364_v39  ;;  %v4571_v39 = vld [vmem:[#allocation10_spill] sm:$0xff] }
 0x1ba   : > { %1620 = vadd.xlane.f32.xlu0 %v4012_v1  ;;  %4557 = vst [vmem:[#allocation4_spill] sm:$0xff] %v4102_v0  ;;  %v4104_v20 = vpop.eup %3238 }
 0x1bb   : > { %1556 = vadd.xlane.f32.xlu2 %v4010_v24  ;;  %1588 = vadd.xlane.f32.xlu1 %v4008_v17  ;;  %4558 = vst [vmem:[#allocation30_spill] sm:$0xff] %v4104_v20  ;;  %3242 = vpow2.f32 %v1500_v16 }
 0x1bc   : > { %3244 = vpow2.f32 %v1468_v6  ;;  %v3130_v6 = vld [vmem:[%s3918_s24 + $0x10] sm:$0xff] }
 0x1bd   : > { %v4031_v22 = vpop.xlane.xlu0 %1282  ;;  %1935 = vmatpush.bf16.msrb.mxu0 %v3130_v6 }
 0x1be   : > { %v4027_v61 = vpop.xlane.xlu1 %1214  ;;  %v4029_v25 = vpop.xlane.xlu2 %1216 }
 0x1c2   : > { %1526 = vadd.xlane.f32.xlu0 %v4037_v28 }
 0x1c3   : > { %1558 = vadd.xlane.f32.xlu2 %v4033_v62  ;;  %1590 = vadd.xlane.f32.xlu1 %v4035_v23 }
 0x1c5   : > { %v4052_v10 = vpop.xlane.xlu0 %1220 }
 0x1c6   : > { %v4048_v34 = vpop.xlane.xlu1 %1310  ;;  %v4050_v18 = vpop.xlane.xlu2 %1312 }
 0x1ca   : > { %1622 = vadd.xlane.f32.xlu0 %v4058_v11 }
 0x1cb   : > { %1592 = vadd.xlane.f32.xlu2 %v4054_v2  ;;  %1528 = vadd.xlane.f32.xlu1 %v4056_v14 }
 0x1cd   : > { %v4077_v41 = vpop.xlane.xlu0 %1316 }
 0x1ce   : > { %v4073_v31 = vpop.xlane.xlu1 %1248  ;;  %v4075_v15 = vpop.xlane.xlu2 %1218 }
 0x1d2   : > { %1560 = vadd.xlane.f32.xlu0 %v4083_v49  ;;  %v3139_v49 = vld [vmem:[%s3918_s24 + $0x58] sm:$0xff] }
 0x1d3   : > { %1594 = vadd.xlane.f32.xlu2 %v4081_v50  ;;  %1624 = vadd.xlane.f32.xlu1 %v4079_v12  ;;  %v4560_v50 = vld [vmem:[#allocation3_spill] sm:$0xff]  ;;  %v1332_v12 = vsub.f32 %v4561_v36, %v4027_v61 }
 0x1d4   : > { %v1348_v48 = vsub.f32 %v4560_v50, %v3985_v4  ;;  %2079 = vmatpush.bf16.msrb.mxu1 %v3139_v49  ;;  %v1436_v4 = vmul.f32 1.442695, %v1347_v32  ;;  %v3138_v49 = vld [vmem:[%s3918_s24 + $0x50] sm:$0xff] }
 0x1d5   : > { %v4098_v59 = vpop.xlane.xlu0 %1222 }
 0x1d6   : > { %v4094_v44 = vpop.xlane.xlu1 %1250  ;;  %v4096_v58 = vpop.xlane.xlu2 %1314  ;;  %v1438_v16 = vmul.f32 1.442695, %v1348_v48  ;;  %3246 = vpow2.f32 %v1436_v4  ;;  %v4567_v48 = vld [vmem:[#allocation14_spill] sm:$0xff]  ;;  %v3129_v4 = vld [vmem:[%s3918_s24 + $0x8] sm:$0xff] }
 0x1d7   : > { %v1349_v52 = vsub.f32 %v4567_v48, %v4073_v31  ;;  %1936 = vmatpush.bf16.msrb.mxu0 %v3129_v4  ;;  %v4572_v48 = vld [vmem:[#allocation12_spill] sm:$0xff]  ;;  %v3136_v4 = vld [vmem:[%s3918_s24 + $0x40] sm:$0xff] }
 0x1d8   : > { %3248 = vpow2.f32 %v1438_v16  ;;  %2080 = vmatpush.bf16.msrb.mxu1 %v3138_v49 }
 0x1da   : > { %1562 = vadd.xlane.f32.xlu0 %v4104_v20  ;;  %v4125_v20 = vpop.eup %3240 }
 0x1db   : > { %1532 = vadd.xlane.f32.xlu2 %v4102_v0  ;;  %1530 = vadd.xlane.f32.xlu1 %v4100_v51  ;;  %4562 = vst [vmem:[#allocation2_spill] sm:$0xff] %v4125_v20  ;;  %v1406_v51 = vmul.f32 1.442695, %v1332_v12  ;;  %v4128_v0 = vpop.eup %3242  ;;  %v4566_v12 = vld [vmem:[#allocation11_spill] sm:$0xff] }
 0x1dc   : > { %4563 = vst [vmem:[#allocation3_spill] sm:$0xff] %v4128_v0  ;;  %v4130_v61 = vpop.eup %3244  ;;  %v1380_v32 = vsub.f32 %v4566_v12, %v4048_v34  ;;  %v3146_v34 = vld [vmem:[%s3918_s24 + $0x90] sm:$0xff] }
 0x1dd   : > { %v4123_v50 = vpop.xlane.xlu0 %1318  ;;  %4564 = vst [vmem:[#allocation9_spill] sm:$0xff] %v4130_v61  ;;  %3250 = vpow2.f32 %v1406_v51  ;;  %v3154_v12 = vld [vmem:[%s3918_s24 + $0xd0] sm:$0xff]  ;;  %v4152_v6 = vpop.eup %3246  ;;  %v1440_v51 = vmul.f32 1.442695, %v1349_v52  ;;  %2225 = vmatpush.bf16.msrb.mxu2 %v3146_v34  ;;  %v1381_v52 = vsub.f32 %v4572_v48, %v4050_v18  ;;  %v4573_v34 = vld [vmem:[#allocation7_spill] sm:$0xff] }
 0x1de   : > { %v4119_v46 = vpop.xlane.xlu1 %1284  ;;  %v4121_v5 = vpop.xlane.xlu2 %1252  ;;  %4568 = vst [vmem:[#allocation5_spill] sm:$0xff] %v4152_v6  ;;  %2370 = vmatpush.bf16.msrb.mxu3 %v3154_v12  ;;  %3252 = vpow2.f32 %v1470_v43  ;;  %v1365_v43 = vsub.f32 %v4573_v34, %v4006_v21  ;;  %v3153_v18 = vld [vmem:[%s3918_s24 + $0xc8] sm:$0xff] }
 0x1df   : > { %v4155_v31 = vpop.eup %3248 }
 0x1e0   : > { %4569 = vst [vmem:[#allocation11_spill] sm:$0xff] %v4155_v31  ;;  %v1472_v48 = vmul.f32 1.442695, %v1365_v43 }
 0x1e2   : > { %1596 = vadd.xlane.f32.xlu0 %v4130_v61  ;;  %v3137_v61 = vld [vmem:[%s3918_s24 + $0x48] sm:$0xff]  ;;  %2371 = vmatpush.bf16.msrb.mxu3 %v3153_v18 }
 0x1e3   : > { %1628 = vadd.xlane.f32.xlu2 %v4128_v0  ;;  %1626 = vadd.xlane.f32.xlu1 %v4125_v20  ;;  %v1502_v20 = vmul.f32 1.442695, %v1380_v32  ;;  %v3128_v0 = vld [vmem:[%s3918_s24] sm:$0xff]  ;;  %v4157_v49 = vpop.eup %3250  ;;  %v1333_v32 = vsub.f32 %v4571_v39, %v4029_v25  ;;  %v3145_v39 = vld [vmem:[%s3918_s24 + $0x88] sm:$0xff] }
 0x1e4   : > { %4570 = vst [vmem:[#allocation14_spill] sm:$0xff] %v4157_v49  ;;  %2081 = vmatpush.bf16.msrb.mxu1 %v3137_v61  ;;  %1937 = vmatpush.bf16.msrb.mxu0 %v3128_v0  ;;  %v4175_v61 = vpop.eup %3252 }
 0x1e5   : > { %v4147_v16 = vpop.xlane.xlu0 %1256  ;;  %3254 = vpow2.f32 %v1502_v20  ;;  %v1408_v20 = vmul.f32 1.442695, %v1333_v32  ;;  %2226 = vmatpush.bf16.msrb.mxu2 %v3145_v39  ;;  %4574 = vst [vmem:[#allocation10_spill] sm:$0xff] %v4175_v61  ;;  %v3152_v32 = vld [vmem:[%s3918_s24 + $0xc0] sm:$0xff] }
 0x1e6   : > { %v4142_v42 = vpop.xlane.xlu1 %1286  ;;  %v4144_v36 = vpop.xlane.xlu2 %1254  ;;  %3256 = vpow2.f32 %v1440_v51  ;;  %v3144_v51 = vld [vmem:[%s3918_s24 + $0x80] sm:$0xff]  ;;  %2372 = vmatpush.bf16.msrb.mxu3 %v3152_v32 }
 0x1e7   : > { %3258 = vpow2.f32 %v1408_v20  ;;  %v4579_v20 = vld [vmem:[#allocation8_spill] sm:$0xff] }
 0x1e8   : > { %2082 = vmatpush.bf16.msrb.mxu1 %v3136_v4 }
 0x1e9   : > { %2227 = vmatpush.bf16.msrb.mxu2 %v3144_v51  ;;  %v4583_v51 = vld [vmem:[#allocation13_spill] sm:$0xff] }
 0x1ea   : > { %1534 = vadd.xlane.f32.xlu0 %v4157_v49  ;;  %v4575_v49 = vld [vmem:[#allocation15_spill] sm:$0xff]  ;;  %v1335_v32 = vsub.f32 %v4583_v51, %v4052_v10 }
 0x1eb   : > { %1566 = vadd.xlane.f32.xlu2 %v4155_v31  ;;  %1564 = vadd.xlane.f32.xlu1 %v4152_v6  ;;  %v1504_v6 = vmul.f32 1.442695, %v1381_v52  ;;  %v1334_v21 = vsub.f32 %v4575_v49, %v4075_v15  ;;  %v4180_v0 = vpop.eup %3254  ;;  %v4577_v52 = vld [vmem:[#allocation17_spill] sm:$0xff]  ;;  %v4578_v49 = vld [vmem:[#allocation19_spill] sm:$0xff] }
 0x1ec   : > { %4576 = vst [vmem:[#allocation12_spill] sm:$0xff] %v4180_v0  ;;  %v4182_v34 = vpop.eup %3256  ;;  %v1350_v4 = vsub.f32 %v4577_v52, %v4094_v44  ;;  %v1382_v43 = vsub.f32 %v4578_v49, %v4096_v58 }
 0x1ed   : > { %v1515_v31 = vpop.xlane.xlu0 %1514  ;;  %3260 = vpow2.f32 %v1504_v6  ;;  %v1410_v15 = vmul.f32 1.442695, %v1334_v21  ;;  %v4196_v62 = vpop.eup %3258 }
 0x1ee   : > { %v4169_v25 = vpop.xlane.xlu2 %1288  ;;  %v4171_v12 = vpop.xlane.xlu1 %1224  ;;  %3262 = vpow2.f32 %v1472_v48  ;;  %v1442_v6 = vmul.f32 1.442695, %v1350_v4  ;;  %4580 = vst [vmem:[#allocation7_spill] sm:$0xff] %v4196_v62  ;;  %v1506_v44 = vmul.f32 1.442695, %v1382_v43 }
 0x1ef   : > { %3264 = vpow2.f32 %v1410_v15 }
 0x1f0   : > { %3266 = vrcp.f32 %v1515_v31 }
 0x1f2   : > { %1568 = vadd.xlane.f32.xlu0 %v4182_v34 }
 0x1f3   : > { %1598 = vadd.xlane.f32.xlu2 %v4175_v61  ;;  %1630 = vadd.xlane.f32.xlu1 %v4180_v0  ;;  %v1366_v61 = vsub.f32 %v4579_v20, %v4031_v22  ;;  %v4198_v52 = vpop.eup %3260  ;;  %v4582_v22 = vld [vmem:[#allocation21_spill] sm:$0xff]  ;;  %v1412_v20 = vmul.f32 1.442695, %v1335_v32 }
 0x1f4   : > { %v4200_v48 = vpop.eup %3262  ;;  %v1367_v58 = vsub.f32 %v4582_v22, %v4119_v46  ;;  %v4586_v46 = vld [vmem:[#allocation16_spill] sm:$0xff] }
 0x1f5   : > { %v1579_v0 = vpop.xlane.xlu0 %1578  ;;  %4581 = vst [vmem:[#allocation15_spill] sm:$0xff] %v4200_v48  ;;  %v1474_v21 = vmul.f32 1.442695, %v1366_v61  ;;  %v4209_v15 = vpop.eup %3264  ;;  %v1383_v22 = vsub.f32 %v4586_v46, %v4077_v41  ;;  %v4589_v41 = vld [vmem:[#allocation24_spill] sm:$0xff] }
 0x1f6   : > { %v1547_v39 = vpop.xlane.xlu2 %1546  ;;  %v4192_v18 = vpop.xlane.xlu1 %1320  ;;  %4584 = vst [vmem:[#allocation17_spill] sm:$0xff] %v4209_v15  ;;  %v1476_v43 = vmul.f32 1.442695, %v1367_v58 }
 0x1f7   : > { %3268 = vrcp.f32 %v1547_v39  ;;  %v3267_v49 = vpop.eup %3266 }
 0x1f8   : > { %3270 = vpow2.f32 %v1442_v6 }
 0x1f9   : > { %3272 = vpow2.f32 %v1506_v44  ;;  %v1706_v44 = vmul.f32 %v3267_v49, %v3830_v40 }
 0x1fa   : > { %1600 = vadd.xlane.f32.xlu0 %v4200_v48  ;;  %3274 = vpow2.f32 %v1474_v21  ;;  %v4588_v21 = vld [vmem:[#allocation22_spill] sm:$0xff] }
 0x1fb   : > { %1632 = vadd.xlane.f32.xlu2 %v4198_v52  ;;  %1536 = vadd.xlane.f32.xlu1 %v4196_v62  ;;  %v1351_v58 = vsub.f32 %v4588_v21, %v4121_v5 }
 0x1fd   : > { %v1549_v61 = vpop.xlane.xlu0 %1548  ;;  %v3269_v39 = vpop.eup %3268  ;;  %v1444_v21 = vmul.f32 1.442695, %v1351_v58 }
 0x1fe   : > { %v1611_v4 = vpop.xlane.xlu2 %1610  ;;  %v1517_v31 = vpop.xlane.xlu1 %1516  ;;  %v1722_v51 = vmul.f32 %v3269_v39, %v3849_v13 }
 0x1ff   : > { %3276 = vrcp.f32 %v1517_v31  ;;  %v4211_v6 = vpop.eup %3270  ;;  %v1508_v31 = vmul.f32 1.442695, %v1383_v22  ;;  %v4590_v22 = vld [vmem:[#allocation18_spill] sm:$0xff] }
 0x200   : > { %3278 = vrcp.f32 %v1549_v61  ;;  %4585 = vst [vmem:[#allocation19_spill] sm:$0xff] %v4211_v6  ;;  %v4215_v10 = vpop.eup %3272  ;;  %v1786_v39 = vpack.c.bf16 %v1722_v51, %v1722_v51 }
 0x201   : > { %3280 = vrcp.f32 %v1579_v0  ;;  %4587 = vst [vmem:[#allocation8_spill] sm:$0xff] %v4215_v10  ;;  %v4224_v32 = vpop.eup %3274  ;;  %v1368_v0 = vsub.f32 %v4589_v41, %v4142_v42  ;;  %v1336_v41 = vsub.f32 %v4590_v22, %v4098_v59 }
 0x202   : > { %3282 = vrcp.f32 %v1611_v4  ;;  %1634 = vadd.xlane.f32.xlu0 %v4215_v10  ;;  %v1995_v51 = vunpack.c.l.b16 %v1786_v39 }
 0x203   : > { %1538 = vadd.xlane.f32.xlu2 %v4209_v15  ;;  %1570 = vadd.xlane.f32.xlu1 %v4211_v6  ;;  %3284 = vpow2.f32 %v1476_v43  ;;  %v1770_v43 = vpack.c.bf16 %v1706_v44, %v1706_v44 }
 0x204   : > { %3286 = vpow2.f32 %v1412_v20  ;;  %v1478_v20 = vmul.f32 1.442695, %v1368_v0 }
 0x205   : > { %v3277_v4 = vpop.eup %3276  ;;  %v1613_v40 = vpop.xlane.xlu0 %1612 }
 0x206   : > { %v1583_v61 = vpop.xlane.xlu2 %1582  ;;  %v1581_v46 = vpop.xlane.xlu1 %1580  ;;  %v1707_v49 = vmul.f32 %v3277_v4, %v3870_v38  ;;  %v4591_v38 = vld [vmem:[#allocation20_spill] sm:$0xff]  ;;  %v1385_v4 = vsub.f32 %v3847_v54, %v4192_v18 }
 0x207   : > { %v3279_v6 = vpop.eup %3278  ;;  %3288 = vrcp.f32 %v1581_v46  ;;  %v1384_v44 = vsub.f32 %v4591_v38, %v4123_v50  ;;  %v1414_v46 = vmul.f32 1.442695, %v1336_v41 }
 0x208   : > { %v3281_v5 = vpop.eup %3280  ;;  %v1723_v13 = vmul.f32 %v3279_v6, %v3872_v53  ;;  %3290 = vrcp.f32 %v1613_v40  ;;  %v1771_v15 = vpack.c.bf16 %v1707_v49, %v1707_v49  ;;  %v1850_v53 = vunpack.c.l.b16 %v1770_v43 }
 0x209   : > { %v3283_v10 = vpop.eup %3282  ;;  %3292 = vpow2.f32 %v1508_v31  ;;  %v1738_v58 = vmul.f32 %v3281_v5, %v3851_v47 }
 0x20a   : > { %v4230_v42 = vpop.eup %3284  ;;  %v1787_v48 = vpack.c.bf16 %v1723_v13, %v1723_v13  ;;  %v1851_v6 = vunpack.c.l.b16 %v1771_v15  ;;  %3294 = vpow2.f32 %v1444_v21  ;;  %v1754_v59 = vmul.f32 %v3283_v10, %v3868_v35 }
 0x20b   : > { %v4234_v62 = vpop.eup %3286  ;;  %1604 = vadd.xlane.f32.xlu2 %v4230_v42  ;;  %1602 = vadd.xlane.f32.xlu1 %v4224_v32  ;;  %3296 = vpow2.f32 %v1478_v20  ;;  %v1802_v21 = vpack.c.bf16 %v1738_v58, %v1738_v58  ;;  %v1510_v35 = vmul.f32 1.442695, %v1384_v44  ;;  %v1512_v10 = vmul.f32 1.442695, %v1385_v4  ;;  %v4592_v58 = vld [vmem:[#allocation23_spill] sm:$0xff] }
 0x20c   : > { %1540 = vadd.xlane.f32.xlu0 %v4234_v62  ;;  %v1996_v0 = vunpack.c.l.b16 %v1787_v48  ;;  %v1866_v50 = vpack.c.b16 %v1851_v6, %v1850_v53  ;;  %v1818_v18 = vpack.c.bf16 %v1754_v59, %v1754_v59 }
 0x20d   : > { %v3289_v31 = vpop.eup %3288  ;;  %v1551_v47 = vpop.xlane.xlu0 %1550  ;;  %v2140_v41 = vunpack.c.l.b16 %v1802_v21  ;;  %v4593_v21 = vld [vmem:[#allocation25_spill] sm:$0xff] }
 0x20e   : > { %v1521_v40 = vpop.xlane.xlu2 %1520  ;;  %v1519_v49 = vpop.xlane.xlu1 %1518  ;;  %v2011_v43 = vpack.c.b16 %v1996_v0, %v1995_v51  ;;  %1938 = vmatmul.bf16.vlgmr.msrb.gmra.mxu0 %v1866_v50  ;;  %v1739_v5 = vmul.f32 %v3289_v31, %v3891_v37  ;;  %v1369_v37 = vsub.f32 %v3828_v29, %v4169_v25  ;;  %v2285_v44 = vunpack.c.l.b16 %v1818_v18 }
 0x20f   : > { %v3291_v15 = vpop.eup %3290  ;;  %3298 = vrcp.f32 %v1521_v40  ;;  %v1352_v51 = vsub.f32 %v4592_v58, %v4144_v36 }
 0x210   : > { %v4246_v48 = vpop.eup %3292  ;;  %3300 = vrcp.f32 %v1519_v49  ;;  %2083 = vmatmul.bf16.vlgmr.msrb.gmra.mxu1 %v2011_v43  ;;  %v1755_v54 = vmul.f32 %v3291_v15, %v3893_v63  ;;  %v1803_v13 = vpack.c.bf16 %v1739_v5, %v1739_v5  ;;  %v1337_v63 = vsub.f32 %v3826_v57, %v4171_v12 }
 0x211   : > { %v4249_v39 = vpop.eup %3294  ;;  %3302 = vpow2.f32 %v1414_v46  ;;  %v1480_v50 = vmul.f32 1.442695, %v1369_v37  ;;  %v1446_v49 = vmul.f32 1.442695, %v1352_v51 }
 0x212   : > { %v1819_v20 = vpack.c.bf16 %v1755_v54, %v1755_v54  ;;  %v4251_v22 = vpop.eup %3296  ;;  %3304 = vrcp.f32 %v1583_v61  ;;  %v2141_v38 = vunpack.c.l.b16 %v1803_v13  ;;  %v1416_v46 = vmul.f32 1.442695, %v1337_v63 }
 0x213   : > { %1572 = vadd.xlane.f32.xlu2 %v4249_v39  ;;  %1636 = vadd.xlane.f32.xlu1 %v4246_v48  ;;  %3306 = vpow2.f32 %v1510_v35  ;;  %v1353_v35 = vsub.f32 %v4593_v21, %v4147_v16 }
 0x214   : > { %1606 = vadd.xlane.f32.xlu0 %v4251_v22  ;;  %v2286_v53 = vunpack.c.l.b16 %v1819_v20  ;;  %3308 = vpow2.f32 %v1512_v10  ;;  %v2156_v29 = vpack.c.b16 %v2141_v38, %v2140_v41 }
 0x215   : > { %v3299_v6 = vpop.eup %3298  ;;  %v1585_v57 = vpop.xlane.xlu0 %1584  ;;  %v1448_v41 = vmul.f32 1.442695, %v1353_v35 }
 0x216   : > { %v3301_v25 = vpop.eup %3300  ;;  %v1617_v61 = vpop.xlane.xlu2 %1616  ;;  %v2301_v59 = vpack.c.b16 %v2286_v53, %v2285_v44  ;;  %v1709_v4 = vmul.f32 %v3299_v6, %v3912_v45  ;;  %2228 = vmatmul.bf16.vlgmr.msrb.gmra.mxu2 %v2156_v29 }
 0x217   : > { %v1615_v0 = vpop.xlane.xlu1 %1614  ;;  %3310 = vrcp.f32 %v1617_v61  ;;  %v1708_v12 = vmul.f32 %v3301_v25, %v3910_v27  ;;  %v4264_v31 = vpop.eup %3302 }
 0x218   : > { %3312 = vrcp.f32 %v1615_v0  ;;  %2373 = vmatmul.bf16.vlgmr.msrb.gmra.mxu3 %v2301_v59  ;;  %v1773_v36 = vpack.c.bf16 %v1709_v4, %v1709_v4  ;;  %v3305_v40 = vpop.eup %3304 }
 0x219   : > { %3314 = vrcp.f32 %v1585_v57  ;;  %v1772_v43 = vpack.c.bf16 %v1708_v12, %v1708_v12  ;;  %v4266_v15 = vpop.eup %3306  ;;  %v1740_v54 = vmul.f32 %v3305_v40, %v3889_v7 }
 0x21a   : > { %3316 = vrcp.f32 %v1551_v47  ;;  %v1853_v45 = vunpack.c.l.b16 %v1773_v36  ;;  %v4268_v5 = vpop.eup %3308 }
 0x21b   : > { %3318 = vpow2.f32 %v1480_v50  ;;  %1638 = vadd.xlane.f32.xlu2 %v4266_v15  ;;  %1542 = vadd.xlane.f32.xlu1 %v4264_v31  ;;  %v1852_v27 = vunpack.c.l.b16 %v1772_v43  ;;  %v1804_v6 = vpack.c.bf16 %v1740_v54, %v1740_v54 }
 0x21c   : > { %3320 = vpow2.f32 %v1416_v46  ;;  %1640 = vadd.xlane.f32.xlu0 %v4268_v5 }
 0x21d   : > { %v3311_v18 = vpop.eup %3310  ;;  %3322 = vpow2.f32 %v1446_v49  ;;  %v1867_v47 = vpack.c.b16 %v1853_v45, %v1852_v27  ;;  %v1587_v38 = vpop.xlane.xlu0 %1586 }
 0x21e   : > { %v3313_v10 = vpop.eup %3312  ;;  %v1523_v13 = vpop.xlane.xlu2 %1522  ;;  %v1757_v37 = vmul.f32 %v3311_v18, %v3941_v26 }
 0x21f   : > { %v1553_v20 = vpop.xlane.xlu1 %1552  ;;  %v3315_v16 = vpop.eup %3314  ;;  %1943 = vmatmul.bf16.gmra.mxu0 %v1867_v47  ;;  %v1756_v63 = vmul.f32 %v3313_v10, %v3943_v60 }
 0x220   : > { %v3317_v44 = vpop.eup %3316  ;;  %3324 = vrcp.f32 %v1553_v20  ;;  %v1741_v53 = vmul.f32 %v3315_v16, %v3945_v3  ;;  %v1821_v7 = vpack.c.bf16 %v1757_v37, %v1757_v37  ;;  %v2142_v3 = vunpack.c.l.b16 %v1804_v6 }
 0x221   : > { %v4279_v58 = vpop.eup %3318  ;;  %v1820_v51 = vpack.c.bf16 %v1756_v63, %v1756_v63  ;;  %3326 = vrcp.f32 %v1523_v13  ;;  %v1724_v0 = vmul.f32 %v3317_v44, %v3920_v55 }
 0x222   : > { %v4281_v29 = vpop.eup %3320  ;;  %v1805_v25 = vpack.c.bf16 %v1741_v53, %v1741_v53  ;;  %v2288_v61 = vunpack.c.l.b16 %v1821_v7  ;;  %3328 = vpow2.f32 %v1448_v41 }
 0x223   : > { %v4283_v26 = vpop.eup %3322  ;;  %1608 = vadd.xlane.f32.xlu1 %v4279_v58  ;;  %1544 = vadd.xlane.f32.xlu2 %v4281_v29  ;;  %v2287_v60 = vunpack.c.l.b16 %v1820_v51  ;;  %v1788_v49 = vpack.c.bf16 %v1724_v0, %v1724_v0 }
 0x224   : > { %1574 = vadd.xlane.f32.xlu0 %v4283_v26  ;;  %v2143_v59 = vunpack.c.l.b16 %v1805_v25 }
 0x225   : > { %v2302_v46 = vpack.c.b16 %v2288_v61, %v2287_v60  ;;  %v1525_v36 = vpop.xlane.xlu0 %1524  ;;  %v1997_v21 = vunpack.c.l.b16 %v1788_v49 }
 0x226   : > { %v3325_v4 = vpop.eup %3324  ;;  %v1619_v50 = vpop.xlane.xlu2 %1618  ;;  %v2157_v12 = vpack.c.b16 %v2143_v59, %v2142_v3 }
 0x227   : > { %v1555_v57 = vpop.xlane.xlu1 %1554  ;;  %v1725_v40 = vmul.f32 %v3325_v4, %v3964_v33  ;;  %v3327_v43 = vpop.eup %3326 }
 0x228   : > { %3330 = vrcp.f32 %v1555_v57  ;;  %2233 = vmatmul.bf16.gmra.mxu2 %v2157_v12  ;;  %2378 = vmatmul.bf16.gmra.mxu3 %v2302_v46  ;;  %v4290_v45 = vpop.eup %3328  ;;  %v1710_v27 = vmul.f32 %v3327_v43, %v3962_v8 }
 0x229   : > { %3332 = vrcp.f32 %v1525_v36  ;;  %v1789_v55 = vpack.c.bf16 %v1725_v40, %v1725_v40 }
 0x22a   : > { %3334 = vrcp.f32 %v1587_v38  ;;  %v1774_v16 = vpack.c.bf16 %v1710_v27, %v1710_v27 }
 0x22b   : > { %3336 = vrcp.f32 %v1619_v50  ;;  %1576 = vadd.xlane.f32.xlu1 %v4290_v45  ;;  %v1998_v35 = vunpack.c.l.b16 %v1789_v55 }
 0x22c   : > { %v1854_v44 = vunpack.c.l.b16 %v1774_v16 }
 0x22d   : > { %v2012_v54 = vpack.c.b16 %v1998_v35, %v1997_v21  ;;  %v1621_v13 = vpop.xlane.xlu0 %1620 }
 0x22e   : > { %v3331_v18 = vpop.eup %3330  ;;  %v1557_v33 = vpop.xlane.xlu2 %1556 }
 0x22f   : > { %v1589_v47 = vpop.xlane.xlu1 %1588  ;;  %v3333_v10 = vpop.eup %3332  ;;  %3338 = vrcp.f32 %v1557_v33  ;;  %2088 = vmatmul.bf16.gmra.mxu1 %v2012_v54  ;;  %v1726_v63 = vmul.f32 %v3331_v18, %v3987_v30 }
 0x230   : > { %v3335_v20 = vpop.eup %3334  ;;  %3340 = vrcp.f32 %v1589_v47  ;;  %v1711_v37 = vmul.f32 %v3333_v10, %v3991_v19 }
 0x231   : > { %v3337_v41 = vpop.eup %3336  ;;  %3342 = vrcp.f32 %v1621_v13  ;;  %v1742_v8 = vmul.f32 %v3335_v20, %v3966_v56  ;;  %v1790_v19 = vpack.c.bf16 %v1726_v63, %v1726_v63 }
 0x232   : > { %v1775_v38 = vpack.c.bf16 %v1711_v37, %v1711_v37  ;;  %v1758_v6 = vmul.f32 %v3337_v41, %v3989_v9 }
 0x233   : > { %v1806_v50 = vpack.c.bf16 %v1742_v8, %v1742_v8  ;;  %v1999_v12 = vunpack.c.l.b16 %v1790_v19 }
 0x234   : > { %v1855_v53 = vunpack.c.l.b16 %v1775_v38  ;;  %v1822_v57 = vpack.c.bf16 %v1758_v6, %v1758_v6 }
 0x235   : > { %v3339_v7 = vpop.eup %3338  ;;  %v1527_v59 = vpop.xlane.xlu0 %1526  ;;  %v2144_v40 = vunpack.c.l.b16 %v1806_v50 }
 0x236   : > { %v3341_v51 = vpop.eup %3340  ;;  %v1559_v25 = vpop.xlane.xlu2 %1558  ;;  %v1868_v60 = vpack.c.b16 %v1855_v53, %v1854_v44  ;;  %v1727_v0 = vmul.f32 %v3339_v7, %v4010_v24  ;;  %v2289_v43 = vunpack.c.l.b16 %v1822_v57 }
 0x237   : > { %v1591_v61 = vpop.xlane.xlu1 %1590  ;;  %v3343_v3 = vpop.eup %3342  ;;  %v1743_v4 = vmul.f32 %v3341_v51, %v4008_v17 }
 0x238   : > { %1948 = vmatmul.bf16.gmra.mxu0 %v1868_v60  ;;  %v1791_v30 = vpack.c.bf16 %v1727_v0, %v1727_v0  ;;  %v1759_v56 = vmul.f32 %v3343_v3, %v4012_v1  ;;  %3344 = vrcp.f32 %v1591_v61  ;;  %v4594_v0 = vld [vmem:[#allocation26_spill] sm:$0xff] }
 0x239   : > { %v1807_v9 = vpack.c.bf16 %v1743_v4, %v1743_v4  ;;  %3346 = vrcp.f32 %v1527_v59 }
 0x23a   : > { %v2000_v46 = vunpack.c.l.b16 %v1791_v30  ;;  %v1823_v36 = vpack.c.bf16 %v1759_v56, %v1759_v56  ;;  %v4595_v30 = vld [vmem:[#allocation27_spill] sm:$0xff] }
 0x23b   : > { %v2145_v49 = vunpack.c.l.b16 %v1807_v9  ;;  %v4596_v9 = vld [vmem:[#allocation29_spill] sm:$0xff] }
 0x23c   : > { %v2013_v24 = vpack.c.b16 %v2000_v46, %v1999_v12  ;;  %v2290_v55 = vunpack.c.l.b16 %v1823_v36 }
 0x23d   : > { %v2158_v21 = vpack.c.b16 %v2145_v49, %v2144_v40  ;;  %v1623_v1 = vpop.xlane.xlu0 %1622 }
 0x23e   : > { %v1593_v35 = vpop.xlane.xlu2 %1592  ;;  %v2303_v27 = vpack.c.b16 %v2290_v55, %v2289_v43  ;;  %v3345_v54 = vpop.eup %3344 }
 0x23f   : > { %v1529_v17 = vpop.xlane.xlu1 %1528  ;;  %3348 = vrcp.f32 %v1593_v35  ;;  %2093 = vmatmul.bf16.gmra.mxu1 %v2013_v24  ;;  %2238 = vmatmul.bf16.gmra.mxu2 %v2158_v21  ;;  %v3347_v18 = vpop.eup %3346  ;;  %v1744_v33 = vmul.f32 %v3345_v54, %v4035_v23 }
 0x240   : > { %3350 = vrcp.f32 %v1529_v17  ;;  %2383 = vmatmul.bf16.gmra.mxu3 %v2303_v27  ;;  %v1712_v47 = vmul.f32 %v3347_v18, %v4037_v28 }
 0x241   : > { %3352 = vrcp.f32 %v1623_v1  ;;  %v1808_v41 = vpack.c.bf16 %v1744_v33, %v1744_v33  ;;  %v4597_v1 = vld [vmem:[#allocation4_spill] sm:$0xff] }
 0x242   : > { %3354 = vrcp.f32 %v1559_v25  ;;  %v1776_v8 = vpack.c.bf16 %v1712_v47, %v1712_v47  ;;  %v4598_v47 = vld [vmem:[#allocation6_spill] sm:$0xff] }
 0x243   : > { %v2146_v7 = vunpack.c.l.b16 %v1808_v41 }
 0x244   : > { %v1856_v28 = vunpack.c.l.b16 %v1776_v8 }
 0x245   : > { %v3349_v10 = vpop.eup %3348  ;;  %v1561_v38 = vpop.xlane.xlu0 %1560 }
 0x246   : > { %v3351_v13 = vpop.eup %3350  ;;  %v1595_v20 = vpop.xlane.xlu2 %1594  ;;  %v1745_v16 = vmul.f32 %v3349_v10, %v4054_v2 }
 0x247   : > { %v1625_v37 = vpop.xlane.xlu1 %1624  ;;  %v1713_v63 = vmul.f32 %v3351_v13, %v4056_v14  ;;  %v3353_v44 = vpop.eup %3352 }
 0x248   : > { %3356 = vrcp.f32 %v1625_v37  ;;  %v1809_v53 = vpack.c.bf16 %v1745_v16, %v1745_v16  ;;  %v3355_v6 = vpop.eup %3354  ;;  %v1760_v61 = vmul.f32 %v3353_v44, %v4058_v11 }
 0x249   : > { %3358 = vrcp.f32 %v1561_v38  ;;  %v1777_v23 = vpack.c.bf16 %v1713_v63, %v1713_v63  ;;  %v1728_v2 = vmul.f32 %v3355_v6, %v4594_v0  ;;  %v4599_v38 = vld [vmem:[#allocation28_spill] sm:$0xff] }
 0x24a   : > { %v2147_v51 = vunpack.c.l.b16 %v1809_v53  ;;  %v1824_v57 = vpack.c.bf16 %v1760_v61, %v1760_v61  ;;  %v4601_v61 = vld [vmem:[#allocation2_spill] sm:$0xff] }
 0x24b   : > { %v1857_v25 = vunpack.c.l.b16 %v1777_v23  ;;  %v1792_v46 = vpack.c.bf16 %v1728_v2, %v1728_v2 }
 0x24c   : > { %v2159_v60 = vpack.c.b16 %v2147_v51, %v2146_v7  ;;  %v2291_v40 = vunpack.c.l.b16 %v1824_v57  ;;  %v4600_v7 = vld [vmem:[#allocation3_spill] sm:$0xff] }
 0x24d   : > { %v1869_v19 = vpack.c.b16 %v1857_v25, %v1856_v28  ;;  %v1563_v50 = vpop.xlane.xlu0 %1562  ;;  %v2001_v24 = vunpack.c.l.b16 %v1792_v46 }
 0x24e   : > { %v3357_v3 = vpop.eup %3356  ;;  %v1533_v59 = vpop.xlane.xlu2 %1532 }
 0x24f   : > { %v1531_v14 = vpop.xlane.xlu1 %1530  ;;  %v3359_v4 = vpop.eup %3358  ;;  %3360 = vrcp.f32 %v1533_v59  ;;  %1953 = vmatmul.bf16.gmra.mxu0 %v1869_v19  ;;  %2243 = vmatmul.bf16.gmra.mxu2 %v2159_v60  ;;  %v1761_v56 = vmul.f32 %v3357_v3, %v4595_v30  ;;  %v4602_v19 = vld [vmem:[#allocation9_spill] sm:$0xff] }
 0x250   : > { %3362 = vrcp.f32 %v1531_v14  ;;  %v1729_v12 = vmul.f32 %v3359_v4, %v4596_v9 }
 0x251   : > { %v1825_v11 = vpack.c.bf16 %v1761_v56, %v1761_v56  ;;  %3364 = vrcp.f32 %v1595_v20  ;;  %v4603_v56 = vld [vmem:[#allocation30_spill] sm:$0xff] }
 0x252   : > { %v1793_v36 = vpack.c.bf16 %v1729_v12, %v1729_v12 }
 0x253   : > { %v2292_v49 = vunpack.c.l.b16 %v1825_v11 }
 0x254   : > { %v2002_v43 = vunpack.c.l.b16 %v1793_v36 }
 0x255   : > { %v3361_v55 = vpop.eup %3360  ;;  %v2304_v21 = vpack.c.b16 %v2292_v49, %v2291_v40  ;;  %v1597_v33 = vpop.xlane.xlu0 %1596 }
 0x256   : > { %v3363_v35 = vpop.eup %3362  ;;  %v1629_v17 = vpop.xlane.xlu2 %1628  ;;  %v2014_v54 = vpack.c.b16 %v2002_v43, %v2001_v24  ;;  %v1715_v18 = vmul.f32 %v3361_v55, %v4597_v1  ;;  %v4604_v43 = vld [vmem:[#allocation5_spill] sm:$0xff] }
 0x257   : > { %v1627_v27 = vpop.xlane.xlu1 %1626  ;;  %3366 = vrcp.f32 %v1629_v17  ;;  %2388 = vmatmul.bf16.gmra.mxu3 %v2304_v21  ;;  %v1714_v10 = vmul.f32 %v3363_v35, %v4598_v47  ;;  %v3365_v20 = vpop.eup %3364 }
 0x258   : > { %3368 = vrcp.f32 %v1627_v27  ;;  %2098 = vmatmul.bf16.gmra.mxu1 %v2014_v54  ;;  %v1779_v13 = vpack.c.bf16 %v1715_v18, %v1715_v18  ;;  %v1746_v63 = vmul.f32 %v3365_v20, %v4599_v38 }
 0x259   : > { %3370 = vrcp.f32 %v1597_v33  ;;  %v1778_v37 = vpack.c.bf16 %v1714_v10, %v1714_v10 }
 0x25a   : > { %3372 = vrcp.f32 %v1563_v50  ;;  %v1859_v16 = vunpack.c.l.b16 %v1779_v13  ;;  %v1810_v59 = vpack.c.bf16 %v1746_v63, %v1746_v63  ;;  %v4606_v63 = vld [vmem:[#allocation14_spill] sm:$0xff] }
 0x25b   : > { %v1858_v41 = vunpack.c.l.b16 %v1778_v37 }
 0x25c   : > { %v2148_v9 = vunpack.c.l.b16 %v1810_v59 }
 0x25d   : > { %v3367_v8 = vpop.eup %3366  ;;  %v1870_v44 = vpack.c.b16 %v1859_v16, %v1858_v41  ;;  %v1535_v25 = vpop.xlane.xlu0 %1534  ;;  %v4605_v41 = vld [vmem:[#allocation12_spill] sm:$0xff] }
 0x25e   : > { %v3369_v53 = vpop.eup %3368  ;;  %v1567_v6 = vpop.xlane.xlu2 %1566  ;;  %v1763_v51 = vmul.f32 %v3367_v8, %v4600_v7 }
 0x25f   : > { %v1565_v23 = vpop.xlane.xlu1 %1564  ;;  %v3371_v28 = vpop.eup %3370  ;;  %1958 = vmatmul.bf16.gmra.mxu0 %v1870_v44  ;;  %v1762_v60 = vmul.f32 %v3369_v53, %v4601_v61  ;;  %v4607_v44 = vld [vmem:[#allocation11_spill] sm:$0xff] }
 0x260   : > { %v3373_v0 = vpop.eup %3372  ;;  %3374 = vrcp.f32 %v1565_v23  ;;  %v1827_v2 = vpack.c.bf16 %v1763_v51, %v1763_v51  ;;  %v1747_v3 = vmul.f32 %v3371_v28, %v4602_v19 }
 0x261   : > { %v1826_v14 = vpack.c.bf16 %v1762_v60, %v1762_v60  ;;  %v1730_v57 = vmul.f32 %v3373_v0, %v4603_v56  ;;  %3376 = vrcp.f32 %v1567_v6  ;;  %v4608_v6 = vld [vmem:[#allocation10_spill] sm:$0xff] }
 0x262   : > { %v2294_v4 = vunpack.c.l.b16 %v1827_v2  ;;  %v1811_v50 = vpack.c.bf16 %v1747_v3, %v1747_v3  ;;  %v4609_v3 = vld [vmem:[#allocation7_spill] sm:$0xff] }
 0x263   : > { %v2293_v30 = vunpack.c.l.b16 %v1826_v14  ;;  %v1794_v21 = vpack.c.bf16 %v1730_v57, %v1730_v57 }
 0x264   : > { %v2149_v12 = vunpack.c.l.b16 %v1811_v50  ;;  %v4610_v50 = vld [vmem:[#allocation15_spill] sm:$0xff] }
 0x265   : > { %v2305_v46 = vpack.c.b16 %v2294_v4, %v2293_v30  ;;  %v1569_v24 = vpop.xlane.xlu0 %1568  ;;  %v2003_v17 = vunpack.c.l.b16 %v1794_v21 }
 0x266   : > { %v3375_v11 = vpop.eup %3374  ;;  %v1599_v36 = vpop.xlane.xlu2 %1598  ;;  %v2160_v49 = vpack.c.b16 %v2149_v12, %v2148_v9 }
 0x267   : > { %v1631_v40 = vpop.xlane.xlu1 %1630  ;;  %2393 = vmatmul.bf16.gmra.mxu3 %v2305_v46  ;;  %v1731_v55 = vmul.f32 %v3375_v11, %v4604_v43  ;;  %v3377_v54 = vpop.eup %3376 }
 0x268   : > { %3378 = vrcp.f32 %v1631_v40  ;;  %2248 = vmatmul.bf16.gmra.mxu2 %v2160_v49  ;;  %v1732_v53 = vmul.f32 %v3377_v54, %v4607_v44 }
 0x269   : > { %3380 = vrcp.f32 %v1569_v24  ;;  %v1795_v35 = vpack.c.bf16 %v1731_v55, %v1731_v55 }
 0x26a   : > { %3382 = vrcp.f32 %v1535_v25  ;;  %v1796_v14 = vpack.c.bf16 %v1732_v53, %v1732_v53 }
 0x26b   : > { %3384 = vrcp.f32 %v1599_v36  ;;  %v2004_v27 = vunpack.c.l.b16 %v1795_v35 }
 0x26d   : > { %v2015_v1 = vpack.c.b16 %v2004_v27, %v2003_v17  ;;  %v1601_v13 = vpop.xlane.xlu0 %1600 }
 0x26e   : > { %v3379_v18 = vpop.eup %3378  ;;  %v1633_v33 = vpop.xlane.xlu2 %1632 }
 0x26f   : > { %v1537_v47 = vpop.xlane.xlu1 %1536  ;;  %v3381_v10 = vpop.eup %3380  ;;  %3386 = vrcp.f32 %v1633_v33  ;;  %2103 = vmatmul.bf16.gmra.mxu1 %v2015_v1  ;;  %v1764_v38 = vmul.f32 %v3379_v18, %v4605_v41  ;;  %v4611_v33 = vld [vmem:[#allocation17_spill] sm:$0xff] }
 0x270   : > { %v3383_v20 = vpop.eup %3382  ;;  %3388 = vrcp.f32 %v1537_v47  ;;  %v1733_v16 = vmul.f32 %v3381_v10, %v4182_v34 }
 0x271   : > { %v3385_v37 = vpop.eup %3384  ;;  %3390 = vrcp.f32 %v1601_v13  ;;  %v1716_v8 = vmul.f32 %v3383_v20, %v4606_v63  ;;  %v1828_v0 = vpack.c.bf16 %v1764_v38, %v1764_v38 }
 0x272   : > { %v1748_v23 = vmul.f32 %v3385_v37, %v4608_v6  ;;  %v1797_v51 = vpack.c.bf16 %v1733_v16, %v1733_v16 }
 0x273   : > { %v1780_v59 = vpack.c.bf16 %v1716_v8, %v1716_v8  ;;  %v2295_v12 = vunpack.c.l.b16 %v1828_v0 }
 0x274   : > { %v1812_v56 = vpack.c.bf16 %v1748_v23, %v1748_v23  ;;  %v2006_v9 = vunpack.c.l.b16 %v1797_v51 }
 0x275   : > { %v3387_v7 = vpop.eup %3386  ;;  %v1635_v19 = vpop.xlane.xlu0 %1634  ;;  %v1860_v36 = vunpack.c.l.b16 %v1780_v59 }
 0x276   : > { %v3389_v28 = vpop.eup %3388  ;;  %v1539_v25 = vpop.xlane.xlu2 %1538  ;;  %v1765_v60 = vmul.f32 %v3387_v7, %v4198_v52  ;;  %v2005_v52 = vunpack.c.l.b16 %v1796_v14  ;;  %v2150_v24 = vunpack.c.l.b16 %v1812_v56  ;;  %v4612_v7 = vld [vmem:[#allocation19_spill] sm:$0xff] }
 0x277   : > { %v1571_v61 = vpop.xlane.xlu1 %1570  ;;  %v3391_v2 = vpop.eup %3390  ;;  %v1717_v34 = vmul.f32 %v3389_v28, %v4609_v3  ;;  %3392 = vrcp.f32 %v1539_v25 }
 0x278   : > { %v1829_v4 = vpack.c.bf16 %v1765_v60, %v1765_v60  ;;  %v1749_v30 = vmul.f32 %v3391_v2, %v4610_v50  ;;  %v2016_v21 = vpack.c.b16 %v2006_v9, %v2005_v52  ;;  %3394 = vrcp.f32 %v1571_v61  ;;  %v4613_v60 = vld [vmem:[#allocation8_spill] sm:$0xff] }
 0x279   : > { %v1781_v57 = vpack.c.bf16 %v1717_v34, %v1717_v34 }
 0x27a   : > { %v2296_v46 = vunpack.c.l.b16 %v1829_v4  ;;  %v1813_v11 = vpack.c.bf16 %v1749_v30, %v1749_v30 }
 0x27b   : > { %v1861_v40 = vunpack.c.l.b16 %v1781_v57 }
 0x27c   : > { %v2306_v49 = vpack.c.b16 %v2296_v46, %v2295_v12  ;;  %v2151_v43 = vunpack.c.l.b16 %v1813_v11 }
 0x27d   : > { %v1871_v55 = vpack.c.b16 %v1861_v40, %v1860_v36  ;;  %v3393_v1 = vpop.eup %3392 }
 0x27e   : > { %v1605_v35 = vpop.xlane.xlu2 %1604  ;;  %2398 = vmatmul.bf16.gmra.mxu3 %v2306_v49  ;;  %v2161_v27 = vpack.c.b16 %v2151_v43, %v2150_v24  ;;  %v3395_v18 = vpop.eup %3394  ;;  %v1718_v47 = vmul.f32 %v3393_v1, %v4611_v33 }
 0x27f   : > { %v1603_v17 = vpop.xlane.xlu1 %1602  ;;  %3396 = vrcp.f32 %v1605_v35  ;;  %1963 = vmatmul.bf16.gmra.mxu0 %v1871_v55  ;;  %2108 = vmatmul.bf16.gmra.mxu1 %v2016_v21  ;;  %v1541_v54 = vpop.xlane.xlu0 %1540  ;;  %v1734_v51 = vmul.f32 %v3395_v18, %v4612_v7 }
 0x280   : > { %3398 = vrcp.f32 %v1603_v17  ;;  %2253 = vmatmul.bf16.gmra.mxu2 %v2161_v27  ;;  %v1782_v53 = vpack.c.bf16 %v1718_v47, %v1718_v47 }
 0x281   : > { %3400 = vrcp.f32 %v1541_v54  ;;  %v1798_v34 = vpack.c.bf16 %v1734_v51, %v1734_v51 }
 0x282   : > { %3402 = vrcp.f32 %v1635_v19  ;;  %v1862_v0 = vunpack.c.l.b16 %v1782_v53 }
 0x283   : > { %v2007_v40 = vunpack.c.l.b16 %v1798_v34 }
 0x285   : > { %v3397_v10 = vpop.eup %3396 }
 0x286   : > { %v3399_v13 = vpop.eup %3398  ;;  %v1573_v20 = vpop.xlane.xlu2 %1572  ;;  %v1751_v16 = vmul.f32 %v3397_v10, %v4230_v42 }
 0x287   : > { %v1637_v37 = vpop.xlane.xlu1 %1636  ;;  %v3401_v41 = vpop.eup %3400  ;;  %3404 = vrcp.f32 %v1573_v20  ;;  %v1750_v63 = vmul.f32 %v3399_v13, %v4224_v32 }
 0x288   : > { %v1607_v38 = vpop.xlane.xlu0 %1606  ;;  %v3403_v8 = vpop.eup %3402  ;;  %3406 = vrcp.f32 %v1637_v37  ;;  %v1719_v44 = vmul.f32 %v3401_v41, %v4234_v62  ;;  %v1815_v6 = vpack.c.bf16 %v1751_v16, %v1751_v16 }
 0x289   : > { %v1814_v23 = vpack.c.bf16 %v1750_v63, %v1750_v63  ;;  %v1766_v42 = vmul.f32 %v3403_v8, %v4613_v60  ;;  %3408 = vrcp.f32 %v1607_v38 }
 0x28a   : > { %v1783_v28 = vpack.c.bf16 %v1719_v44, %v1719_v44  ;;  %v2153_v25 = vunpack.c.l.b16 %v1815_v6 }
 0x28b   : > { %v2152_v61 = vunpack.c.l.b16 %v1814_v23  ;;  %v1939_v32 = vpop.f32.mrf.mxu0  ;;  %v1830_v46 = vpack.c.bf16 %v1766_v42, %v1766_v42 }
 0x28c   : > { %v1863_v62 = vunpack.c.l.b16 %v1783_v28  ;;  %v2414_v19 = vpack.c.bf16 %v1939_v32, %v1939_v32 }
 0x28d   : > { %v3405_v2 = vpop.eup %3404  ;;  %v2084_v3 = vpop.f32.mrf.mxu1  ;;  %v2162_v56 = vpack.c.b16 %v2153_v25, %v2152_v61 }
 0x28e   : > { %v3407_v59 = vpop.eup %3406  ;;  %v2430_v14 = vpack.c.bf16 %v2084_v3, %v2084_v3  ;;  %v1639_v4 = vpop.xlane.xlu2 %1638  ;;  %v1872_v30 = vpack.c.b16 %v1863_v62, %v1862_v0  ;;  %v1735_v57 = vmul.f32 %v3405_v2, %v4249_v39  ;;  %2479 = vst.msk [vmem:[%s4335_s27] sm:$0xf] %vm2478_vm1, %v2414_v19  ;;  %v2297_v39 = vunpack.c.l.b16 %v1830_v46 }
 0x28f   : > { %v1543_v50 = vpop.xlane.xlu1 %1542  ;;  %v1767_v12 = vmul.f32 %v3407_v59, %v4246_v48  ;;  %v3409_v55 = vpop.eup %3408 }
 0x290   : > { %v1641_v9 = vpop.xlane.xlu0 %1640  ;;  %2495 = vst.msk [vmem:[%s4335_s27 + $0x40] sm:$0xf] %vm2478_vm1, %v2430_v14  ;;  %3410 = vrcp.f32 %v1543_v50  ;;  %1968 = vmatmul.bf16.gmra.mxu0 %v1872_v30  ;;  %2258 = vmatmul.bf16.gmra.mxu2 %v2162_v56  ;;  %v1799_v11 = vpack.c.bf16 %v1735_v57, %v1735_v57  ;;  %v1752_v41 = vmul.f32 %v3409_v55, %v4251_v22 }
 0x291   : > { %3412 = vrcp.f32 %v1641_v9  ;;  %v1831_v36 = vpack.c.bf16 %v1767_v12, %v1767_v12 }
 0x292   : > { %3414 = vrcp.f32 %v1639_v4  ;;  %v2008_v52 = vunpack.c.l.b16 %v1799_v11 }
 0x293   : > { %v2298_v49 = vunpack.c.l.b16 %v1831_v36  ;;  %v1941_v24 = vpop.f32.mrf.mxu0 }
 0x294   : > { %v2017_v43 = vpack.c.b16 %v2008_v52, %v2007_v40  ;;  %v2415_v48 = vpack.c.bf16 %v1941_v24, %v1941_v24 }
 0x295   : > { %v2086_v21 = vpop.f32.mrf.mxu1  ;;  %v2307_v35 = vpack.c.b16 %v2298_v49, %v2297_v39 }
 0x296   : > { %v3411_v17 = vpop.eup %3410  ;;  %v2431_v27 = vpack.c.bf16 %v2086_v21, %v2086_v21  ;;  %v1545_v54 = vpop.xlane.xlu2 %1544  ;;  %2113 = vmatmul.bf16.gmra.mxu1 %v2017_v43  ;;  %2480 = vst.msk [vmem:[%s4335_s27 + $0x4] sm:$0xf] %vm2478_vm1, %v2415_v48 }
 0x297   : > { %v1609_v1 = vpop.xlane.xlu1 %1608  ;;  %v3413_v18 = vpop.eup %3412  ;;  %3416 = vrcp.f32 %v1545_v54  ;;  %2403 = vmatmul.bf16.gmra.mxu3 %v2307_v35  ;;  %v1720_v20 = vmul.f32 %v3411_v17, %v4264_v31 }
 0x298   : > { %v1575_v33 = vpop.xlane.xlu0 %1574  ;;  %v3415_v47 = vpop.eup %3414  ;;  %2496 = vst.msk [vmem:[%s4335_s27 + $0x44] sm:$0xf] %vm2478_vm1, %v2431_v27  ;;  %3418 = vrcp.f32 %v1609_v1  ;;  %v1769_v10 = vmul.f32 %v3413_v18, %v4268_v5 }
 0x299   : > { %3420 = vrcp.f32 %v1575_v33  ;;  %v2229_v13 = vpop.f32.mrf.mxu2  ;;  %v1768_v38 = vmul.f32 %v3415_v47, %v4266_v15  ;;  %v1784_v7 = vpack.c.bf16 %v1720_v20, %v1720_v20  ;;  %v1816_v15 = vpack.c.bf16 %v1752_v41, %v1752_v41 }
 0x29a   : > { %v2446_v37 = vpack.c.bf16 %v2229_v13, %v2229_v13  ;;  %v1833_v6 = vpack.c.bf16 %v1769_v10, %v1769_v10 }
 0x29b   : > { %v2374_v16 = vpop.f32.mrf.mxu3  ;;  %v1832_v28 = vpack.c.bf16 %v1768_v38, %v1768_v38  ;;  %v2154_v19 = vunpack.c.l.b16 %v1816_v15 }
 0x29c   : > { %v1944_v63 = vpop.f32.mrf.mxu0  ;;  %v2462_v8 = vpack.c.bf16 %v2374_v16, %v2374_v16  ;;  %2511 = vst.msk [vmem:[%s4335_s27 + $0x80] sm:$0xf] %vm2478_vm1, %v2446_v37  ;;  %v2300_v60 = vunpack.c.l.b16 %v1833_v6 }
 0x29d   : > { %v3417_v44 = vpop.eup %3416  ;;  %v2416_v53 = vpack.c.bf16 %v1944_v63, %v1944_v63  ;;  %v2299_v34 = vunpack.c.l.b16 %v1832_v28 }
 0x29e   : > { %v3419_v23 = vpop.eup %3418  ;;  %v1721_v5 = vmul.f32 %v3417_v44, %v4281_v29  ;;  %2527 = vst.msk [vmem:[%s4335_s27 + $0xc0] sm:$0xf] %vm2478_vm1, %v2462_v8  ;;  %v1864_v29 = vunpack.c.l.b16 %v1784_v7 }
 0x29f   : > { %v1577_v31 = vpop.xlane.xlu1 %1576  ;;  %v3421_v51 = vpop.eup %3420  ;;  %2481 = vst.msk [vmem:[%s4335_s27 + $0x8] sm:$0xf] %vm2478_vm1, %v2416_v53  ;;  %v1753_v22 = vmul.f32 %v3419_v23, %v4279_v58  ;;  %v2308_v56 = vpack.c.b16 %v2300_v60, %v2299_v34 }
 0x2a0   : > { %3422 = vrcp.f32 %v1577_v31  ;;  %v1785_v25 = vpack.c.bf16 %v1721_v5, %v1721_v5  ;;  %v1736_v42 = vmul.f32 %v3421_v51, %v4283_v26 }
 0x2a1   : > { %v1817_v61 = vpack.c.bf16 %v1753_v22, %v1753_v22  ;;  %v2231_v32 = vpop.f32.mrf.mxu2 }
 0x2a2   : > { %v1865_v0 = vunpack.c.l.b16 %v1785_v25  ;;  %v2447_v62 = vpack.c.bf16 %v2231_v32, %v2231_v32  ;;  %v1800_v57 = vpack.c.bf16 %v1736_v42, %v1736_v42 }
 0x2a3   : > { %v2376_v2 = vpop.f32.mrf.mxu3  ;;  %v2155_v3 = vunpack.c.l.b16 %v1817_v61 }
 0x2a4   : > { %v1946_v59 = vpop.f32.mrf.mxu0  ;;  %v2463_v58 = vpack.c.bf16 %v2376_v2, %v2376_v2  ;;  %v1873_v14 = vpack.c.b16 %v1865_v0, %v1864_v29  ;;  %2512 = vst.msk [vmem:[%s4335_s27 + $0x84] sm:$0xf] %vm2478_vm1, %v2447_v62  ;;  %v2009_v12 = vunpack.c.l.b16 %v1800_v57 }
 0x2a5   : > { %v2417_v50 = vpack.c.bf16 %v1946_v59, %v1946_v59  ;;  %v2163_v30 = vpack.c.b16 %v2155_v3, %v2154_v19 }
 0x2a6   : > { %v3423_v4 = vpop.eup %3422  ;;  %2528 = vst.msk [vmem:[%s4335_s27 + $0xc4] sm:$0xf] %vm2478_vm1, %v2463_v58  ;;  %1973 = vmatmul.bf16.gmra.mxu0 %v1873_v14 }
 0x2a7   : > { %v1737_v26 = vmul.f32 %v3423_v4, %v4290_v45  ;;  %2482 = vst.msk [vmem:[%s4335_s27 + $0xc] sm:$0xf] %vm2478_vm1, %v2417_v50  ;;  %2263 = vmatmul.bf16.gmra.mxu2 %v2163_v30  ;;  %2408 = vmatmul.bf16.gmra.mxu3 %v2308_v56 }
 0x2a9   : > { %v1801_v9 = vpack.c.bf16 %v1737_v26, %v1737_v26 }
 0x2ab   : > { %v2010_v46 = vunpack.c.l.b16 %v1801_v9  ;;  %v2234_v11 = vpop.f32.mrf.mxu2  ;;  %v2379_v36 = vpop.f32.mrf.mxu3 }
 0x2ac   : > { %v2089_v40 = vpop.f32.mrf.mxu1  ;;  %v2448_v52 = vpack.c.bf16 %v2234_v11, %v2234_v11  ;;  %v2464_v45 = vpack.c.bf16 %v2379_v36, %v2379_v36 }
 0x2ad   : > { %v2018_v39 = vpack.c.b16 %v2010_v46, %v2009_v12  ;;  %v2432_v49 = vpack.c.bf16 %v2089_v40, %v2089_v40 }
 0x2ae   : > { %2513 = vst.msk [vmem:[%s4335_s27 + $0x88] sm:$0xf] %vm2478_vm1, %v2448_v52 }
 0x2af   : > { %2118 = vmatmul.bf16.gmra.mxu1 %v2018_v39  ;;  %2497 = vst.msk [vmem:[%s4335_s27 + $0x48] sm:$0xf] %vm2478_vm1, %v2432_v49 }
 0x2b0   : > { %2529 = vst.msk [vmem:[%s4335_s27 + $0xc8] sm:$0xf] %vm2478_vm1, %v2464_v45 }
 0x2b3   : > { %v2236_v24 = vpop.f32.mrf.mxu2  ;;  %v2381_v43 = vpop.f32.mrf.mxu3 }
 0x2b4   : > { %v2091_v55 = vpop.f32.mrf.mxu1  ;;  %v2449_v48 = vpack.c.bf16 %v2236_v24, %v2236_v24  ;;  %v2465_v21 = vpack.c.bf16 %v2381_v43, %v2381_v43 }
 0x2b5   : > { %v2433_v35 = vpack.c.bf16 %v2091_v55, %v2091_v55  ;;  %v1949_v17 = vpop.f32.mrf.mxu0 }
 0x2b6   : > { %2514 = vst.msk [vmem:[%s4335_s27 + $0x8c] sm:$0xf] %vm2478_vm1, %v2449_v48  ;;  %v2418_v27 = vpack.c.bf16 %v1949_v17, %v1949_v17 }
 0x2b7   : > { %2498 = vst.msk [vmem:[%s4335_s27 + $0x4c] sm:$0xf] %vm2478_vm1, %v2433_v35 }
 0x2b8   : > { %2530 = vst.msk [vmem:[%s4335_s27 + $0xcc] sm:$0xf] %vm2478_vm1, %v2465_v21 }
 0x2b9   : > { %2483 = vst.msk [vmem:[%s4335_s27 + $0x10] sm:$0xf] %vm2478_vm1, %v2418_v27 }
 0x2bc   : > { %v2094_v54 = vpop.f32.mrf.mxu1 }
 0x2bd   : > { %v2434_v1 = vpack.c.bf16 %v2094_v54, %v2094_v54  ;;  %v1951_v18 = vpop.f32.mrf.mxu0 }
 0x2be   : > { %v2419_v33 = vpack.c.bf16 %v1951_v18, %v1951_v18 }
 0x2bf   : > { %2499 = vst.msk [vmem:[%s4335_s27 + $0x50] sm:$0xf] %vm2478_vm1, %v2434_v1 }
 0x2c0   : > { %2484 = vst.msk [vmem:[%s4335_s27 + $0x14] sm:$0xf] %vm2478_vm1, %v2419_v33 }
 0x2c2   : > { %v2239_v47 = vpop.f32.mrf.mxu2 }
 0x2c3   : > { %v2450_v10 = vpack.c.bf16 %v2239_v47, %v2239_v47  ;;  %v2384_v13 = vpop.f32.mrf.mxu3 }
 0x2c4   : > { %v2096_v20 = vpop.f32.mrf.mxu1  ;;  %v2466_v37 = vpack.c.bf16 %v2384_v13, %v2384_v13 }
 0x2c5   : > { %2515 = vst.msk [vmem:[%s4335_s27 + $0x90] sm:$0xf] %vm2478_vm1, %v2450_v10  ;;  %v2435_v16 = vpack.c.bf16 %v2096_v20, %v2096_v20 }
 0x2c6   : > { %2531 = vst.msk [vmem:[%s4335_s27 + $0xd0] sm:$0xf] %vm2478_vm1, %v2466_v37 }
 0x2c7   : > { %2500 = vst.msk [vmem:[%s4335_s27 + $0x54] sm:$0xf] %vm2478_vm1, %v2435_v16 }
 0x2ca   : > { %v2241_v41 = vpop.f32.mrf.mxu2 }
 0x2cb   : > { %v2451_v38 = vpack.c.bf16 %v2241_v41, %v2241_v41  ;;  %v2386_v63 = vpop.f32.mrf.mxu3 }
 0x2cc   : > { %v1954_v8 = vpop.f32.mrf.mxu0  ;;  %v2467_v44 = vpack.c.bf16 %v2386_v63, %v2386_v63 }
 0x2cd   : > { %2516 = vst.msk [vmem:[%s4335_s27 + $0x94] sm:$0xf] %vm2478_vm1, %v2451_v38  ;;  %v2420_v53 = vpack.c.bf16 %v1954_v8, %v1954_v8 }
 0x2ce   : > { %2532 = vst.msk [vmem:[%s4335_s27 + $0xd4] sm:$0xf] %vm2478_vm1, %v2467_v44 }
 0x2cf   : > { %2485 = vst.msk [vmem:[%s4335_s27 + $0x18] sm:$0xf] %vm2478_vm1, %v2420_v53 }
 0x2d2   : > { %v2244_v6 = vpop.f32.mrf.mxu2 }
 0x2d3   : > { %v2452_v23 = vpack.c.bf16 %v2244_v6, %v2244_v6 }
 0x2d4   : > { %v1956_v5 = vpop.f32.mrf.mxu0 }
 0x2d5   : > { %2517 = vst.msk [vmem:[%s4335_s27 + $0x98] sm:$0xf] %vm2478_vm1, %v2452_v23  ;;  %v2421_v31 = vpack.c.bf16 %v1956_v5, %v1956_v5  ;;  %v2099_v7 = vpop.f32.mrf.mxu1 }
 0x2d6   : > { %v2436_v51 = vpack.c.bf16 %v2099_v7, %v2099_v7 }
 0x2d7   : > { %2486 = vst.msk [vmem:[%s4335_s27 + $0x1c] sm:$0xf] %vm2478_vm1, %v2421_v31 }
 0x2d8   : > { %2501 = vst.msk [vmem:[%s4335_s27 + $0x58] sm:$0xf] %vm2478_vm1, %v2436_v51 }
 0x2da   : > { %v2246_v22 = vpop.f32.mrf.mxu2  ;;  %v2389_v15 = vpop.f32.mrf.mxu3 }
 0x2db   : > { %v2453_v28 = vpack.c.bf16 %v2246_v22, %v2246_v22  ;;  %v2468_v25 = vpack.c.bf16 %v2389_v15, %v2389_v15 }
 0x2dc   : > { %v1959_v61 = vpop.f32.mrf.mxu0 }
 0x2dd   : > { %2518 = vst.msk [vmem:[%s4335_s27 + $0x9c] sm:$0xf] %vm2478_vm1, %v2453_v28  ;;  %v2422_v60 = vpack.c.bf16 %v1959_v61, %v1959_v61  ;;  %v2101_v42 = vpop.f32.mrf.mxu1 }
 0x2de   : > { %2533 = vst.msk [vmem:[%s4335_s27 + $0xd8] sm:$0xf] %vm2478_vm1, %v2468_v25  ;;  %v2437_v32 = vpack.c.bf16 %v2101_v42, %v2101_v42 }
 0x2df   : > { %2487 = vst.msk [vmem:[%s4335_s27 + $0x20] sm:$0xf] %vm2478_vm1, %v2422_v60 }
 0x2e0   : > { %2502 = vst.msk [vmem:[%s4335_s27 + $0x5c] sm:$0xf] %vm2478_vm1, %v2437_v32 }
 0x2e2   : > { %v2391_v29 = vpop.f32.mrf.mxu3 }
 0x2e3   : > { %v2469_v0 = vpack.c.bf16 %v2391_v29, %v2391_v29 }
 0x2e4   : > { %v1961_v62 = vpop.f32.mrf.mxu0 }
 0x2e5   : > { %2534 = vst.msk [vmem:[%s4335_s27 + $0xdc] sm:$0xf] %vm2478_vm1, %v2469_v0  ;;  %v2423_v2 = vpack.c.bf16 %v1961_v62, %v1961_v62 }
 0x2e7   : > { %2488 = vst.msk [vmem:[%s4335_s27 + $0x24] sm:$0xf] %vm2478_vm1, %v2423_v2 }
 0x2ea   : > { %v2394_v19 = vpop.f32.mrf.mxu3 }
 0x2eb   : > { %v2470_v3 = vpack.c.bf16 %v2394_v19, %v2394_v19  ;;  %v2249_v34 = vpop.f32.mrf.mxu2 }
 0x2ec   : > { %v2104_v59 = vpop.f32.mrf.mxu1  ;;  %v2454_v58 = vpack.c.bf16 %v2249_v34, %v2249_v34 }
 0x2ed   : > { %2535 = vst.msk [vmem:[%s4335_s27 + $0xe0] sm:$0xf] %vm2478_vm1, %v2470_v3  ;;  %v2438_v14 = vpack.c.bf16 %v2104_v59, %v2104_v59 }
 0x2ee   : > { %2519 = vst.msk [vmem:[%s4335_s27 + $0xa0] sm:$0xf] %vm2478_vm1, %v2454_v58 }
 0x2ef   : > { %2503 = vst.msk [vmem:[%s4335_s27 + $0x60] sm:$0xf] %vm2478_vm1, %v2438_v14 }
 0x2f2   : > { %v2396_v4 = vpop.f32.mrf.mxu3 }
 0x2f3   : > { %v2471_v50 = vpack.c.bf16 %v2396_v4, %v2396_v4  ;;  %v2251_v30 = vpop.f32.mrf.mxu2 }
 0x2f4   : > { %v2106_v56 = vpop.f32.mrf.mxu1  ;;  %v2455_v26 = vpack.c.bf16 %v2251_v30, %v2251_v30 }
 0x2f5   : > { %2536 = vst.msk [vmem:[%s4335_s27 + $0xe4] sm:$0xf] %vm2478_vm1, %v2471_v50  ;;  %v2439_v57 = vpack.c.bf16 %v2106_v56, %v2106_v56 }
 0x2f6   : > { %2520 = vst.msk [vmem:[%s4335_s27 + $0xa4] sm:$0xf] %vm2478_vm1, %v2455_v26 }
 0x2f7   : > { %2504 = vst.msk [vmem:[%s4335_s27 + $0x64] sm:$0xf] %vm2478_vm1, %v2439_v57 }
 0x2fc   : > { %v1964_v9 = vpop.f32.mrf.mxu0  ;;  %v2109_v12 = vpop.f32.mrf.mxu1 }
 0x2fd   : > { %v2424_v46 = vpack.c.bf16 %v1964_v9, %v1964_v9  ;;  %v2440_v11 = vpack.c.bf16 %v2109_v12, %v2109_v12 }
 0x2ff   : > { %2489 = vst.msk [vmem:[%s4335_s27 + $0x28] sm:$0xf] %vm2478_vm1, %v2424_v46 }
 0x300   : > { %2505 = vst.msk [vmem:[%s4335_s27 + $0x68] sm:$0xf] %vm2478_vm1, %v2440_v11 }
 0x301   : > { %v2399_v36 = vpop.f32.mrf.mxu3 }
 0x302   : > { %v2472_v40 = vpack.c.bf16 %v2399_v36, %v2399_v36 }
 0x303   : > { %v2254_v52 = vpop.f32.mrf.mxu2 }
 0x304   : > { %2537 = vst.msk [vmem:[%s4335_s27 + $0xe8] sm:$0xf] %vm2478_vm1, %v2472_v40  ;;  %v1966_v45 = vpop.f32.mrf.mxu0  ;;  %v2111_v39 = vpop.f32.mrf.mxu1  ;;  %v2456_v49 = vpack.c.bf16 %v2254_v52, %v2254_v52 }
 0x305   : > { %v2425_v24 = vpack.c.bf16 %v1966_v45, %v1966_v45  ;;  %v2441_v43 = vpack.c.bf16 %v2111_v39, %v2111_v39 }
 0x306   : > { %2521 = vst.msk [vmem:[%s4335_s27 + $0xa8] sm:$0xf] %vm2478_vm1, %v2456_v49 }
 0x307   : > { %2490 = vst.msk [vmem:[%s4335_s27 + $0x2c] sm:$0xf] %vm2478_vm1, %v2425_v24 }
 0x308   : > { %2506 = vst.msk [vmem:[%s4335_s27 + $0x6c] sm:$0xf] %vm2478_vm1, %v2441_v43 }
 0x309   : > { %v2401_v55 = vpop.f32.mrf.mxu3 }
 0x30a   : > { %v2473_v48 = vpack.c.bf16 %v2401_v55, %v2401_v55 }
 0x30b   : > { %v2256_v21 = vpop.f32.mrf.mxu2 }
 0x30c   : > { %2538 = vst.msk [vmem:[%s4335_s27 + $0xec] sm:$0xf] %vm2478_vm1, %v2473_v48  ;;  %v2457_v35 = vpack.c.bf16 %v2256_v21, %v2256_v21 }
 0x30d   : > { %v1969_v17 = vpop.f32.mrf.mxu0 }
 0x30e   : > { %2522 = vst.msk [vmem:[%s4335_s27 + $0xac] sm:$0xf] %vm2478_vm1, %v2457_v35  ;;  %v2426_v27 = vpack.c.bf16 %v1969_v17, %v1969_v17 }
 0x310   : > { %2491 = vst.msk [vmem:[%s4335_s27 + $0x30] sm:$0xf] %vm2478_vm1, %v2426_v27 }
 0x313   : > { %v2114_v54 = vpop.f32.mrf.mxu1  ;;  %v2259_v1 = vpop.f32.mrf.mxu2 }
 0x314   : > { %v2442_v18 = vpack.c.bf16 %v2114_v54, %v2114_v54  ;;  %v2458_v33 = vpack.c.bf16 %v2259_v1, %v2259_v1 }
 0x315   : > { %v1971_v47 = vpop.f32.mrf.mxu0 }
 0x316   : > { %2507 = vst.msk [vmem:[%s4335_s27 + $0x70] sm:$0xf] %vm2478_vm1, %v2442_v18  ;;  %v2427_v10 = vpack.c.bf16 %v1971_v47, %v1971_v47 }
 0x317   : > { %2523 = vst.msk [vmem:[%s4335_s27 + $0xb0] sm:$0xf] %vm2478_vm1, %v2458_v33 }
 0x318   : > { %2492 = vst.msk [vmem:[%s4335_s27 + $0x34] sm:$0xf] %vm2478_vm1, %v2427_v10 }
 0x31a   : > { %v2404_v13 = vpop.f32.mrf.mxu3 }
 0x31b   : > { %v2474_v20 = vpack.c.bf16 %v2404_v13, %v2404_v13  ;;  %v2116_v37 = vpop.f32.mrf.mxu1  ;;  %v2261_v16 = vpop.f32.mrf.mxu2 }
 0x31c   : > { %v2443_v41 = vpack.c.bf16 %v2116_v37, %v2116_v37  ;;  %v2459_v38 = vpack.c.bf16 %v2261_v16, %v2261_v16 }
 0x31d   : > { %2539 = vst.msk [vmem:[%s4335_s27 + $0xf0] sm:$0xf] %vm2478_vm1, %v2474_v20 }
 0x31e   : > { %2508 = vst.msk [vmem:[%s4335_s27 + $0x74] sm:$0xf] %vm2478_vm1, %v2443_v41 }
 0x31f   : > { %2524 = vst.msk [vmem:[%s4335_s27 + $0xb4] sm:$0xf] %vm2478_vm1, %v2459_v38 }
 0x322   : > { %v2406_v63 = vpop.f32.mrf.mxu3 }
 0x323   : > { %v2475_v8 = vpack.c.bf16 %v2406_v63, %v2406_v63  ;;  %v1974_v44 = vpop.f32.mrf.mxu0 }
 0x324   : > { %v2428_v53 = vpack.c.bf16 %v1974_v44, %v1974_v44 }
 0x325   : > { %2540 = vst.msk [vmem:[%s4335_s27 + $0xf4] sm:$0xf] %vm2478_vm1, %v2475_v8 }
 0x326   : > { %2493 = vst.msk [vmem:[%s4335_s27 + $0x38] sm:$0xf] %vm2478_vm1, %v2428_v53 }
 0x32a   : > { %v2264_v6 = vpop.f32.mrf.mxu2  ;;  %v2409_v23 = vpop.f32.mrf.mxu3 }
 0x32b   : > { %v2460_v5 = vpack.c.bf16 %v2264_v6, %v2264_v6  ;;  %v2476_v31 = vpack.c.bf16 %v2409_v23, %v2409_v23  ;;  %v1976_v7 = vpop.f32.mrf.mxu0 }
 0x32c   : > { %v2119_v51 = vpop.f32.mrf.mxu1  ;;  %v2429_v22 = vpack.c.bf16 %v1976_v7, %v1976_v7 }
 0x32d   : > { %v2444_v15 = vpack.c.bf16 %v2119_v51, %v2119_v51  ;;  %2525 = vst.msk [vmem:[%s4335_s27 + $0xb8] sm:$0xf] %vm2478_vm1, %v2460_v5 }
 0x32e   : > { %2541 = vst.msk [vmem:[%s4335_s27 + $0xf8] sm:$0xf] %vm2478_vm1, %v2476_v31 }
 0x32f   : > { %2494 = vst.msk [vmem:[%s4335_s27 + $0x3c] sm:$0xf] %vm2478_vm1, %v2429_v22 }
 0x330   : > { %2509 = vst.msk [vmem:[%s4335_s27 + $0x78] sm:$0xf] %vm2478_vm1, %v2444_v15 }
 0x332   : > { %v2266_v28 = vpop.f32.mrf.mxu2  ;;  %v2411_v25 = vpop.f32.mrf.mxu3 }
 0x333   : > { %v2461_v61 = vpack.c.bf16 %v2266_v28, %v2266_v28  ;;  %v2477_v60 = vpack.c.bf16 %v2411_v25, %v2411_v25 }
 0x334   : > { %v2121_v42 = vpop.f32.mrf.mxu1 }
 0x335   : > { %v2445_v32 = vpack.c.bf16 %v2121_v42, %v2121_v42  ;;  %2526 = vst.msk [vmem:[%s4335_s27 + $0xbc] sm:$0xf] %vm2478_vm1, %v2461_v61 }
 0x336   : > { %2542 = vst.msk [vmem:[%s4335_s27 + $0xfc] sm:$0xf] %vm2478_vm1, %v2477_v60 }
 0x337   : > { %2510 = vst.msk [vmem:[%s4335_s27 + $0x7c] sm:$0xf] %vm2478_vm1, %v2445_v32 }
 0x338 PF: > { %s13_s12 = sadd.s32 1, %s3430_s12  }
 0x339   : > { %p10_p4 = scmp.ge.s32.totalorder %s13_s12, 6  }
 0x33b   :  { %12 = sbr.rel (!%p10_p4) target bundleno = 1 (0x1), region = 68 }

// kernel: _lambda_.5
= control target key start
LH: loop header
LB: loop body
LE: loop exit
PB: predicated region body
PF: predicated region fallthrough
CT: control target
= control target key end

     0   :  { %11 = vsyncpa [#allocation3], 0  ;;  %s2857_s0 = inlined_call_operand.vmem [shape: bf16[512,128], index: 0, kind: input, shape index: {}]   ;;  %s2858_s1 = inlined_call_operand.vmem [shape: f32[512,128], index: 1, kind: input, shape index: {}]   ;;  %s2859_s2 = inlined_call_operand.vmem [shape: bf16[128,128], index: 2, kind: input, shape index: {}]   ;;  %s2860_s3 = inlined_call_operand.vmem [shape: f32[1,128], index: 3, kind: input, shape index: {}]   ;;  %s2861_s4 = inlined_call_operand.vmem [shape: f32[1,128], index: 4, kind: input, shape index: {}]   ;;  %s2862_s5 = inlined_call_operand.vmem [shape: f32[1,128], index: 5, kind: input, shape index: {}]   ;;  %s2863_s6 = inlined_call_operand.hbm [shape: f32[512,128], index: 6, kind: output, shape index: {}]  }
   0x1   :  { %13 = vsyncpa [#allocation3 + $0x1], 0  ;;  %s1839_s21 = smov 0   ;;  %s1841_s22 = smov 0  }
   0x2   :  { %s1843_s23 = smov 0   ;;  %s1845_s24 = smov 0  }
   0x3 LB: > { %s1860_s25 = sadd.s32 4294967295, %s1799_s24   ;;  %s1465_s26 = sadd.s32 4294967294, %s1799_s24   ;;  %s1799_s24 = sphi %s1845_s24, %s2869_s24   ;;  %s1795_s23 = sphi %s1843_s23, %s2868_s23   ;;  %s1791_s22 = sphi %s1841_s22, %s2867_s22   ;;  %s1787_s21 = sphi %s1839_s21, %s2866_s21  }
   0x4   : > { %s1864_s27 = sadd.s32 1, %s1799_s24   ;;  %s162_s28 = sadd.s32 1, %s1795_s23 }
   0x5   : > { %s159_s29 = ssub.s32 %s1799_s24, %s1864_s27  ;;  %p172_p0 = scmp.ne.s32.totalorder %s1795_s23, %s1791_s22 }
   0x6   : > { %p160_p1 = scmp.eq.s32.totalorder %s159_s29, 0  ;;  %p173_p2 = scmp.eq.s32.totalorder %s1860_s25, 1 }
   0x7   : > { %p178_p3 = scmp.ne.s32.totalorder %s1791_s22, %s1787_s21  ;;  %p179_p4 = scmp.eq.s32.totalorder %s1465_s26, 1 }
   0x8   : > { %s1875_s30 = scalar_select %p160_p1, %s1795_s23, %s162_s28  }
   0x9   : > { %p1877_p5 = por %p173_p2, %p172_p0  ;;  %p1881_p6 = por %p179_p4, %p178_p3 }
   0xa   : > { %p1468_p7 = scmp.ge.s32.totalorder %s1799_s24, 1  ;;  %p227_p8 = scmp.lt.s32.totalorder %s1799_s24, 3 }
   0xc   : > { %p228_p9 = pnand %p1468_p7, %p227_p8 }
   0xd   : > { %s1470_s17 = sshll.u32 (!%p228_p9), %s1860_s25, 5 }
   0xe   : > { %231 = sbr.rel (%p228_p9) target bundleno = 555 (0x22b), region = 44  ;;  %p263_p10 = scmp.lt.s32.totalorder (!%p228_p9), %s1470_s17, 63 }
  0x13   : > { %v1598_v0 = vld [vmem:[%s2859_s2 + $0x38] sm:$0xff]  ;;  %v1597_v1 = vld [vmem:[%s2859_s2 + $0x30] sm:$0xff]  ;;  %v1596_v2 = vld [vmem:[%s2859_s2 + $0x28] sm:$0xff]  ;;  %s2871_s17 = smov (!%p263_p10, %s1470_s17), 63 }
  0x14   : > { %471 = vmatpush.bf16.msra.mxu0 %v1598_v0  ;;  %1600 = vmatpush.bf16.msra.mxu1 %v1598_v0  ;;  %v1595_v3 = vld [vmem:[%s2859_s2 + $0x20] sm:$0xff]  ;;  %v1594_v4 = vld [vmem:[%s2859_s2 + $0x18] sm:$0xff]  ;;  %v1593_v5 = vld [vmem:[%s2859_s2 + $0x10] sm:$0xff]  ;;  %s1471_s9 = sshll.u32 %s2871_s17, 2  ;;  %s1473_s15 = sshll.u32 %s2871_s17, 3 }
  0x15   : > { %1601 = vmatpush.bf16.msra.mxu2 %v1598_v0  ;;  %1602 = vmatpush.bf16.msra.mxu3 %v1598_v0  ;;  %v1592_v6 = vld [vmem:[%s2859_s2 + $0x8] sm:$0xff]  ;;  %v1591_v7 = vld [vmem:[%s2859_s2] sm:$0xff]  ;;  %s1918_s14 = scalar_lea.vmem %s2857_s0, %s1471_s9  ;;  %s1945_s26 = scalar_lea.vmem %s2858_s1, %s1473_s15 }
  0x16   : > { %v1575_v8 = vld [vmem:[%s1918_s14] sm:$0xff]  ;;  %v1576_v12 = vld [vmem:[%s1918_s14 + $0x8] sm:$0xff]  ;;  %v1577_v16 = vld [vmem:[%s1918_s14 + $0x10] sm:$0xff]  ;;  %s259_s17 = sand.u32 1, %s1791_s22   ;;  %s1599_s15 = sshll.u32 %s1860_s25, 8 }
  0x17   : > { %v1579_v9 = vld [vmem:[%s1918_s14 + $0x20] sm:$0xff]  ;;  %v1580_v13 = vld [vmem:[%s1918_s14 + $0x28] sm:$0xff]  ;;  %v1581_v17 = vld [vmem:[%s1918_s14 + $0x30] sm:$0xff]  ;;  %s1469_s11 = sshll.u32 %s259_s17, 8  ;;  %s1387_s20 = scalar_lea.hbm %s2863_s6, %s1599_s15 }
  0x18   : > { %472 = vmatpush.bf16.msra.mxu0 %v1597_v1  ;;  %1603 = vmatpush.bf16.msra.mxu1 %v1597_v1  ;;  %v1583_v10 = vld [vmem:[%s1918_s14 + $0x40] sm:$0xff]  ;;  %v1588_v14 = vld [vmem:[%s1918_s14 + $0x68] sm:$0xff]  ;;  %v1585_v18 = vld [vmem:[%s1918_s14 + $0x50] sm:$0xff]  ;;  %s2352_s12 = scalar_lea.vmem [#allocation2], %s1469_s11  ;;  %s1390_s28 = sshll.u32 %s1387_s20, 4  ;;  %s1391_s28 = int_to_ptr.hbm [resolvable:$true] %s1390_s28 }
  0x19   : > { %1604 = vmatpush.bf16.msra.mxu2 %v1597_v1  ;;  %1605 = vmatpush.bf16.msra.mxu3 %v1597_v1  ;;  %v1587_v11 = vld [vmem:[%s1918_s14 + $0x60] sm:$0xff]  ;;  %v1584_v15 = vld [vmem:[%s1918_s14 + $0x48] sm:$0xff]  ;;  %v1589_v19 = vld [vmem:[%s1918_s14 + $0x70] sm:$0xff]  ;;  %s1376_s29 = scalar_lea.sflag [#allocation3], %s259_s17  ;;  %s1751_s9 = sshra.s32 %s1391_s28, 4  ;;  %s1752_s9 = int_to_ptr.hbm [resolvable:$true] %s1751_s9 }
  0x1a   : > { %v1578_v20 = vld [vmem:[%s1918_s14 + $0x18] sm:$0xff]  ;;  %v1940_v24 = vld [vmem:[%s2860_s3] ss:$0 sm:$0xff]  ;;  %v585_v46 = vld [vmem:[%s1945_s26 + $0xc8] sm:$0xff]  ;;  %s1753_s10 = scalar_lea.hbm %s1752_s9, 256  ;;  %p1758_p0 = scmp.lt.s32.totalorder %s1752_s9, %s2863_s6 }
  0x1b   : > { %v1582_v21 = vld [vmem:[%s1918_s14 + $0x38] sm:$0xff]  ;;  %v568_v27 = vld [vmem:[%s1945_s26 + $0x40] sm:$0xff]  ;;  %v577_v47 = vld [vmem:[%s1945_s26 + $0x88] sm:$0xff]  ;;  %p1754_p11 = scmp.ne.s32.totalorder %s1752_s9, %s1753_s10 }
  0x1c   : > { %473 = vmatpush.bf16.msra.mxu0 %v1596_v2  ;;  %1606 = vmatpush.bf16.msra.mxu1 %v1596_v2  ;;  %v1586_v22 = vld [vmem:[%s1918_s14 + $0x58] sm:$0xff]  ;;  %v560_v28 = vld [vmem:[%s1945_s26] sm:$0xff]  ;;  %v561_v51 = vld [vmem:[%s1945_s26 + $0x8] sm:$0xff] }
  0x1d   : > { %1607 = vmatpush.bf16.msra.mxu2 %v1596_v2  ;;  %1608 = vmatpush.bf16.msra.mxu3 %v1596_v2  ;;  %v1590_v23 = vld [vmem:[%s1918_s14 + $0x78] sm:$0xff]  ;;  %v576_v35 = vld [vmem:[%s1945_s26 + $0x80] sm:$0xff]  ;;  %v562_v57 = vld [vmem:[%s1945_s26 + $0x10] sm:$0xff]  ;;  %p1755_p12 = pnand %p1754_p11, %p1877_p5  ;;  %s1757_s14 = scalar_lea.hbm %s2863_s6, 512 }
  0x1e   : > { %v584_v39 = vld [vmem:[%s1945_s26 + $0xc0] sm:$0xff]  ;;  %v586_v60 = vld [vmem:[%s1945_s26 + $0xd0] sm:$0xff]  ;;  %v569_v0 = vld [vmem:[%s1945_s26 + $0x48] sm:$0xff]  ;;  %p1759_p1 = scmp.lt.s32.totalorder %s1757_s14, %s1753_s10 }
  0x1f   : > { %p1756_p13 = pneg %p1755_p12 }
  0x20   : > { %474 = vmatpush.bf16.msra.mxu0 %v1595_v3  ;;  %1609 = vmatpush.bf16.msra.mxu1 %v1595_v3  ;;  %p1760_p2 = por %p1759_p1, %p1758_p0 }
  0x21   : > { %1610 = vmatpush.bf16.msra.mxu2 %v1595_v3  ;;  %1611 = vmatpush.bf16.msra.mxu3 %v1595_v3 }
  0x22   : > { %p1761_p3 = pnand %p1760_p2, %p1756_p13 }
  0x24   : > { %475 = vmatpush.bf16.msra.mxu0 %v1594_v4  ;;  %1612 = vmatpush.bf16.msra.mxu1 %v1594_v4 }
  0x25   : > { %1613 = vmatpush.bf16.msra.mxu2 %v1594_v4  ;;  %1614 = vmatpush.bf16.msra.mxu3 %v1594_v4 }
  0x28   : > { %476 = vmatpush.bf16.msra.mxu0 %v1593_v5  ;;  %1615 = vmatpush.bf16.msra.mxu1 %v1593_v5 }
  0x29   : > { %1616 = vmatpush.bf16.msra.mxu2 %v1593_v5  ;;  %1617 = vmatpush.bf16.msra.mxu3 %v1593_v5 }
  0x2c   : > { %477 = vmatpush.bf16.msra.mxu0 %v1592_v6  ;;  %1618 = vmatpush.bf16.msra.mxu1 %v1592_v6 }
  0x2d   : > { %1619 = vmatpush.bf16.msra.mxu2 %v1592_v6  ;;  %1620 = vmatpush.bf16.msra.mxu3 %v1592_v6 }
  0x30   : > { %478 = vmatpush.bf16.msra.mxu0 %v1591_v7  ;;  %1621 = vmatpush.bf16.msra.mxu1 %v1591_v7 }
  0x31   : > { %1622 = vmatpush.bf16.msra.mxu2 %v1591_v7  ;;  %1623 = vmatpush.bf16.msra.mxu3 %v1591_v7 }
  0x33   : > { %479 = vmatmul.bf16.vlgmr.msra.gmra.mxu0 %v1575_v8  ;;  %499 = vmatmul.bf16.vlgmr.msra.gmra.mxu1 %v1579_v9  ;;  %v571_v8 = vld [vmem:[%s1945_s26 + $0x58] sm:$0xff]  ;;  %v570_v9 = vld [vmem:[%s1945_s26 + $0x50] sm:$0xff] }
  0x34   : > { %519 = vmatmul.bf16.vlgmr.msra.gmra.mxu2 %v1583_v10  ;;  %539 = vmatmul.bf16.vlgmr.msra.gmra.mxu3 %v1587_v11  ;;  %v578_v10 = vld [vmem:[%s1945_s26 + $0x90] sm:$0xff] }
  0x43   : > { %484 = vmatmul.bf16.gmra.mxu0 %v1576_v12  ;;  %504 = vmatmul.bf16.gmra.mxu1 %v1580_v13 }
  0x44   : > { %544 = vmatmul.bf16.gmra.mxu3 %v1588_v14  ;;  %524 = vmatmul.bf16.gmra.mxu2 %v1584_v15 }
  0x53   : > { %489 = vmatmul.bf16.gmra.mxu0 %v1577_v16  ;;  %509 = vmatmul.bf16.gmra.mxu1 %v1581_v17 }
  0x54   : > { %529 = vmatmul.bf16.gmra.mxu2 %v1585_v18  ;;  %549 = vmatmul.bf16.gmra.mxu3 %v1589_v19  ;;  %v564_v18 = vld [vmem:[%s1945_s26 + $0x20] sm:$0xff] }
  0x63   : > { %494 = vmatmul.bf16.gmra.mxu0 %v1578_v20  ;;  %514 = vmatmul.bf16.gmra.mxu1 %v1582_v21  ;;  %v563_v21 = vld [vmem:[%s1945_s26 + $0x18] sm:$0xff] }
  0x64   : > { %534 = vmatmul.bf16.gmra.mxu2 %v1586_v22  ;;  %554 = vmatmul.bf16.gmra.mxu3 %v1590_v23  ;;  %v587_v23 = vld [vmem:[%s1945_s26 + $0xd8] sm:$0xff] }
  0xb0   : > { %v480_v25 = vpop.f32.mrf.mxu0  ;;  %v500_v26 = vpop.f32.mrf.mxu1 }
  0xb1   : > { %v481_v29 = vadd.f32 %v1940_v24, %v480_v25  ;;  %v501_v30 = vadd.f32 %v1940_v24, %v500_v26 }
  0xb3   : > { %v1951_v31 = vadd.f32 %v568_v27, %v501_v30  ;;  %v1953_v32 = vadd.f32 %v560_v28, %v481_v29 }
  0xb5   : > { %640 = vadd.xlane.f32.xlu2 %v1951_v31  ;;  %624 = vadd.xlane.f32.xlu0 %v1953_v32 }
  0xb7   : > { %v520_v33 = vpop.f32.mrf.mxu2  ;;  %v540_v34 = vpop.f32.mrf.mxu3 }
  0xb8   : > { %v521_v36 = vadd.f32 %v1940_v24, %v520_v33  ;;  %v541_v37 = vadd.f32 %v1940_v24, %v540_v34  ;;  %v482_v38 = vpop.f32.mrf.mxu0  ;;  %v502_v40 = vpop.f32.mrf.mxu1  ;;  %v580_v33 = vld [vmem:[%s1945_s26 + $0xa0] sm:$0xff] }
  0xb9   : > { %v483_v43 = vadd.f32 %v1940_v24, %v482_v38  ;;  %v503_v58 = vadd.f32 %v1940_v24, %v502_v40 }
  0xba   : > { %v1961_v41 = vadd.f32 %v576_v35, %v521_v36  ;;  %v1963_v42 = vadd.f32 %v584_v39, %v541_v37  ;;  %v572_v35 = vld [vmem:[%s1945_s26 + $0x60] sm:$0xff]  ;;  %v579_v36 = vld [vmem:[%s1945_s26 + $0x98] sm:$0xff] }
  0xbb   : > { %v1977_v55 = vadd.f32 %v561_v51, %v483_v43  ;;  %v1992_v4 = vadd.f32 %v569_v0, %v503_v58  ;;  %v581_v51 = vld [vmem:[%s1945_s26 + $0xa8] sm:$0xff] }
  0xbc   : > { %656 = vadd.xlane.f32.xlu1 %v1961_v41 }
  0xbd   : > { %672 = vadd.xlane.f32.xlu0 %v1963_v42 }
  0xbf   : > { %v522_v44 = vpop.f32.mrf.mxu2  ;;  %v542_v45 = vpop.f32.mrf.mxu3 }
  0xc0   : > { %v523_v48 = vadd.f32 %v1940_v24, %v522_v44  ;;  %v543_v49 = vadd.f32 %v1940_v24, %v542_v45  ;;  %v485_v50 = vpop.f32.mrf.mxu0  ;;  %v505_v52 = vpop.f32.mrf.mxu1 }
  0xc1   : > { %v486_v56 = vadd.f32 %v1940_v24, %v485_v50  ;;  %v506_v5 = vadd.f32 %v1940_v24, %v505_v52 }
  0xc2   : > { %v1973_v53 = vadd.f32 %v585_v46, %v543_v49  ;;  %v1975_v54 = vadd.f32 %v577_v47, %v523_v48  ;;  %v588_v46 = vld [vmem:[%s1945_s26 + $0xe0] sm:$0xff]  ;;  %v565_v49 = vld [vmem:[%s1945_s26 + $0x28] sm:$0xff] }
  0xc3   : > { %v1987_v63 = vadd.f32 %v562_v57, %v486_v56  ;;  %v2005_v13 = vadd.f32 %v570_v9, %v506_v5 }
  0xc4   : > { %674 = vadd.xlane.f32.xlu1 %v1973_v53  ;;  %658 = vadd.xlane.f32.xlu2 %v1975_v54 }
  0xc5   : > { %626 = vadd.xlane.f32.xlu0 %v1977_v55 }
  0xc7   : > { %v545_v59 = vpop.f32.mrf.mxu3  ;;  %v525_v61 = vpop.f32.mrf.mxu2 }
  0xc8   : > { %v546_v62 = vadd.f32 %v1940_v24, %v545_v59  ;;  %v487_v1 = vpop.f32.mrf.mxu0  ;;  %v507_v2 = vpop.f32.mrf.mxu1  ;;  %v526_v7 = vadd.f32 %v1940_v24, %v525_v61 }
  0xc9   : > { %v508_v6 = vadd.f32 %v1940_v24, %v507_v2  ;;  %v488_v19 = vadd.f32 %v1940_v24, %v487_v1  ;;  %v566_v1 = vld [vmem:[%s1945_s26 + $0x30] sm:$0xff]  ;;  %v573_v2 = vld [vmem:[%s1945_s26 + $0x68] sm:$0xff] }
  0xca   : > { %v1990_v3 = vadd.f32 %v586_v60, %v546_v62  ;;  %v2007_v14 = vadd.f32 %v578_v10, %v526_v7  ;;  %v589_v62 = vld [vmem:[%s1945_s26 + $0xe8] sm:$0xff] }
  0xcb   : > { %v2003_v12 = vadd.f32 %v571_v8, %v508_v6  ;;  %v2020_v26 = vadd.f32 %v563_v21, %v488_v19  ;;  %v590_v19 = vld [vmem:[%s1945_s26 + $0xf0] sm:$0xff] }
  0xcc   : > { %676 = vadd.xlane.f32.xlu2 %v1990_v3  ;;  %628 = vadd.xlane.f32.xlu1 %v1987_v63 }
  0xcd   : > { %642 = vadd.xlane.f32.xlu0 %v1992_v4 }
  0xcf   : > { %v527_v11 = vpop.f32.mrf.mxu2  ;;  %v547_v16 = vpop.f32.mrf.mxu3 }
  0xd0   : > { %v490_v15 = vpop.f32.mrf.mxu0  ;;  %v548_v20 = vadd.f32 %v1940_v24, %v547_v16  ;;  %v510_v28 = vpop.f32.mrf.mxu1  ;;  %v528_v34 = vadd.f32 %v1940_v24, %v527_v11 }
  0xd1   : > { %v491_v17 = vadd.f32 %v1940_v24, %v490_v15  ;;  %v511_v30 = vadd.f32 %v1940_v24, %v510_v28 }
  0xd2   : > { %v2022_v27 = vadd.f32 %v587_v23, %v548_v20  ;;  %v2037_v40 = vadd.f32 %v579_v36, %v528_v34  ;;  %v567_v36 = vld [vmem:[%s1945_s26 + $0x38] sm:$0xff] }
  0xd3   : > { %v2017_v22 = vadd.f32 %v564_v18, %v491_v17  ;;  %v2035_v39 = vadd.f32 %v572_v35, %v511_v30  ;;  %v574_v17 = vld [vmem:[%s1945_s26 + $0x70] sm:$0xff] }
  0xd4   : > { %646 = vadd.xlane.f32.xlu2 %v2003_v12  ;;  %644 = vadd.xlane.f32.xlu1 %v2005_v13  ;;  %v582_v18 = vld [vmem:[%s1945_s26 + $0xb0] sm:$0xff] }
  0xd5   : > { %660 = vadd.xlane.f32.xlu0 %v2007_v14 }
  0xd7   : > { %v530_v25 = vpop.f32.mrf.mxu2  ;;  %v550_v37 = vpop.f32.mrf.mxu3 }
  0xd8   : > { %v531_v29 = vadd.f32 %v1940_v24, %v530_v25  ;;  %v492_v43 = vpop.f32.mrf.mxu0  ;;  %v551_v45 = vadd.f32 %v1940_v24, %v550_v37  ;;  %v512_v52 = vpop.f32.mrf.mxu1 }
  0xd9   : > { %v493_v47 = vadd.f32 %v1940_v24, %v492_v43  ;;  %v513_v0 = vadd.f32 %v1940_v24, %v512_v52  ;;  %v575_v43 = vld [vmem:[%s1945_s26 + $0x78] sm:$0xff] }
  0xda   : > { %v2033_v38 = vadd.f32 %v580_v33, %v531_v29  ;;  %v2047_v50 = vadd.f32 %v588_v46, %v551_v45  ;;  %v583_v33 = vld [vmem:[%s1945_s26 + $0xb8] sm:$0xff] }
  0xdb   : > { %v2050_v57 = vadd.f32 %v565_v49, %v493_v47  ;;  %v2067_v9 = vadd.f32 %v573_v2, %v513_v0 }
  0xdc   : > { %632 = vadd.xlane.f32.xlu2 %v2017_v22  ;;  %630 = vadd.xlane.f32.xlu1 %v2020_v26 }
  0xdd   : > { %678 = vadd.xlane.f32.xlu0 %v2022_v27 }
  0xdf   : > { %v532_v44 = vpop.f32.mrf.mxu2  ;;  %v552_v56 = vpop.f32.mrf.mxu3 }
  0xe0   : > { %v533_v48 = vadd.f32 %v1940_v24, %v532_v44  ;;  %v495_v59 = vpop.f32.mrf.mxu0  ;;  %v553_v60 = vadd.f32 %v1940_v24, %v552_v56  ;;  %v515_v8 = vpop.f32.mrf.mxu1 }
  0xe1   : > { %v496_v61 = vadd.f32 %v1940_v24, %v495_v59  ;;  %v516_v10 = vadd.f32 %v1940_v24, %v515_v8 }
  0xe2   : > { %v2052_v58 = vadd.f32 %v581_v51, %v533_v48  ;;  %v2063_v6 = vadd.f32 %v589_v62, %v553_v60  ;;  %v591_v48 = vld [vmem:[%s1945_s26 + $0xf8] sm:$0xff]  ;;  %v1801_v51 = vmov 128.0   ;;  %s1388_s26 = sshll.u32 %s2352_s12, 4  ;;  %s1389_s26 = int_to_ptr.vmem [resolvable:$true] %s1388_s26 }
  0xe3   : > { %v2065_v7 = vadd.f32 %v566_v1, %v496_v61  ;;  %v2078_v20 = vadd.f32 %v574_v17, %v516_v10  ;;  %1669 = vrcp.f32 %v1801_v51 }
  0xe4   : > { %664 = vadd.xlane.f32.xlu2 %v2033_v38  ;;  %662 = vadd.xlane.f32.xlu1 %v2037_v40 }
  0xe5   : > { %648 = vadd.xlane.f32.xlu0 %v2035_v39 }
  0xe7   : > { %v535_v5 = vpop.f32.mrf.mxu2  ;;  %v555_v15 = vpop.f32.mrf.mxu3 }
  0xe8   : > { %v536_v11 = vadd.f32 %v1940_v24, %v535_v5  ;;  %v556_v16 = vadd.f32 %v1940_v24, %v555_v15  ;;  %v497_v28 = vpop.f32.mrf.mxu0  ;;  %v517_v29 = vpop.f32.mrf.mxu1 }
  0xe9   : > { %v498_v34 = vadd.f32 %v1940_v24, %v497_v28  ;;  %v518_v35 = vadd.f32 %v1940_v24, %v517_v29  ;;  %v1670_v52 = vpop.eup %1669 }
  0xea   : > { %v2080_v21 = vadd.f32 %v582_v18, %v536_v11  ;;  %v2082_v23 = vadd.f32 %v590_v19, %v556_v16  ;;  %v689_v56 = vmul.f32 128.0, %v1670_v52  ;;  %vm693_vm0 = vweird.f32 %v1670_v52 }
  0xeb   : > { %v2095_v44 = vadd.f32 %v567_v36, %v498_v34  ;;  %v2097_v46 = vadd.f32 %v575_v43, %v518_v35 }
  0xec   : > { %634 = vadd.xlane.f32.xlu2 %v2050_v57  ;;  %680 = vadd.xlane.f32.xlu1 %v2047_v50  ;;  %v690_v59 = vsub.f32 1.0, %v689_v56 }
  0xed   : > { %666 = vadd.xlane.f32.xlu0 %v2052_v58 }
  0xee   : > { %v691_v60 = vmul.f32 %v1670_v52, %v690_v59 }
  0xef   : > { %v537_v25 = vpop.f32.mrf.mxu2  ;;  %v557_v45 = vpop.f32.mrf.mxu3 }
  0xf0   : > { %v538_v30 = vadd.f32 %v1940_v24, %v537_v25  ;;  %v558_v47 = vadd.f32 %v1940_v24, %v557_v45  ;;  %v692_v61 = vadd.f32 %v1670_v52, %v691_v60 }
  0xf2   : > { %v2092_v37 = vadd.f32 %v583_v33, %v538_v30  ;;  %v2104_v49 = vadd.f32 %v591_v48, %v558_v47  ;;  %v2107_v62 = vsel %vm693_vm0, %v1670_v52, %v692_v61 }
  0xf4   : > { %682 = vadd.xlane.f32.xlu2 %v2063_v6  ;;  %650 = vadd.xlane.f32.xlu1 %v2067_v9 }
  0xf5   : > { %636 = vadd.xlane.f32.xlu0 %v2065_v7 }
  0xfc   : > { %652 = vadd.xlane.f32.xlu2 %v2078_v20  ;;  %668 = vadd.xlane.f32.xlu1 %v2080_v21 }
  0xfd   : > { %684 = vadd.xlane.f32.xlu0 %v2082_v23 }
 0x104   : > { %670 = vadd.xlane.f32.xlu2 %v2092_v37  ;;  %638 = vadd.xlane.f32.xlu1 %v2095_v44 }
 0x105   : > { %654 = vadd.xlane.f32.xlu0 %v2097_v46 }
 0x10c   : > { %686 = vadd.xlane.f32.xlu1 %v2104_v49 }
 0x128   : > { %v641_v0 = vpop.xlane.xlu2 %640  ;;  %v625_v1 = vpop.xlane.xlu0 %624 }
 0x129   : > { %v703_v2 = vmul.f32 %v2107_v62, %v641_v0  ;;  %v695_v24 = vmul.f32 %v2107_v62, %v625_v1 }
 0x12b   : > { %v2112_v5 = vsub.f32 %v1951_v31, %v703_v2  ;;  %v2115_v8 = vsub.f32 %v1953_v32, %v695_v24 }
 0x12d   : > { %v767_v10 = vmul.f32 %v2112_v5, %v2112_v5  ;;  %v759_v11 = vmul.f32 %v2115_v8, %v2115_v8 }
 0x12f   : > { %v657_v15 = vpop.xlane.xlu1 %656  ;;  %807 = vadd.xlane.f32.xlu1 %v767_v10  ;;  %791 = vadd.xlane.f32.xlu2 %v759_v11 }
 0x130   : > { %v711_v16 = vmul.f32 %v2107_v62, %v657_v15  ;;  %v673_v17 = vpop.xlane.xlu0 %672 }
 0x131   : > { %v719_v18 = vmul.f32 %v2107_v62, %v673_v17 }
 0x132   : > { %v2124_v31 = vsub.f32 %v1961_v41, %v711_v16 }
 0x133   : > { %v2127_v32 = vsub.f32 %v1963_v42, %v719_v18 }
 0x134   : > { %v775_v19 = vmul.f32 %v2124_v31, %v2124_v31 }
 0x135   : > { %v783_v25 = vmul.f32 %v2127_v32, %v2127_v32 }
 0x136   : > { %823 = vadd.xlane.f32.xlu0 %v775_v19 }
 0x137   : > { %v675_v28 = vpop.xlane.xlu1 %674  ;;  %v659_v29 = vpop.xlane.xlu2 %658  ;;  %839 = vadd.xlane.f32.xlu2 %v783_v25 }
 0x138   : > { %v712_v30 = vmul.f32 %v2107_v62, %v659_v29  ;;  %v627_v33 = vpop.xlane.xlu0 %626  ;;  %v720_v36 = vmul.f32 %v2107_v62, %v675_v28 }
 0x139   : > { %v696_v34 = vmul.f32 %v2107_v62, %v627_v33 }
 0x13a   : > { %v2136_v41 = vsub.f32 %v1975_v54, %v712_v30  ;;  %v2148_v54 = vsub.f32 %v1973_v53, %v720_v36 }
 0x13b   : > { %v2139_v42 = vsub.f32 %v1977_v55, %v696_v34 }
 0x13c   : > { %v776_v35 = vmul.f32 %v2136_v41, %v2136_v41  ;;  %v784_v61 = vmul.f32 %v2148_v54, %v2148_v54 }
 0x13d   : > { %v760_v43 = vmul.f32 %v2139_v42, %v2139_v42 }
 0x13e   : > { %825 = vadd.xlane.f32.xlu1 %v776_v35 }
 0x13f   : > { %v677_v45 = vpop.xlane.xlu2 %676  ;;  %v629_v47 = vpop.xlane.xlu1 %628  ;;  %793 = vadd.xlane.f32.xlu0 %v760_v43 }
 0x140   : > { %v697_v48 = vmul.f32 %v2107_v62, %v629_v47  ;;  %v643_v51 = vpop.xlane.xlu0 %642  ;;  %v721_v59 = vmul.f32 %v2107_v62, %v677_v45 }
 0x141   : > { %v704_v55 = vmul.f32 %v2107_v62, %v643_v51 }
 0x142   : > { %v2152_v52 = vsub.f32 %v1987_v63, %v697_v48  ;;  %v2165_v63 = vsub.f32 %v1990_v3, %v721_v59 }
 0x143   : > { %v2155_v56 = vsub.f32 %v1992_v4, %v704_v55 }
 0x144   : > { %v761_v60 = vmul.f32 %v2152_v52, %v2152_v52  ;;  %v785_v16 = vmul.f32 %v2165_v63, %v2165_v63 }
 0x145   : > { %v768_v53 = vmul.f32 %v2155_v56, %v2155_v56 }
 0x146   : > { %795 = vadd.xlane.f32.xlu1 %v761_v60 }
 0x147   : > { %v647_v0 = vpop.xlane.xlu2 %646  ;;  %v645_v1 = vpop.xlane.xlu1 %644  ;;  %841 = vadd.xlane.f32.xlu0 %v784_v61  ;;  %809 = vadd.xlane.f32.xlu2 %v768_v53 }
 0x148   : > { %v705_v4 = vmul.f32 %v2107_v62, %v645_v1  ;;  %v661_v2 = vpop.xlane.xlu0 %660  ;;  %v706_v15 = vmul.f32 %v2107_v62, %v647_v0 }
 0x149   : > { %v713_v24 = vmul.f32 %v2107_v62, %v661_v2 }
 0x14a   : > { %v2170_v10 = vsub.f32 %v2005_v13, %v705_v4  ;;  %v2183_v13 = vsub.f32 %v2003_v12, %v706_v15 }
 0x14b   : > { %v2173_v11 = vsub.f32 %v2007_v14, %v713_v24 }
 0x14c   : > { %v769_v3 = vmul.f32 %v2170_v10, %v2170_v10  ;;  %v770_v29 = vmul.f32 %v2183_v13, %v2183_v13 }
 0x14d   : > { %v777_v17 = vmul.f32 %v2173_v11, %v2173_v11 }
 0x14e   : > { %843 = vadd.xlane.f32.xlu1 %v785_v16 }
 0x14f   : > { %v633_v18 = vpop.xlane.xlu2 %632  ;;  %v631_v19 = vpop.xlane.xlu1 %630  ;;  %811 = vadd.xlane.f32.xlu0 %v769_v3  ;;  %827 = vadd.xlane.f32.xlu2 %v777_v17 }
 0x150   : > { %v698_v14 = vmul.f32 %v2107_v62, %v631_v19  ;;  %v679_v25 = vpop.xlane.xlu0 %678  ;;  %v699_v48 = vmul.f32 %v2107_v62, %v633_v18 }
 0x151   : > { %v722_v30 = vmul.f32 %v2107_v62, %v679_v25 }
 0x152   : > { %v2187_v28 = vsub.f32 %v2020_v26, %v698_v14 }
 0x153   : > { %v2197_v26 = vsub.f32 %v2022_v27, %v722_v30 }
 0x154   : > { %v762_v33 = vmul.f32 %v2187_v28, %v2187_v28 }
 0x155   : > { %v786_v27 = vmul.f32 %v2197_v26, %v2197_v26 }
 0x156   : > { %813 = vadd.xlane.f32.xlu1 %v770_v29 }
 0x157   : > { %v665_v34 = vpop.xlane.xlu2 %664  ;;  %v663_v35 = vpop.xlane.xlu1 %662  ;;  %797 = vadd.xlane.f32.xlu2 %v762_v33 }
 0x158   : > { %v715_v12 = vmul.f32 %v2107_v62, %v665_v34  ;;  %v714_v36 = vmul.f32 %v2107_v62, %v663_v35  ;;  %v649_v43 = vpop.xlane.xlu0 %648 }
 0x159   : > { %v707_v59 = vmul.f32 %v2107_v62, %v649_v43 }
 0x15a   : > { %v2200_v45 = vsub.f32 %v2033_v38, %v715_v12  ;;  %v2203_v47 = vsub.f32 %v2037_v40, %v714_v36  ;;  %v2214_v40 = vsub.f32 %v2017_v22, %v699_v48 }
 0x15b   : > { %v2218_v0 = vsub.f32 %v2035_v39, %v707_v59 }
 0x15c   : > { %v779_v51 = vmul.f32 %v2200_v45, %v2200_v45  ;;  %v778_v55 = vmul.f32 %v2203_v47, %v2203_v47  ;;  %v763_v24 = vmul.f32 %v2214_v40, %v2214_v40 }
 0x15d   : > { %v771_v15 = vmul.f32 %v2218_v0, %v2218_v0 }
 0x15e   : > { %831 = vadd.xlane.f32.xlu1 %v779_v51  ;;  %829 = vadd.xlane.f32.xlu0 %v778_v55 }
 0x15f   : > { %v635_v38 = vpop.xlane.xlu2 %634  ;;  %v681_v60 = vpop.xlane.xlu1 %680  ;;  %845 = vadd.xlane.f32.xlu2 %v786_v27 }
 0x160   : > { %v700_v61 = vmul.f32 %v2107_v62, %v635_v38  ;;  %v667_v53 = vpop.xlane.xlu0 %666  ;;  %v723_v4 = vmul.f32 %v2107_v62, %v681_v60 }
 0x161   : > { %v716_v22 = vmul.f32 %v2107_v62, %v667_v53 }
 0x162   : > { %v2221_v1 = vsub.f32 %v2050_v57, %v700_v61  ;;  %v2232_v57 = vsub.f32 %v2047_v50, %v723_v4 }
 0x163   : > { %v2235_v17 = vsub.f32 %v2052_v58, %v716_v22 }
 0x164   : > { %v764_v2 = vmul.f32 %v2221_v1, %v2221_v1  ;;  %v787_v19 = vmul.f32 %v2232_v57, %v2232_v57 }
 0x165   : > { %v780_v25 = vmul.f32 %v2235_v17, %v2235_v17 }
 0x166   : > { %801 = vadd.xlane.f32.xlu1 %v764_v2  ;;  %799 = vadd.xlane.f32.xlu0 %v763_v24 }
 0x167   : > { %v683_v39 = vpop.xlane.xlu2 %682  ;;  %v651_v16 = vpop.xlane.xlu1 %650  ;;  %815 = vadd.xlane.f32.xlu2 %v771_v15 }
 0x168   : > { %v637_v3 = vpop.xlane.xlu0 %636  ;;  %v708_v18 = vmul.f32 %v2107_v62, %v651_v16  ;;  %v724_v60 = vmul.f32 %v2107_v62, %v683_v39 }
 0x169   : > { %v701_v14 = vmul.f32 %v2107_v62, %v637_v3 }
 0x16a   : > { %v2244_v50 = vsub.f32 %v2067_v9, %v708_v18 }
 0x16b   : > { %v2248_v34 = vsub.f32 %v2065_v7, %v701_v14 }
 0x16c   : > { %v772_v43 = vmul.f32 %v2244_v50, %v2244_v50 }
 0x16d   : > { %v765_v9 = vmul.f32 %v2248_v34, %v2248_v34 }
 0x16e   : > { %847 = vadd.xlane.f32.xlu0 %v787_v19 }
 0x16f   : > { %v653_v29 = vpop.xlane.xlu2 %652  ;;  %v669_v30 = vpop.xlane.xlu1 %668  ;;  %833 = vadd.xlane.f32.xlu2 %v780_v25 }
 0x170   : > { %v709_v58 = vmul.f32 %v2107_v62, %v653_v29  ;;  %v685_v33 = vpop.xlane.xlu0 %684  ;;  %v717_v12 = vmul.f32 %v2107_v62, %v669_v30 }
 0x171   : > { %v725_v4 = vmul.f32 %v2107_v62, %v685_v33 }
 0x172   : > { %v2251_v35 = vsub.f32 %v2078_v20, %v709_v58  ;;  %v2261_v7 = vsub.f32 %v2080_v21, %v717_v12 }
 0x173   : > { %v2287_v24 = vsub.f32 %v2082_v23, %v725_v4 }
 0x174   : > { %v773_v36 = vmul.f32 %v2251_v35, %v2251_v35  ;;  %v781_v21 = vmul.f32 %v2261_v7, %v2261_v7 }
 0x175   : > { %v789_v3 = vmul.f32 %v2287_v24, %v2287_v24 }
 0x176   : > { %819 = vadd.xlane.f32.xlu1 %v773_v36  ;;  %817 = vadd.xlane.f32.xlu0 %v772_v43 }
 0x177   : > { %v671_v48 = vpop.xlane.xlu2 %670  ;;  %v639_v51 = vpop.xlane.xlu1 %638  ;;  %803 = vadd.xlane.f32.xlu2 %v765_v9 }
 0x178   : > { %v718_v20 = vmul.f32 %v2107_v62, %v671_v48  ;;  %v655_v55 = vpop.xlane.xlu0 %654  ;;  %v702_v61 = vmul.f32 %v2107_v62, %v639_v51 }
 0x179   : > { %v710_v59 = vmul.f32 %v2107_v62, %v655_v55 }
 0x17a   : > { %v2266_v27 = vsub.f32 %v2092_v37, %v718_v20  ;;  %v2281_v37 = vsub.f32 %v2063_v6, %v724_v60 }
 0x17b   : > { %v2269_v38 = vsub.f32 %v2097_v46, %v710_v59  ;;  %v2284_v46 = vsub.f32 %v2095_v44, %v702_v61 }
 0x17c   : > { %v782_v53 = vmul.f32 %v2266_v27, %v2266_v27  ;;  %v788_v39 = vmul.f32 %v2281_v37, %v2281_v37 }
 0x17d   : > { %v774_v2 = vmul.f32 %v2269_v38, %v2269_v38  ;;  %v766_v16 = vmul.f32 %v2284_v46, %v2284_v46 }
 0x17e   : > { %837 = vadd.xlane.f32.xlu1 %v782_v53  ;;  %835 = vadd.xlane.f32.xlu0 %v781_v21 }
 0x17f   : > { %821 = vadd.xlane.f32.xlu2 %v774_v2  ;;  %v687_v22 = vpop.xlane.xlu1 %686 }
 0x180   : > { %v726_v15 = vmul.f32 %v2107_v62, %v687_v22 }
 0x182   : > { %v2297_v6 = vsub.f32 %v2104_v49, %v726_v15 }
 0x184   : > { %v790_v23 = vmul.f32 %v2297_v6, %v2297_v6 }
 0x186   : > { %849 = vadd.xlane.f32.xlu1 %v788_v39  ;;  %805 = vadd.xlane.f32.xlu0 %v766_v16 }
 0x187   : > { %851 = vadd.xlane.f32.xlu2 %v789_v3 }
 0x18e   : > { %853 = vadd.xlane.f32.xlu0 %v790_v23 }
 0x1a2   : > { %v808_v44 = vpop.xlane.xlu1 %807  ;;  %v792_v18 = vpop.xlane.xlu2 %791 }
 0x1a3   : > { %v863_v19 = vmul.f32 %v808_v44, %v2107_v62  ;;  %v855_v14 = vmul.f32 %v792_v18, %v2107_v62 }
 0x1a5   : > { %v895_v25 = vadd.f32 1e-05, %v863_v19  ;;  %v887_v29 = vadd.f32 1e-05, %v855_v14  ;;  %v2324_v19 = vld [vmem:[%s2861_s4] ss:$0 sm:$0xff] }
 0x1a7   : > { %1671 = vrsqrt.f32 %v895_v25  ;;  %vm1005_vm3 = vweird.f32 %v895_v25  ;;  %vm925_vm5 = vweird.f32 %v887_v29 }
 0x1a8   : > { %1673 = vrsqrt.f32 %v887_v29 }
 0x1a9   : > { %v824_v30 = vpop.xlane.xlu0 %823 }
 0x1aa   : > { %v871_v58 = vmul.f32 %v824_v30, %v2107_v62  ;;  %v840_v33 = vpop.xlane.xlu2 %839 }
 0x1ab   : > { %v879_v49 = vmul.f32 %v840_v33, %v2107_v62 }
 0x1ac   : > { %v2305_v12 = vadd.f32 1e-05, %v871_v58 }
 0x1ad   : > { %v1672_v36 = vpop.eup %1671  ;;  %v2307_v43 = vadd.f32 1e-05, %v879_v49 }
 0x1ae   : > { %v1674_v9 = vpop.eup %1673  ;;  %v1000_v48 = vmul.f32 %v1672_v36, %v895_v25  ;;  %1675 = vrsqrt.f32 %v2305_v12  ;;  %vm1006_vm1 = vweird.f32 %v1672_v36  ;;  %v2331_v25 = vld [vmem:[%s2862_s5] ss:$0 sm:$0xff]  ;;  %vm1085_vm7 = vweird.f32 %v2305_v12 }
 0x1af   : > { %v920_v51 = vmul.f32 %v1674_v9, %v887_v29  ;;  %1677 = vrsqrt.f32 %v2307_v43  ;;  %vm926_vm2 = vweird.f32 %v1674_v9  ;;  %vm1007_vm4 = vmor %vm1005_vm3, %vm1006_vm1  ;;  %vm1165_vm11 = vweird.f32 %v2307_v43 }
 0x1b0   : > { %v1001_v20 = vmul.f32 %v1672_v36, %v1000_v48  ;;  %vm927_vm6 = vmor %vm925_vm5, %vm926_vm2 }
 0x1b1   : > { %v921_v55 = vmul.f32 %v1674_v9, %v920_v51  ;;  %v826_v59 = vpop.xlane.xlu1 %825 }
 0x1b2   : > { %v1002_v60 = vmul.f32 0.5, %v1001_v20  ;;  %v872_v61 = vmul.f32 %v826_v59, %v2107_v62  ;;  %v794_v53 = vpop.xlane.xlu0 %793 }
 0x1b3   : > { %v922_v21 = vmul.f32 0.5, %v921_v55  ;;  %v856_v4 = vmul.f32 %v794_v53, %v2107_v62 }
 0x1b4   : > { %v1676_v2 = vpop.eup %1675  ;;  %v1003_v22 = vsub.f32 1.5, %v1002_v60  ;;  %v2313_v15 = vadd.f32 1e-05, %v872_v61 }
 0x1b5   : > { %v1678_v39 = vpop.eup %1677  ;;  %v923_v16 = vsub.f32 1.5, %v922_v21  ;;  %v1080_v3 = vmul.f32 %v1676_v2, %v2305_v12  ;;  %v2316_v23 = vadd.f32 1e-05, %v856_v4  ;;  %vm1086_vm8 = vweird.f32 %v1676_v2 }
 0x1b6   : > { %v1004_v44 = vmul.f32 %v1672_v36, %v1003_v22  ;;  %v1160_v18 = vmul.f32 %v1678_v39, %v2307_v43  ;;  %1679 = vrsqrt.f32 %v2313_v15  ;;  %vm1166_vm9 = vweird.f32 %v1678_v39  ;;  %vm1087_vm10 = vmor %vm1085_vm7, %vm1086_vm8 }
 0x1b7   : > { %v924_v14 = vmul.f32 %v1674_v9, %v923_v16  ;;  %v1081_v30 = vmul.f32 %v1676_v2, %v1080_v3  ;;  %1681 = vrsqrt.f32 %v2316_v23  ;;  %vm1167_vm12 = vmor %vm1165_vm11, %vm1166_vm9  ;;  %vm1095_vm15 = vweird.f32 %v2313_v15 }
 0x1b8   : > { %v1008_v58 = vsel %vm1007_vm4, %v1672_v36, %v1004_v44  ;;  %v1161_v33 = vmul.f32 %v1678_v39, %v1160_v18  ;;  %vm935_vm1 = vweird.f32 %v2316_v23 }
 0x1b9   : > { %v1247_v49 = vmul.f32 %v1008_v58, %v2112_v5  ;;  %v928_v48 = vsel %vm927_vm6, %v1674_v9, %v924_v14  ;;  %v1082_v51 = vmul.f32 0.5, %v1081_v30  ;;  %v796_v20 = vpop.xlane.xlu1 %795 }
 0x1ba   : > { %v1239_v29 = vmul.f32 %v928_v48, %v2115_v8  ;;  %v1162_v36 = vmul.f32 0.5, %v1161_v33  ;;  %v857_v55 = vmul.f32 %v796_v20, %v2107_v62  ;;  %v810_v59 = vpop.xlane.xlu2 %809  ;;  %v842_v60 = vpop.xlane.xlu0 %841 }
 0x1bb   : > { %v1283_v61 = vmul.f32 %v2324_v19, %v1247_v49  ;;  %v1083_v53 = vsub.f32 1.5, %v1082_v51  ;;  %v864_v8 = vmul.f32 %v810_v59, %v2107_v62  ;;  %v880_v18 = vmul.f32 %v842_v60, %v2107_v62 }
 0x1bc   : > { %v1680_v21 = vpop.eup %1679  ;;  %v1275_v5 = vmul.f32 %v2324_v19, %v1239_v29  ;;  %v1163_v9 = vsub.f32 1.5, %v1162_v36  ;;  %v2341_v4 = vadd.f32 1e-05, %v857_v55 }
 0x1bd   : > { %v1682_v22 = vpop.eup %1681  ;;  %v1319_v16 = vadd.f32 %v2331_v25, %v1283_v61  ;;  %v1084_v3 = vmul.f32 %v1676_v2, %v1083_v53  ;;  %v1090_v44 = vmul.f32 %v1680_v21, %v2313_v15  ;;  %v2359_v20 = vadd.f32 1e-05, %v864_v8 }
 0x1be   : > { %v1311_v14 = vadd.f32 %v2331_v25, %v1275_v5  ;;  %v1164_v30 = vmul.f32 %v1678_v39, %v1163_v9  ;;  %v930_v58 = vmul.f32 %v1682_v22, %v2316_v23  ;;  %1683 = vrsqrt.f32 %v2341_v4 }
 0x1bf   : > { %1351 = vst [vmem:[%s2352_s12 + $0x40] sm:$0xff] %v1319_v16  ;;  %v1088_v33 = vsel %vm1087_vm10, %v1676_v2, %v1084_v3  ;;  %v1091_v49 = vmul.f32 %v1680_v21, %v1090_v44  ;;  %v2362_v36 = vadd.f32 1e-05, %v880_v18  ;;  %vm1096_vm13 = vweird.f32 %v1680_v21 }
 0x1c0   : > { %1343 = vst [vmem:[%s2352_s12] sm:$0xff] %v1311_v14  ;;  %v1255_v12 = vmul.f32 %v1088_v33, %v2124_v31  ;;  %v1168_v48 = vsel %vm1167_vm12, %v1678_v39, %v1164_v30  ;;  %v931_v51 = vmul.f32 %v1682_v22, %v930_v58  ;;  %1685 = vrsqrt.f32 %v2359_v20  ;;  %vm1097_vm0 = vmor %vm1095_vm15, %vm1096_vm13 }
 0x1c1   : > { %v1263_v43 = vmul.f32 %v1168_v48, %v2127_v32  ;;  %v1092_v29 = vmul.f32 0.5, %v1091_v49  ;;  %v844_v55 = vpop.xlane.xlu1 %843  ;;  %vm936_vm14 = vweird.f32 %v1682_v22  ;;  %1687 = vrsqrt.f32 %v2362_v36 }
 0x1c2   : > { %v1291_v2 = vmul.f32 %v2324_v19, %v1255_v12  ;;  %v932_v59 = vmul.f32 0.5, %v931_v51  ;;  %v828_v60 = vpop.xlane.xlu2 %827  ;;  %v812_v61 = vpop.xlane.xlu0 %811  ;;  %v881_v5 = vmul.f32 %v844_v55, %v2107_v62  ;;  %vm937_vm2 = vmor %vm935_vm1, %vm936_vm14  ;;  %vm945_vm3 = vweird.f32 %v2341_v4 }
 0x1c3   : > { %v1299_v31 = vmul.f32 %v2324_v19, %v1263_v43  ;;  %v1093_v39 = vsub.f32 1.5, %v1092_v29  ;;  %v873_v9 = vmul.f32 %v828_v60, %v2107_v62  ;;  %v865_v44 = vmul.f32 %v812_v61, %v2107_v62 }
 0x1c4   : > { %v1327_v32 = vadd.f32 %v2331_v25, %v1291_v2  ;;  %v933_v53 = vsub.f32 1.5, %v932_v59  ;;  %v1684_v8 = vpop.eup %1683  ;;  %v2378_v30 = vadd.f32 1e-05, %v881_v5  ;;  %vm1015_vm5 = vweird.f32 %v2359_v20 }
 0x1c5   : > { %v1335_v16 = vadd.f32 %v2331_v25, %v1299_v31  ;;  %v1094_v3 = vmul.f32 %v1680_v21, %v1093_v39  ;;  %v940_v14 = vmul.f32 %v1684_v8, %v2341_v4  ;;  %v2382_v33 = vadd.f32 1e-05, %v873_v9 }
 0x1c6   : > { %1359 = vst [vmem:[%s2352_s12 + $0x80] sm:$0xff] %v1327_v32  ;;  %v934_v18 = vmul.f32 %v1682_v22, %v933_v53  ;;  %v2384_v49 = vadd.f32 1e-05, %v865_v44  ;;  %v1686_v15 = vpop.eup %1685  ;;  %1689 = vrsqrt.f32 %v2378_v30  ;;  %vm946_vm4 = vweird.f32 %v1684_v8 }
 0x1c7   : > { %1367 = vst [vmem:[%s2352_s12 + $0xc0] sm:$0xff] %v1335_v16  ;;  %v1098_v58 = vsel %vm1097_vm0, %v1680_v21, %v1094_v3  ;;  %v941_v51 = vmul.f32 %v1684_v8, %v940_v14  ;;  %v1688_v23 = vpop.eup %1687  ;;  %v1010_v29 = vmul.f32 %v1686_v15, %v2359_v20  ;;  %1691 = vrsqrt.f32 %v2382_v33  ;;  %vm947_vm7 = vmor %vm945_vm3, %vm946_vm4 }
 0x1c8   : > { %v1256_v12 = vmul.f32 %v1098_v58, %v2136_v41  ;;  %v938_v48 = vsel %vm937_vm2, %v1682_v22, %v934_v18  ;;  %v1170_v59 = vmul.f32 %v1688_v23, %v2362_v36  ;;  %1693 = vrsqrt.f32 %v2384_v49 }
 0x1c9   : > { %v1240_v43 = vmul.f32 %v938_v48, %v2139_v42  ;;  %v814_v55 = vpop.xlane.xlu1 %813  ;;  %v942_v2 = vmul.f32 0.5, %v941_v51  ;;  %v1011_v22 = vmul.f32 %v1686_v15, %v1010_v29  ;;  %vm1175_vm6 = vweird.f32 %v2362_v36 }
 0x1ca   : > { %v1292_v21 = vmul.f32 %v2324_v19, %v1256_v12  ;;  %v798_v60 = vpop.xlane.xlu2 %797  ;;  %v1171_v31 = vmul.f32 %v1688_v23, %v1170_v59  ;;  %v866_v53 = vmul.f32 %v814_v55, %v2107_v62  ;;  %vm1016_vm8 = vweird.f32 %v1686_v15 }
 0x1cb   : > { %v1276_v41 = vmul.f32 %v2324_v19, %v1240_v43  ;;  %v943_v61 = vsub.f32 1.5, %v942_v2  ;;  %v1012_v32 = vmul.f32 0.5, %v1011_v22  ;;  %v858_v3 = vmul.f32 %v798_v60, %v2107_v62  ;;  %vm1017_vm11 = vmor %vm1015_vm5, %vm1016_vm8 }
 0x1cc   : > { %v1328_v42 = vadd.f32 %v2331_v25, %v1292_v21  ;;  %v2400_v5 = vpop.eup %1689  ;;  %v1172_v16 = vmul.f32 0.5, %v1171_v31  ;;  %v2411_v14 = vadd.f32 1e-05, %v866_v53  ;;  %vm1176_vm9 = vweird.f32 %v1688_v23 }
 0x1cd   : > { %v1312_v39 = vadd.f32 %v2331_v25, %v1276_v41  ;;  %v944_v9 = vmul.f32 %v1684_v8, %v943_v61  ;;  %v1013_v44 = vsub.f32 1.5, %v1012_v32  ;;  %v1180_v18 = vmul.f32 %v2400_v5, %v2378_v30  ;;  %v2414_v48 = vpop.eup %1691  ;;  %vm1177_vm13 = vmor %vm1175_vm6, %vm1176_vm9 }
 0x1ce   : > { %1360 = vst [vmem:[%s2352_s12 + $0x88] sm:$0xff] %v1328_v42  ;;  %v1173_v12 = vsub.f32 1.5, %v1172_v16  ;;  %vm1185_vm10 = vweird.f32 %v2378_v30  ;;  %1695 = vrsqrt.f32 %v2411_v14  ;;  %v2419_v55 = vpop.eup %1693  ;;  %v1100_v21 = vmul.f32 %v2414_v48, %v2382_v33 }
 0x1cf   : > { %1344 = vst [vmem:[%s2352_s12 + $0x8] sm:$0xff] %v1312_v39  ;;  %v948_v58 = vsel %vm947_vm7, %v1684_v8, %v944_v9  ;;  %v1014_v43 = vmul.f32 %v1686_v15, %v1013_v44  ;;  %v1181_v4 = vmul.f32 %v2400_v5, %v1180_v18  ;;  %vm1105_vm12 = vweird.f32 %v2382_v33 }
 0x1d0   : > { %v1241_v51 = vmul.f32 %v948_v58, %v2152_v52  ;;  %v1174_v8 = vmul.f32 %v1688_v23, %v1173_v12  ;;  %v2426_v2 = vadd.f32 1e-05, %v858_v3  ;;  %v1020_v20 = vmul.f32 %v2419_v55, %v2384_v49 }
 0x1d1   : > { %v830_v29 = vpop.xlane.xlu0 %829  ;;  %v1018_v60 = vsel %vm1017_vm11, %v1686_v15, %v1014_v43  ;;  %v1182_v41 = vmul.f32 0.5, %v1181_v4  ;;  %v832_v22 = vpop.xlane.xlu1 %831  ;;  %vm1186_vm14 = vweird.f32 %v2400_v5  ;;  %v1101_v31 = vmul.f32 %v2414_v48, %v1100_v21 }
 0x1d2   : > { %v846_v52 = vpop.xlane.xlu2 %845  ;;  %v1277_v59 = vmul.f32 %v2324_v19, %v1241_v51  ;;  %v1248_v42 = vmul.f32 %v1018_v60, %v2155_v56  ;;  %v1178_v61 = vsel %vm1177_vm13, %v1688_v23, %v1174_v8  ;;  %v1021_v36 = vmul.f32 %v2419_v55, %v1020_v20  ;;  %vm1187_vm0 = vmor %vm1185_vm10, %vm1186_vm14 }
 0x1d3   : > { %v1264_v15 = vmul.f32 %v1178_v61, %v2148_v54  ;;  %v1183_v32 = vsub.f32 1.5, %v1182_v41  ;;  %v1102_v9 = vmul.f32 0.5, %v1101_v31  ;;  %vm1106_vm15 = vweird.f32 %v2414_v48 }
 0x1d4   : > { %v1313_v39 = vadd.f32 %v2331_v25, %v1277_v59  ;;  %v1284_v53 = vmul.f32 %v2324_v19, %v1248_v42  ;;  %1697 = vrsqrt.f32 %v2426_v2  ;;  %v2443_v56 = vpop.eup %1695  ;;  %v1022_v3 = vmul.f32 0.5, %v1021_v36  ;;  %vm1107_vm2 = vmor %vm1105_vm12, %vm1106_vm15 }
 0x1d5   : > { %v1300_v23 = vmul.f32 %v2324_v19, %v1264_v15  ;;  %v1184_v16 = vmul.f32 %v2400_v5, %v1183_v32  ;;  %v875_v54 = vmul.f32 %v832_v22, %v2107_v62  ;;  %v1103_v18 = vsub.f32 1.5, %v1102_v9 }
 0x1d6   : > { %1345 = vst [vmem:[%s2352_s12 + $0x10] sm:$0xff] %v1313_v39  ;;  %v1320_v44 = vadd.f32 %v2331_v25, %v1284_v53  ;;  %vm1026_vm1 = vweird.f32 %v2419_v55  ;;  %v1030_v58 = vmul.f32 %v2443_v56, %v2411_v14  ;;  %v1023_v43 = vsub.f32 1.5, %v1022_v3 }
 0x1d7   : > { %v1336_v12 = vadd.f32 %v2331_v25, %v1300_v23  ;;  %v1188_v51 = vsel %vm1187_vm0, %v2400_v5, %v1184_v16  ;;  %v2459_v4 = vadd.f32 1e-05, %v875_v54  ;;  %v1104_v30 = vmul.f32 %v2414_v48, %v1103_v18 }
 0x1d8   : > { %1352 = vst [vmem:[%s2352_s12 + $0x48] sm:$0xff] %v1320_v44  ;;  %v1265_v21 = vmul.f32 %v1188_v51, %v2165_v63  ;;  %v1031_v59 = vmul.f32 %v2443_v56, %v1030_v58  ;;  %v874_v60 = vmul.f32 %v830_v29, %v2107_v62  ;;  %v1024_v5 = vmul.f32 %v2419_v55, %v1023_v43 }
 0x1d9   : > { %v800_v8 = vpop.xlane.xlu0 %799  ;;  %1368 = vst [vmem:[%s2352_s12 + $0xc8] sm:$0xff] %v1336_v12  ;;  %vm1025_vm3 = vweird.f32 %v2384_v49  ;;  %1699 = vrsqrt.f32 %v2459_v4  ;;  %v882_v63 = vmul.f32 %v846_v52, %v2107_v62  ;;  %v1108_v29 = vsel %vm1107_vm2, %v2414_v48, %v1104_v30  ;;  %v802_v31 = vpop.xlane.xlu1 %801 }
 0x1da   : > { %v816_v41 = vpop.xlane.xlu2 %815  ;;  %v1698_v20 = vpop.eup %1697  ;;  %v1301_v22 = vmul.f32 %v2324_v19, %v1265_v21  ;;  %vm1027_vm4 = vmor %vm1025_vm3, %vm1026_vm1  ;;  %v1032_v42 = vmul.f32 0.5, %v1031_v59  ;;  %v2479_v33 = vadd.f32 1e-05, %v874_v60  ;;  %v1257_v61 = vmul.f32 %v1108_v29, %v2173_v11 }
 0x1db   : > { %v1028_v49 = vsel %vm1027_vm4, %v2419_v55, %v1024_v5  ;;  %vm1036_vm5 = vweird.f32 %v2443_v56  ;;  %v950_v52 = vmul.f32 %v1698_v20, %v2426_v2  ;;  %vm1035_vm6 = vweird.f32 %v2411_v14 }
 0x1dc   : > { %v1337_v39 = vadd.f32 %v2331_v25, %v1301_v22  ;;  %v1249_v48 = vmul.f32 %v1028_v49, %v2170_v10  ;;  %v1033_v15 = vsub.f32 1.5, %v1032_v42  ;;  %1701 = vrsqrt.f32 %v2479_v33  ;;  %vm1037_vm7 = vmor %vm1035_vm6, %vm1036_vm5 }
 0x1dd   : > { %v1293_v32 = vmul.f32 %v2324_v19, %v1257_v61  ;;  %v951_v36 = vmul.f32 %v1698_v20, %v950_v52  ;;  %v2490_v11 = vadd.f32 1e-05, %v882_v63  ;;  %v860_v9 = vmul.f32 %v802_v31, %v2107_v62 }
 0x1de   : > { %1369 = vst [vmem:[%s2352_s12 + $0xd0] sm:$0xff] %v1337_v39  ;;  %v1285_v55 = vmul.f32 %v2324_v19, %v1249_v48  ;;  %v1034_v53 = vmul.f32 %v2443_v56, %v1033_v15  ;;  %v859_v10 = vmul.f32 %v800_v8, %v2107_v62  ;;  %vm956_vm8 = vweird.f32 %v1698_v20 }
 0x1df   : > { %v1700_v23 = vpop.eup %1699  ;;  %v1329_v16 = vadd.f32 %v2331_v25, %v1293_v32  ;;  %v952_v14 = vmul.f32 0.5, %v951_v36  ;;  %1703 = vrsqrt.f32 %v2490_v11  ;;  %v2506_v51 = vadd.f32 1e-05, %v860_v9 }
 0x1e0   : > { %v1321_v54 = vadd.f32 %v2331_v25, %v1285_v55  ;;  %v1038_v44 = vsel %vm1037_vm7, %v2443_v56, %v1034_v53  ;;  %v1120_v18 = vmul.f32 %v1700_v23, %v2459_v4  ;;  %v2508_v43 = vadd.f32 1e-05, %v859_v10 }
 0x1e1   : > { %v848_v3 = vpop.xlane.xlu0 %847  ;;  %1361 = vst [vmem:[%s2352_s12 + $0x90] sm:$0xff] %v1329_v16  ;;  %v1250_v58 = vmul.f32 %v1038_v44, %v2183_v13  ;;  %v953_v12 = vsub.f32 1.5, %v952_v14  ;;  %vm955_vm9 = vweird.f32 %v2426_v2  ;;  %v867_v59 = vmul.f32 %v816_v41, %v2107_v62 }
 0x1e2   : > { %v834_v8 = vpop.xlane.xlu2 %833  ;;  %v1702_v21 = vpop.eup %1701  ;;  %1353 = vst [vmem:[%s2352_s12 + $0x50] sm:$0xff] %v1321_v54  ;;  %v1121_v30 = vmul.f32 %v1700_v23, %v1120_v18  ;;  %v883_v13 = vmul.f32 %v848_v3, %v2107_v62  ;;  %vm957_vm10 = vmor %vm955_vm9, %vm956_vm8  ;;  %vm1125_vm11 = vweird.f32 %v2459_v4  ;;  %1705 = vrsqrt.f32 %v2506_v51 }
 0x1e3   : > { %v1286_v56 = vmul.f32 %v2324_v19, %v1250_v58  ;;  %v954_v60 = vmul.f32 %v1698_v20, %v953_v12  ;;  %v1110_v5 = vmul.f32 %v1702_v21, %v2479_v33  ;;  %v876_v2 = vmul.f32 %v834_v8, %v2107_v62 }
 0x1e4   : > { %v1122_v63 = vmul.f32 0.5, %v1121_v30  ;;  %1707 = vrsqrt.f32 %v2508_v43  ;;  %vm1126_vm12 = vweird.f32 %v1700_v23  ;;  %vm1115_vm13 = vweird.f32 %v2479_v33 }
 0x1e5   : > { %v2520_v22 = vpop.eup %1703  ;;  %v1322_v41 = vadd.f32 %v2331_v25, %v1286_v56  ;;  %v958_v29 = vsel %vm957_vm10, %v1698_v20, %v954_v60  ;;  %v1111_v42 = vmul.f32 %v1702_v21, %v1110_v5  ;;  %v2529_v39 = vadd.f32 1e-05, %v867_v59  ;;  %vm1127_vm14 = vmor %vm1125_vm11, %vm1126_vm12 }
 0x1e6   : > { %v1242_v61 = vmul.f32 %v958_v29, %v2187_v28  ;;  %v1123_v49 = vsub.f32 1.5, %v1122_v63  ;;  %v1190_v52 = vmul.f32 %v2520_v22, %v2490_v11  ;;  %v2531_v48 = vadd.f32 1e-05, %v883_v13 }
 0x1e7   : > { %1354 = vst [vmem:[%s2352_s12 + $0x58] sm:$0xff] %v1322_v41  ;;  %v1112_v31 = vmul.f32 0.5, %v1111_v42  ;;  %v2535_v36 = vadd.f32 1e-05, %v876_v2  ;;  %vm1116_vm15 = vweird.f32 %v1702_v21  ;;  %vm1195_vm0 = vweird.f32 %v2490_v11 }
 0x1e8   : > { %v1278_v20 = vmul.f32 %v2324_v19, %v1242_v61  ;;  %v1124_v15 = vmul.f32 %v1700_v23, %v1123_v49  ;;  %v1191_v32 = vmul.f32 %v2520_v22, %v1190_v52  ;;  %1709 = vrsqrt.f32 %v2529_v39  ;;  %v2541_v9 = vpop.eup %1705  ;;  %vm1117_vm2 = vmor %vm1115_vm13, %vm1116_vm15 }
 0x1e9   : > { %v1113_v28 = vsub.f32 1.5, %v1112_v31  ;;  %v820_v55 = vpop.xlane.xlu1 %819  ;;  %v818_v53 = vpop.xlane.xlu0 %817  ;;  %1711 = vrsqrt.f32 %v2531_v48  ;;  %v970_v44 = vmul.f32 %v2541_v9, %v2506_v51  ;;  %vm975_vm1 = vweird.f32 %v2506_v51 }
 0x1ea   : > { %v1314_v10 = vadd.f32 %v2331_v25, %v1278_v20  ;;  %v1128_v16 = vsel %vm1127_vm14, %v1700_v23, %v1124_v15  ;;  %v1192_v14 = vmul.f32 0.5, %v1191_v32  ;;  %v2545_v3 = vpop.eup %1707  ;;  %v804_v18 = vpop.xlane.xlu2 %803  ;;  %vm1196_vm3 = vweird.f32 %v2520_v22 }
 0x1eb   : > { %v1259_v4 = vmul.f32 %v1128_v16, %v2200_v45  ;;  %v1114_v54 = vmul.f32 %v1702_v21, %v1113_v28  ;;  %v960_v58 = vmul.f32 %v2545_v3, %v2508_v43  ;;  %vm965_vm4 = vweird.f32 %v2508_v43  ;;  %vm1197_vm7 = vmor %vm1195_vm0, %vm1196_vm3 }
 0x1ec   : > { %1346 = vst [vmem:[%s2352_s12 + $0x18] sm:$0xff] %v1314_v10  ;;  %v1193_v23 = vsub.f32 1.5, %v1192_v14  ;;  %1713 = vrsqrt.f32 %v2535_v36  ;;  %v971_v8 = vmul.f32 %v2541_v9, %v970_v44  ;;  %vm976_vm5 = vweird.f32 %v2541_v9 }
 0x1ed   : > { %v1295_v45 = vmul.f32 %v2324_v19, %v1259_v4  ;;  %v1118_v12 = vsel %vm1117_vm2, %v1702_v21, %v1114_v54  ;;  %v961_v59 = vmul.f32 %v2545_v3, %v960_v58  ;;  %vm966_vm6 = vweird.f32 %v2545_v3  ;;  %vm977_vm11 = vmor %vm975_vm1, %vm976_vm5 }
 0x1ee   : > { %v1258_v33 = vmul.f32 %v1118_v12, %v2203_v47  ;;  %v1194_v30 = vmul.f32 %v2520_v22, %v1193_v23  ;;  %v2567_v56 = vpop.eup %1709  ;;  %v972_v21 = vmul.f32 0.5, %v971_v8  ;;  %v869_v5 = vmul.f32 %v820_v55, %v2107_v62  ;;  %vm967_vm13 = vmor %vm965_vm4, %vm966_vm6 }
 0x1ef   : > { %v1331_v60 = vadd.f32 %v2331_v25, %v1295_v45  ;;  %v868_v13 = vmul.f32 %v818_v53, %v2107_v62  ;;  %v2574_v47 = vpop.eup %1711  ;;  %v962_v41 = vmul.f32 0.5, %v961_v59  ;;  %v1040_v29 = vmul.f32 %v2567_v56, %v2529_v39 }
 0x1f0   : > { %v1294_v63 = vmul.f32 %v2324_v19, %v1258_v33  ;;  %v1198_v2 = vsel %vm1197_vm7, %v2520_v22, %v1194_v30  ;;  %vm1045_vm8 = vweird.f32 %v2529_v39  ;;  %v973_v42 = vsub.f32 1.5, %v972_v21 }
 0x1f1   : > { %1363 = vst [vmem:[%s2352_s12 + $0xa0] sm:$0xff] %v1331_v60  ;;  %v1266_v11 = vmul.f32 %v1198_v2, %v2197_v26  ;;  %v1200_v61 = vmul.f32 %v2574_v47, %v2531_v48  ;;  %vm1205_vm9 = vweird.f32 %v2531_v48  ;;  %v861_v49 = vmul.f32 %v804_v18, %v2107_v62  ;;  %v838_v55 = vpop.xlane.xlu1 %837  ;;  %v836_v53 = vpop.xlane.xlu0 %835 }
 0x1f2   : > { %v2587_v52 = vpop.eup %1713  ;;  %v1330_v22 = vadd.f32 %v2331_v25, %v1294_v63  ;;  %v963_v31 = vsub.f32 1.5, %v962_v41  ;;  %v1041_v20 = vmul.f32 %v2567_v56, %v1040_v29  ;;  %vm1046_vm10 = vweird.f32 %v2567_v56  ;;  %v822_v18 = vpop.xlane.xlu2 %821 }
 0x1f3   : > { %v1302_v26 = vmul.f32 %v2324_v19, %v1266_v11  ;;  %v974_v15 = vmul.f32 %v2541_v9, %v973_v42  ;;  %v1201_v32 = vmul.f32 %v2574_v47, %v1200_v61  ;;  %v1130_v28 = vmul.f32 %v2587_v52, %v2535_v36  ;;  %vm1047_vm15 = vmor %vm1045_vm8, %vm1046_vm10 }
 0x1f4   : > { %1362 = vst [vmem:[%s2352_s12 + $0x98] sm:$0xff] %v1330_v22  ;;  %v964_v10 = vmul.f32 %v2545_v3, %v963_v31  ;;  %v1042_v16 = vmul.f32 0.5, %v1041_v20  ;;  %vm1206_vm12 = vweird.f32 %v2574_v47  ;;  %v2604_v14 = vadd.f32 1e-05, %v869_v5 }
 0x1f5   : > { %v1338_v4 = vadd.f32 %v2331_v25, %v1302_v26  ;;  %v978_v54 = vsel %vm977_vm11, %v2541_v9, %v974_v15  ;;  %v1202_v44 = vmul.f32 0.5, %v1201_v32  ;;  %v1131_v51 = vmul.f32 %v2587_v52, %v1130_v28  ;;  %vm1207_vm0 = vmor %vm1205_vm9, %vm1206_vm12 }
 0x1f6   : > { %v1244_v23 = vmul.f32 %v978_v54, %v2221_v1  ;;  %v968_v58 = vsel %vm967_vm13, %v2545_v3, %v964_v10  ;;  %v1043_v45 = vsub.f32 1.5, %v1042_v16  ;;  %1715 = vrsqrt.f32 %v2604_v14 }
 0x1f7   : > { %1370 = vst [vmem:[%s2352_s12 + $0xd8] sm:$0xff] %v1338_v4  ;;  %v1243_v12 = vmul.f32 %v968_v58, %v2214_v40  ;;  %v1203_v9 = vsub.f32 1.5, %v1202_v44  ;;  %v1132_v8 = vmul.f32 0.5, %v1131_v51  ;;  %vm1136_vm14 = vweird.f32 %v2587_v52 }
 0x1f8   : > { %v1280_v43 = vmul.f32 %v2324_v19, %v1244_v23  ;;  %v1044_v33 = vmul.f32 %v2567_v56, %v1043_v45  ;;  %v2621_v30 = vadd.f32 1e-05, %v868_v13  ;;  %v2623_v59 = vadd.f32 1e-05, %v861_v49 }
 0x1f9   : > { %v1279_v1 = vmul.f32 %v2324_v19, %v1243_v12  ;;  %v1204_v40 = vmul.f32 %v2574_v47, %v1203_v9  ;;  %v1133_v3 = vsub.f32 1.5, %v1132_v8  ;;  %v878_v60 = vmul.f32 %v838_v55, %v2107_v62  ;;  %v850_v29 = vpop.xlane.xlu1 %849  ;;  %v806_v11 = vpop.xlane.xlu0 %805 }
 0x1fa   : > { %v1316_v21 = vadd.f32 %v2331_v25, %v1280_v43  ;;  %v1048_v5 = vsel %vm1047_vm15, %v2567_v56, %v1044_v33  ;;  %vm1135_vm1 = vweird.f32 %v2535_v36  ;;  %1717 = vrsqrt.f32 %v2621_v30 }
 0x1fb   : > { %v1315_v39 = vadd.f32 %v2331_v25, %v1279_v1  ;;  %v1251_v13 = vmul.f32 %v1048_v5, %v2218_v0  ;;  %v1208_v63 = vsel %vm1207_vm0, %v2574_v47, %v1204_v40  ;;  %v1134_v2 = vmul.f32 %v2587_v52, %v1133_v3  ;;  %vm1137_vm2 = vmor %vm1135_vm1, %vm1136_vm14 }
 0x1fc   : > { %v1716_v41 = vpop.eup %1715  ;;  %1348 = vst [vmem:[%s2352_s12 + $0x28] sm:$0xff] %v1316_v21  ;;  %v1267_v56 = vmul.f32 %v1208_v63, %v2232_v57  ;;  %1719 = vrsqrt.f32 %v2623_v59  ;;  %v2649_v48 = vadd.f32 1e-05, %v878_v60  ;;  %v877_v22 = vmul.f32 %v836_v53, %v2107_v62 }
 0x1fd   : > { %1347 = vst [vmem:[%s2352_s12 + $0x20] sm:$0xff] %v1315_v39  ;;  %v1287_v36 = vmul.f32 %v2324_v19, %v1251_v13  ;;  %v1138_v0 = vsel %vm1137_vm2, %v2587_v52, %v1134_v2  ;;  %v1060_v47 = vmul.f32 %v1716_v41, %v2604_v14  ;;  %v870_v31 = vmul.f32 %v822_v18, %v2107_v62  ;;  %v852_v52 = vpop.xlane.xlu2 %851 }
 0x1fe   : > { %v1303_v42 = vmul.f32 %v2324_v19, %v1267_v56  ;;  %v1260_v57 = vmul.f32 %v1138_v0, %v2235_v17  ;;  %1721 = vrsqrt.f32 %v2649_v48  ;;  %v884_v32 = vmul.f32 %v850_v29, %v2107_v62 }
 0x1ff   : > { %v1323_v61 = vadd.f32 %v2331_v25, %v1287_v36  ;;  %v1061_v49 = vmul.f32 %v1716_v41, %v1060_v47  ;;  %vm1065_vm3 = vweird.f32 %v2604_v14  ;;  %v2667_v55 = vadd.f32 1e-05, %v877_v22 }
 0x200   : > { %v1718_v20 = vpop.eup %1717  ;;  %v1339_v26 = vadd.f32 %v2331_v25, %v1303_v42  ;;  %v1296_v15 = vmul.f32 %v2324_v19, %v1260_v57  ;;  %v2671_v16 = vadd.f32 1e-05, %v870_v31  ;;  %v862_v4 = vmul.f32 %v806_v11, %v2107_v62 }
 0x201   : > { %1355 = vst [vmem:[%s2352_s12 + $0x60] sm:$0xff] %v1323_v61  ;;  %v1062_v17 = vmul.f32 0.5, %v1061_v49  ;;  %v1050_v28 = vmul.f32 %v1718_v20, %v2621_v30  ;;  %v885_v54 = vmul.f32 %v852_v52, %v2107_v62  ;;  %vm1066_vm4 = vweird.f32 %v1716_v41  ;;  %v854_v21 = vpop.xlane.xlu0 %853 }
 0x202   : > { %v1720_v53 = vpop.eup %1719  ;;  %1371 = vst [vmem:[%s2352_s12 + $0xe0] sm:$0xff] %v1339_v26  ;;  %v1332_v10 = vadd.f32 %v2331_v25, %v1296_v15  ;;  %vm1055_vm5 = vweird.f32 %v2621_v30  ;;  %vm985_vm6 = vweird.f32 %v2623_v59  ;;  %1723 = vrsqrt.f32 %v2667_v55  ;;  %vm1067_vm7 = vmor %vm1065_vm3, %vm1066_vm4 }
 0x203   : > { %v1063_v44 = vsub.f32 1.5, %v1062_v17  ;;  %v1051_v51 = vmul.f32 %v1718_v20, %v1050_v28  ;;  %v980_v18 = vmul.f32 %v1720_v53, %v2623_v59  ;;  %v2682_v58 = vadd.f32 1e-05, %v884_v32 }
 0x204   : > { %v2676_v23 = vpop.eup %1721  ;;  %1364 = vst [vmem:[%s2352_s12 + $0xa8] sm:$0xff] %v1332_v10  ;;  %vm1056_vm8 = vweird.f32 %v1718_v20  ;;  %1725 = vrsqrt.f32 %v2671_v16  ;;  %v2689_v43 = vadd.f32 1e-05, %v862_v4  ;;  %v2691_v33 = vadd.f32 1e-05, %v885_v54 }
 0x205   : > { %v1064_v45 = vmul.f32 %v1716_v41, %v1063_v44  ;;  %v1052_v12 = vmul.f32 0.5, %v1051_v51  ;;  %v981_v9 = vmul.f32 %v1720_v53, %v980_v18  ;;  %v1150_v8 = vmul.f32 %v2676_v23, %v2649_v48  ;;  %vm1057_vm11 = vmor %vm1055_vm5, %vm1056_vm8 }
 0x206   : > { %vm986_vm9 = vweird.f32 %v1720_v53  ;;  %vm1155_vm10 = vweird.f32 %v2649_v48  ;;  %1727 = vrsqrt.f32 %v2682_v58  ;;  %vm1156_vm12 = vweird.f32 %v2676_v23 }
 0x207   : > { %v1068_v1 = vsel %vm1067_vm7, %v1716_v41, %v1064_v45  ;;  %v1053_v40 = vsub.f32 1.5, %v1052_v12  ;;  %v982_v3 = vmul.f32 0.5, %v981_v9  ;;  %v1151_v60 = vmul.f32 %v2676_v23, %v1150_v8  ;;  %vm987_vm13 = vmor %vm985_vm6, %vm986_vm9 }
 0x208   : > { %v1253_v5 = vmul.f32 %v1068_v1, %v2251_v35  ;;  %1729 = vrsqrt.f32 %v2689_v43  ;;  %v2698_v63 = vpop.eup %1723  ;;  %v886_v35 = vmul.f32 %v854_v21, %v2107_v62  ;;  %vm1145_vm14 = vweird.f32 %v2667_v55  ;;  %vm1157_vm15 = vmor %vm1155_vm10, %vm1156_vm12 }
 0x209   : > { %v1054_v14 = vmul.f32 %v1718_v20, %v1053_v40  ;;  %v983_v39 = vsub.f32 1.5, %v982_v3  ;;  %v1152_v13 = vmul.f32 0.5, %v1151_v60  ;;  %1731 = vrsqrt.f32 %v2691_v33 }
 0x20a   : > { %v1289_v2 = vmul.f32 %v2324_v19, %v1253_v5  ;;  %v1140_v0 = vmul.f32 %v2698_v63, %v2667_v55  ;;  %v2709_v47 = vpop.eup %1725  ;;  %v2717_v62 = vadd.f32 1e-05, %v886_v35  ;;  %vm1075_vm0 = vweird.f32 %v2671_v16 }
 0x20b   : > { %v1058_v41 = vsel %vm1057_vm11, %v1718_v20, %v1054_v14  ;;  %v984_v56 = vmul.f32 %v1720_v53, %v983_v39  ;;  %v1153_v36 = vsub.f32 1.5, %v1152_v13  ;;  %v1070_v61 = vmul.f32 %v2709_v47, %v2671_v16 }
 0x20c   : > { %v1325_v29 = vadd.f32 %v2331_v25, %v1289_v2  ;;  %v1252_v30 = vmul.f32 %v1058_v41, %v2244_v50  ;;  %v1141_v57 = vmul.f32 %v2698_v63, %v1140_v0  ;;  %v2723_v49 = vpop.eup %1727  ;;  %1733 = vrsqrt.f32 %v2717_v62 }
 0x20d   : > { %v988_v11 = vsel %vm987_vm13, %v1720_v53, %v984_v56  ;;  %v1154_v42 = vmul.f32 %v2676_v23, %v1153_v36  ;;  %v1071_v20 = vmul.f32 %v2709_v47, %v1070_v61  ;;  %vm1146_vm1 = vweird.f32 %v2698_v63 }
 0x20e   : > { %1357 = vst [vmem:[%s2352_s12 + $0x70] sm:$0xff] %v1325_v29  ;;  %v1288_v50 = vmul.f32 %v2324_v19, %v1252_v30  ;;  %v1245_v59 = vmul.f32 %v988_v11, %v2248_v34  ;;  %v2734_v22 = vpop.eup %1729  ;;  %v1142_v52 = vmul.f32 0.5, %v1141_v57  ;;  %v1210_v34 = vmul.f32 %v2723_v49, %v2682_v58  ;;  %vm1147_vm3 = vmor %vm1145_vm14, %vm1146_vm1 }
 0x20f   : > { %v1158_v31 = vsel %vm1157_vm15, %v2676_v23, %v1154_v42  ;;  %v2740_v26 = vpop.eup %1731  ;;  %v1072_v28 = vmul.f32 0.5, %v1071_v20  ;;  %v990_v10 = vmul.f32 %v2734_v22, %v2689_v43  ;;  %vm1076_vm2 = vweird.f32 %v2709_v47 }
 0x210   : > { %v1324_v48 = vadd.f32 %v2331_v25, %v1288_v50  ;;  %v1281_v15 = vmul.f32 %v2324_v19, %v1245_v59  ;;  %v1262_v32 = vmul.f32 %v1158_v31, %v2266_v27  ;;  %v1143_v17 = vsub.f32 1.5, %v1142_v52  ;;  %vm1077_vm6 = vmor %vm1075_vm0, %vm1076_vm2 }
 0x211   : > { %v1211_v53 = vmul.f32 %v2723_v49, %v1210_v34  ;;  %v1220_v27 = vmul.f32 %v2740_v26, %v2691_v33  ;;  %v1073_v51 = vsub.f32 1.5, %v1072_v28  ;;  %v991_v23 = vmul.f32 %v2734_v22, %v990_v10 }
 0x212   : > { %1356 = vst [vmem:[%s2352_s12 + $0x68] sm:$0xff] %v1324_v48  ;;  %v1317_v4 = vadd.f32 %v2331_v25, %v1281_v15  ;;  %v1298_v54 = vmul.f32 %v2324_v19, %v1262_v32  ;;  %v1144_v44 = vmul.f32 %v2698_v63, %v1143_v17  ;;  %v2757_v45 = vpop.eup %1733  ;;  %vm1215_vm4 = vweird.f32 %v2682_v58 }
 0x213   : > { %v1212_v18 = vmul.f32 0.5, %v1211_v53  ;;  %vm1216_vm5 = vweird.f32 %v2723_v49  ;;  %v1221_v9 = vmul.f32 %v2740_v26, %v1220_v27  ;;  %v1074_v1 = vmul.f32 %v2709_v47, %v1073_v51 }
 0x214   : > { %1349 = vst [vmem:[%s2352_s12 + $0x30] sm:$0xff] %v1317_v4  ;;  %v1334_v12 = vadd.f32 %v2331_v25, %v1298_v54  ;;  %v1148_v8 = vsel %vm1147_vm3, %v2698_v63, %v1144_v44  ;;  %v992_v3 = vmul.f32 0.5, %v991_v23  ;;  %vm996_vm7 = vweird.f32 %v2734_v22  ;;  %vm1217_vm9 = vmor %vm1215_vm4, %vm1216_vm5 }
 0x215   : > { %v1213_v40 = vsub.f32 1.5, %v1212_v18  ;;  %v1261_v60 = vmul.f32 %v1148_v8, %v2261_v7  ;;  %v1222_v55 = vmul.f32 0.5, %v1221_v9  ;;  %v1230_v21 = vmul.f32 %v2757_v45, %v2717_v62 }
 0x216   : > { %1366 = vst [vmem:[%s2352_s12 + $0xb8] sm:$0xff] %v1334_v12  ;;  %v1078_v5 = vsel %vm1077_vm6, %v2709_v47, %v1074_v1  ;;  %v993_v39 = vsub.f32 1.5, %v992_v3  ;;  %vm1226_vm8 = vweird.f32 %v2740_v26  ;;  %vm995_vm10 = vweird.f32 %v2689_v43 }
 0x217   : > { %v1214_v14 = vmul.f32 %v2723_v49, %v1213_v40  ;;  %v1297_v7 = vmul.f32 %v2324_v19, %v1261_v60  ;;  %v1254_v13 = vmul.f32 %v1078_v5, %v2269_v38  ;;  %v1223_v16 = vsub.f32 1.5, %v1222_v55  ;;  %vm997_vm12 = vmor %vm995_vm10, %vm996_vm7 }
 0x218   : > { %v1231_v63 = vmul.f32 %v2757_v45, %v1230_v21  ;;  %v994_v35 = vmul.f32 %v2734_v22, %v993_v39  ;;  %vm1225_vm11 = vweird.f32 %v2691_v33  ;;  %vm1236_vm14 = vweird.f32 %v2757_v45 }
 0x219   : > { %v1218_v2 = vsel %vm1217_vm9, %v2723_v49, %v1214_v14  ;;  %v1333_v38 = vadd.f32 %v2331_v25, %v1297_v7  ;;  %v1290_v41 = vmul.f32 %v2324_v19, %v1254_v13  ;;  %v1224_v56 = vmul.f32 %v2740_v26, %v1223_v16  ;;  %vm1227_vm13 = vmor %vm1225_vm11, %vm1226_vm8  ;;  %v1735_v19 = vld [vmem:[%s2861_s4] ss:$0 sm:$0xff] }
 0x21a   : > { %v1268_v58 = vmul.f32 %v1218_v2, %v2281_v37  ;;  %v998_v36 = vsel %vm997_vm12, %v2734_v22, %v994_v35  ;;  %v1232_v43 = vmul.f32 0.5, %v1231_v63  ;;  %vm1235_vm15 = vweird.f32 %v2717_v62 }
 0x21b   : > { %1365 = vst [vmem:[%s2352_s12 + $0xb0] sm:$0xff] %v1333_v38  ;;  %v1326_v33 = vadd.f32 %v2331_v25, %v1290_v41  ;;  %v1246_v0 = vmul.f32 %v998_v36, %v2284_v46  ;;  %v1228_v47 = vsel %vm1227_vm13, %v2740_v26, %v1224_v56  ;;  %v1736_v25 = vld [vmem:[%s2862_s5] ss:$0 sm:$0xff]  ;;  %vm1237_vm0 = vmor %vm1235_vm15, %vm1236_vm14 }
 0x21c   : > { %v1304_v37 = vmul.f32 %v1735_v19, %v1268_v58  ;;  %v1269_v29 = vmul.f32 %v1228_v47, %v2287_v24  ;;  %v1233_v30 = vsub.f32 1.5, %v1232_v43 }
 0x21d   : > { %1358 = vst [vmem:[%s2352_s12 + $0x78] sm:$0xff] %v1326_v33  ;;  %v1282_v42 = vmul.f32 %v1735_v19, %v1246_v0 }
 0x21e   : > { %v1340_v11 = vadd.f32 %v1736_v25, %v1304_v37  ;;  %v1305_v57 = vmul.f32 %v1735_v19, %v1269_v29  ;;  %v1234_v46 = vmul.f32 %v2757_v45, %v1233_v30 }
 0x21f   : > { %v1318_v24 = vadd.f32 %v1736_v25, %v1282_v42 }
 0x220   : > { %1372 = vst [vmem:[%s2352_s12 + $0xe8] sm:$0xff] %v1340_v11  ;;  %v1341_v61 = vadd.f32 %v1736_v25, %v1305_v57  ;;  %v1238_v49 = vsel %vm1237_vm0, %v2757_v45, %v1234_v46 }
 0x221   : > { %1350 = vst [vmem:[%s2352_s12 + $0x38] sm:$0xff] %v1318_v24  ;;  %v1270_v50 = vmul.f32 %v1238_v49, %v2297_v6 }
 0x222   : > { %1373 = vst [vmem:[%s2352_s12 + $0xf0] sm:$0xff] %v1341_v61 }
 0x223   : > { %v1306_v62 = vmul.f32 %v1735_v19, %v1270_v50 }
 0x225   : > { %v1342_v59 = vadd.f32 %v1736_v25, %v1306_v62 }
 0x227   : > { %1374 = vst [vmem:[%s2352_s12 + $0xf8] sm:$0xff] %v1342_v59 }
 0x228   : > { %1764 = shalt.err (!%p1761_p3)
}
 0x229   : > { %s1802_s17 = smov 128   ;;  %s1803_s12 = smov 8  }
 0x22a   : > { %1624 = dma.vmem_to_hbm [thread:$0]  (%p1877_p5), %s1389_s26, 4096, %s1391_s28, %s1376_s29, %s1802_s17, %s1802_s17, %s1803_s12  }
 0x22b PF: > { %p1630_p4 = scmp.ge.s32.totalorder %s1799_s24, 2  ;;  %s1405_s18 = sand.u32 1, %s1787_s21  }
 0x22c   : > { %s1406_s25 = scalar_lea.sflag [#allocation3], %s1405_s18 }
 0x22d   : > { %p1627_p7 = pnand %p1630_p4, %p1881_p6 }
 0x22f   : > { %p1628_p8 = pneg %p1627_p7 }
 0x231   : > { %1782 = dma.done.wait (%p1628_p8), %s1406_s25, 4096  }
 0x232   : > { %1784 = vsyncadd (%p1628_p8), %s1406_s25, 4294963200  ;;  %p16_p9 = scmp.ge.s32.totalorder %s1864_s27, 4   ;;  %s2866_s21 = smov %s1791_s22 }
 0x233   : > { %s2867_s22 = smov %s1795_s23  ;;  %s2868_s23 = smov %s1875_s30 }
 0x234   : > { %s2869_s24 = smov %s1864_s27  ;;  %18 = sbr.rel (!%p16_p9) target bundleno = 3 (0x3), region = 82 }
 0x239   :  { %1412 = vsyncpa [#allocation3], 1 }
 0x23a   :  { %1414 = vsyncpa [#allocation3 + $0x1], 1 }

</bundles_post_ra>
